<compile_context>
chip_gen: v5e
topology: v5e:2x2
jax: 0.10.0
libtpu: 0.0.40
codegen_flags: <defaults>
</compile_context>

<pallas_src>
import functools
import numpy as np
import jax
import jax.numpy as jnp
from jax.experimental import pallas as pl
from jax.experimental.pallas import tpu as pltpu


_WEIGHT_NAMES = ("w1", "b1", "w2", "b2", "w3", "b3", "w4", "b4",
                 "wfc", "bfc", "wbc", "bbc")


# ---------------------------------------------------------------------------
# Pallas kernel: one grid step == one batch tile; all blocks unrolled in-body.
# ---------------------------------------------------------------------------

def _seasonality_stack_kernel(x_ref,
                              w1, b1, w2, b2, w3, b3, w4, b4,
                              wfc, bfc, wbc, bbc,
                              fc_ref, bc_ref, res_ref,
                              *, num_blocks):
    residual = x_ref[...]                                    # (TB, I) f32

    def dense(h, w, b, relu):
        # bf16 MXU matmul, f32 accumulation, f32 bias. Dropout(eval) = id.
        y = jnp.dot(h.astype(jnp.bfloat16), w,
                    preferred_element_type=jnp.float32) + b
        return jnp.maximum(y, 0.0) if relu else y

    fc = None
    bc = None
    for blk in range(num_blocks):                            # static unroll
        h = dense(residual, w1[blk], b1[blk], True)
        h = dense(h, w2[blk], b2[blk], True)
        h = dense(h, w3[blk], b3[blk], True)
        theta = dense(h, w4[blk], b4[blk], False)            # (TB, theta)
        f = dense(theta, wfc[blk], bfc[blk], False)          # (TB, I)
        bk = dense(theta, wbc[blk], bbc[blk], False)         # (TB, I)
        fc = f if fc is None else fc + f
        bc = bk if bc is None else bc + bk
        residual = residual - bk

    fc_ref[...] = fc
    bc_ref[...] = bc
    res_ref[...] = residual


# ---------------------------------------------------------------------------
# Host-side glue
# ---------------------------------------------------------------------------

@functools.lru_cache(maxsize=None)
def _fourier_basis_np(input_size, num_harmonics):
    """Static Fourier basis (2H, input_size); rows [sin(1t), cos(1t), ...]."""
    t = np.linspace(0.0, 2.0 * np.pi, input_size, dtype=np.float32)
    rows = []
    for i in range(1, num_harmonics + 1):
        rows.append(np.sin(i * t))
        rows.append(np.cos(i * t))
    return np.stack(rows, axis=0).astype(np.float32)


def _pick_batch_tile(B):
    # Whole batch in one tile when small (maximize MXU row occupancy);
    # 128-row tiles when large so the parallel grid axis can be sharded
    # across TensorCores (v7x megacore).
    if B > 128 and B % 128 == 0:
        return 128
    return B


def seasonality_stack_forward(x, params, batch_tile=None,
                              materialize_seasonal=True):
    """Pallas implementation of SeasonalityStack.forward (eval mode).

    Returns the module-shaped dict. With materialize_seasonal=False,
    'seasonal_components' is the (I, I) core (every batch slice of the
    module's output is identical).
    """
    B, input_size = x.shape
    num_blocks = int(params["w1"].shape[0])
    num_harmonics = params["seasonality_coefficients"].shape[1] // 2

    if batch_tile is None:
        batch_tile = _pick_batch_tile(B)
    if B % batch_tile != 0:
        batch_tile = B
    n_tiles = B // batch_tile

    if x.dtype != jnp.float32:
        x = x.astype(jnp.float32)

    def full_spec(shape):
        zeros = (0,) * len(shape)
        return pl.BlockSpec(shape, lambda i: zeros)

    tile_spec = pl.BlockSpec((batch_tile, input_size), lambda i: (i, 0))

    in_specs = [tile_spec]
    in_specs += [full_spec(params[name].shape) for name in _WEIGHT_NAMES]

    out_sd = jax.ShapeDtypeStruct((B, input_size), jnp.float32)

    kernel = functools.partial(_seasonality_stack_kernel,
                               num_blocks=num_blocks)

    fc, bc, res = pl.pallas_call(
        kernel,
        grid=(n_tiles,),
        in_specs=in_specs,
        out_specs=[tile_spec] * 3,
        out_shape=(out_sd, out_sd, out_sd),
        compiler_params=pltpu.CompilerParams(
            dimension_semantics=("parallel",)),   # batch tiles are independent
    )(x, *(params[name] for name in _WEIGHT_NAMES))

    # seasonal_components depends only on params -> plain XLA, f32 HIGHEST.
    fourier_basis = jnp.asarray(_fourier_basis_np(input_size, num_harmonics))
    seasonal_core = jnp.dot(
        params["seasonality_coefficients"].astype(jnp.float32), fourier_basis,
        precision=jax.lax.Precision.HIGHEST)
    if materialize_seasonal:
        seasonal = jnp.broadcast_to(seasonal_core[None],
                                    (B, input_size, input_size))
    else:
        seasonal = seasonal_core

    return {"forecast": fc,
            "backcast": bc,
            "seasonal_components": seasonal,
            "residual": res}


# ---------------------------------------------------------------------------
# Deterministic parameter init (synthetic; shapes follow the module __init__)
# ---------------------------------------------------------------------------

def init_params(key, input_size, num_blocks=3, theta_size=128,
                hidden_size=256, num_harmonics=8):
    basis_size = input_size * 2

    def linear(k, fan_in, fan_out):
        kw, kb = jax.random.split(k)
        bound = 1.0 / np.sqrt(fan_in)
        w = jax.random.uniform(kw, (fan_in, fan_out), jnp.float32,
                               -bound, bound)
        b = jax.random.uniform(kb, (1, fan_out), jnp.float32, -bound, bound)
        return w.astype(jnp.bfloat16), b          # weights bf16, biases f32

    keys = jax.random.split(key, num_blocks * 5 + 1)
    lists = {name: [] for name in _WEIGHT_NAMES}
    for blk in range(num_blocks):
        k = keys[blk * 5: blk * 5 + 5]
        w, b = linear(k[0], input_size, hidden_size)
        lists["w1"].append(w); lists["b1"].append(b)
        w, b = linear(k[1], hidden_size, hidden_size)
        lists["w2"].append(w); lists["b2"].append(b)
        w, b = linear(k[2], hidden_size, hidden_size)
        lists["w3"].append(w); lists["b3"].append(b)
        w, b = linear(k[3], hidden_size, theta_size)
        lists["w4"].append(w); lists["b4"].append(b)
        # basis_expansion Linear(theta, 2*I) split column-wise: [forecast|backcast]
        w, b = linear(k[4], theta_size, basis_size)
        lists["wfc"].append(w[:, :input_size])
        lists["bfc"].append(b[:, :input_size])
        lists["wbc"].append(w[:, input_size:])
        lists["bbc"].append(b[:, input_size:])

    params = {name: jnp.stack(lists[name], axis=0) for name in _WEIGHT_NAMES}
    params["seasonality_coefficients"] = jax.random.normal(
        keys[-1], (input_size, num_harmonics * 2), jnp.float32)
    return params


# ---------------------------------------------------------------------------
# Host numpy reference (exact f32 math over the same bf16-stored weights)
# ---------------------------------------------------------------------------

def reference_forward(x, params):
    f32 = lambda a: np.asarray(jnp.asarray(a, jnp.float32))
    p = {k: f32(v) for k, v in params.items()}
    xp = np.asarray(x, np.float32)
    input_size = xp.shape[1]
    num_blocks = p["w1"].shape[0]
    num_harmonics = p["seasonality_coefficients"].shape[1] // 2

    residual = xp
    fcs, bcs = [], []
    for blk in range(num_blocks):
        h = np.maximum(residual @ p["w1"][blk] + p["b1"][blk], 0.0)
        h = np.maximum(h @ p["w2"][blk] + p["b2"][blk], 0.0)
        h = np.maximum(h @ p["w3"][blk] + p["b3"][blk], 0.0)
        theta = h @ p["w4"][blk] + p["b4"][blk]
        fcs.append(theta @ p["wfc"][blk] + p["bfc"][blk])
        bc = theta @ p["wbc"][blk] + p["bbc"][blk]
        bcs.append(bc)
        residual = residual - bc

    fourier_basis = _fourier_basis_np(input_size, num_harmonics)
    core = p["seasonality_coefficients"] @ fourier_basis
    return {"forecast": sum(fcs), "backcast": sum(bcs),
            "seasonal_core": core, "residual": residual}


# ---------------------------------------------------------------------------

if __name__ == "__main__":
    B = 32
    INPUT_SIZE = 128          # lookback window / feature dim of the stack
    key = jax.random.PRNGKey(0)
    kx, kp = jax.random.split(key)

    x = jax.random.normal(kx, (B, INPUT_SIZE), jnp.float32)
    params = init_params(kp, INPUT_SIZE)

    # Exercise both the tiled-grid path (parallel batch axis, grid=(2,)) and
    # the default single-tile path (grid=(1,)).
    out_tiled = jax.block_until_ready(
        seasonality_stack_forward(x, params, batch_tile=16))
    out_default = jax.block_until_ready(
        seasonality_stack_forward(x, params))

    ref = reference_forward(x, params)
    seas_full = np.broadcast_to(ref["seasonal_core"][None],
                                (B, INPUT_SIZE, INPUT_SIZE))

    for out in (out_tiled, out_default):
        # bf16-weight / bf16-MXU path vs. exact-f32 host reference.
        for name in ("forecast", "backcast", "residual"):
            np.testing.assert_allclose(np.asarray(out[name]), ref[name],
                                       rtol=2e-2, atol=2e-2)
        np.testing.assert_allclose(np.asarray(out["seasonal_components"]),
                                   seas_full, rtol=1e-3, atol=1e-3)

    print("KERNEL_OK")
</pallas_src>

<mosaic_0001>
module attributes {stable_mosaic.version = 11 : i64} {
  func.func @_seasonality_stack_kernel(%arg0: i32, %arg1: memref<16x128xf32, #tpu.memory_space<vmem>>, %arg2: memref<3x128x256xbf16, #tpu.memory_space<vmem>>, %arg3: memref<3x1x256xf32, #tpu.memory_space<vmem>>, %arg4: memref<3x256x256xbf16, #tpu.memory_space<vmem>>, %arg5: memref<3x1x256xf32, #tpu.memory_space<vmem>>, %arg6: memref<3x256x256xbf16, #tpu.memory_space<vmem>>, %arg7: memref<3x1x256xf32, #tpu.memory_space<vmem>>, %arg8: memref<3x256x128xbf16, #tpu.memory_space<vmem>>, %arg9: memref<3x1x128xf32, #tpu.memory_space<vmem>>, %arg10: memref<3x128x128xbf16, #tpu.memory_space<vmem>>, %arg11: memref<3x1x128xf32, #tpu.memory_space<vmem>>, %arg12: memref<3x128x128xbf16, #tpu.memory_space<vmem>>, %arg13: memref<3x1x128xf32, #tpu.memory_space<vmem>>, %arg14: memref<16x128xf32, #tpu.memory_space<vmem>>, %arg15: memref<16x128xf32, #tpu.memory_space<vmem>>, %arg16: memref<16x128xf32, #tpu.memory_space<vmem>>) attributes {dimension_semantics = [#tpu.dimension_semantics<parallel>], iteration_bounds = array<i64: 2>, scalar_prefetch = 0 : i64, scratch_operands = 0 : i64, tpu.core_type = #tpu.core_type<tc>, window_params = [{transform_indices = @transform_0, window_bounds = array<i64: 16, 128>}, {pipeline_mode = #tpu.pipeline_mode<synchronous>, transform_indices = @transform_1, window_bounds = array<i64: 3, 128, 256>}, {pipeline_mode = #tpu.pipeline_mode<synchronous>, transform_indices = @transform_2, window_bounds = array<i64: 3, 1, 256>}, {pipeline_mode = #tpu.pipeline_mode<synchronous>, transform_indices = @transform_3, window_bounds = array<i64: 3, 256, 256>}, {pipeline_mode = #tpu.pipeline_mode<synchronous>, transform_indices = @transform_4, window_bounds = array<i64: 3, 1, 256>}, {pipeline_mode = #tpu.pipeline_mode<synchronous>, transform_indices = @transform_5, window_bounds = array<i64: 3, 256, 256>}, {pipeline_mode = #tpu.pipeline_mode<synchronous>, transform_indices = @transform_6, window_bounds = array<i64: 3, 1, 256>}, {pipeline_mode = #tpu.pipeline_mode<synchronous>, transform_indices = @transform_7, window_bounds = array<i64: 3, 256, 128>}, {pipeline_mode = #tpu.pipeline_mode<synchronous>, transform_indices = @transform_8, window_bounds = array<i64: 3, 1, 128>}, {pipeline_mode = #tpu.pipeline_mode<synchronous>, transform_indices = @transform_9, window_bounds = array<i64: 3, 128, 128>}, {pipeline_mode = #tpu.pipeline_mode<synchronous>, transform_indices = @transform_10, window_bounds = array<i64: 3, 1, 128>}, {pipeline_mode = #tpu.pipeline_mode<synchronous>, transform_indices = @transform_11, window_bounds = array<i64: 3, 128, 128>}, {pipeline_mode = #tpu.pipeline_mode<synchronous>, transform_indices = @transform_12, window_bounds = array<i64: 3, 1, 128>}, {transform_indices = @transform_13, window_bounds = array<i64: 16, 128>}, {transform_indices = @transform_14, window_bounds = array<i64: 16, 128>}, {transform_indices = @transform_15, window_bounds = array<i64: 16, 128>}]} {
    %c0 = arith.constant 0 : index
    %c0_0 = arith.constant 0 : index
    %0 = vector.load %arg1[%c0, %c0_0] : memref<16x128xf32, #tpu.memory_space<vmem>>, vector<16x128xf32>
    %c0_1 = arith.constant 0 : index
    %c0_2 = arith.constant 0 : index
    %c0_3 = arith.constant 0 : index
    %1 = vector.load %arg2[%c0_1, %c0_2, %c0_3] : memref<3x128x256xbf16, #tpu.memory_space<vmem>>, vector<1x128x256xbf16>
    %2 = vector.shape_cast %1 : vector<1x128x256xbf16> to vector<128x256xbf16>
    %c0_4 = arith.constant 0 : index
    %c0_5 = arith.constant 0 : index
    %c0_6 = arith.constant 0 : index
    %3 = vector.load %arg3[%c0_4, %c0_5, %c0_6] : memref<3x1x256xf32, #tpu.memory_space<vmem>>, vector<1x1x256xf32>
    %4 = vector.shape_cast %3 : vector<1x1x256xf32> to vector<1x256xf32>
    %5 = arith.truncf %0 : vector<16x128xf32> to vector<16x128xbf16>
    %cst = arith.constant dense<0.000000e+00> : vector<16x256xf32>
    %6 = tpu.matmul %5, %2, %cst {dimension_numbers = #tpu.dot_dimension_numbers<[1], [0], [0], [1], [0, 0, 1, 1], [], []>} : vector<16x128xbf16>, vector<128x256xbf16>, vector<16x256xf32> -> vector<16x256xf32>
    %7 = vector.broadcast %4 : vector<1x256xf32> to vector<16x256xf32>
    %8 = arith.addf %6, %7 : vector<16x256xf32>
    %cst_7 = arith.constant 0.000000e+00 : f32
    %9 = vector.broadcast %cst_7 : f32 to vector<16x256xf32>
    %10 = arith.maximumf %8, %9 : vector<16x256xf32>
    %c0_8 = arith.constant 0 : index
    %c0_9 = arith.constant 0 : index
    %c0_10 = arith.constant 0 : index
    %11 = vector.load %arg4[%c0_8, %c0_9, %c0_10] : memref<3x256x256xbf16, #tpu.memory_space<vmem>>, vector<1x256x256xbf16>
    %12 = vector.shape_cast %11 : vector<1x256x256xbf16> to vector<256x256xbf16>
    %c0_11 = arith.constant 0 : index
    %c0_12 = arith.constant 0 : index
    %c0_13 = arith.constant 0 : index
    %13 = vector.load %arg5[%c0_11, %c0_12, %c0_13] : memref<3x1x256xf32, #tpu.memory_space<vmem>>, vector<1x1x256xf32>
    %14 = vector.shape_cast %13 : vector<1x1x256xf32> to vector<1x256xf32>
    %15 = arith.truncf %10 : vector<16x256xf32> to vector<16x256xbf16>
    %cst_14 = arith.constant dense<0.000000e+00> : vector<16x256xf32>
    %16 = tpu.matmul %15, %12, %cst_14 {dimension_numbers = #tpu.dot_dimension_numbers<[1], [0], [0], [1], [0, 0, 1, 1], [], []>} : vector<16x256xbf16>, vector<256x256xbf16>, vector<16x256xf32> -> vector<16x256xf32>
    %17 = vector.broadcast %14 : vector<1x256xf32> to vector<16x256xf32>
    %18 = arith.addf %16, %17 : vector<16x256xf32>
    %cst_15 = arith.constant 0.000000e+00 : f32
    %19 = vector.broadcast %cst_15 : f32 to vector<16x256xf32>
    %20 = arith.maximumf %18, %19 : vector<16x256xf32>
    %c0_16 = arith.constant 0 : index
    %c0_17 = arith.constant 0 : index
    %c0_18 = arith.constant 0 : index
    %21 = vector.load %arg6[%c0_16, %c0_17, %c0_18] : memref<3x256x256xbf16, #tpu.memory_space<vmem>>, vector<1x256x256xbf16>
    %22 = vector.shape_cast %21 : vector<1x256x256xbf16> to vector<256x256xbf16>
    %c0_19 = arith.constant 0 : index
    %c0_20 = arith.constant 0 : index
    %c0_21 = arith.constant 0 : index
    %23 = vector.load %arg7[%c0_19, %c0_20, %c0_21] : memref<3x1x256xf32, #tpu.memory_space<vmem>>, vector<1x1x256xf32>
    %24 = vector.shape_cast %23 : vector<1x1x256xf32> to vector<1x256xf32>
    %25 = arith.truncf %20 : vector<16x256xf32> to vector<16x256xbf16>
    %cst_22 = arith.constant dense<0.000000e+00> : vector<16x256xf32>
    %26 = tpu.matmul %25, %22, %cst_22 {dimension_numbers = #tpu.dot_dimension_numbers<[1], [0], [0], [1], [0, 0, 1, 1], [], []>} : vector<16x256xbf16>, vector<256x256xbf16>, vector<16x256xf32> -> vector<16x256xf32>
    %27 = vector.broadcast %24 : vector<1x256xf32> to vector<16x256xf32>
    %28 = arith.addf %26, %27 : vector<16x256xf32>
    %cst_23 = arith.constant 0.000000e+00 : f32
    %29 = vector.broadcast %cst_23 : f32 to vector<16x256xf32>
    %30 = arith.maximumf %28, %29 : vector<16x256xf32>
    %c0_24 = arith.constant 0 : index
    %c0_25 = arith.constant 0 : index
    %c0_26 = arith.constant 0 : index
    %31 = vector.load %arg8[%c0_24, %c0_25, %c0_26] : memref<3x256x128xbf16, #tpu.memory_space<vmem>>, vector<1x256x128xbf16>
    %32 = vector.shape_cast %31 : vector<1x256x128xbf16> to vector<256x128xbf16>
    %c0_27 = arith.constant 0 : index
    %c0_28 = arith.constant 0 : index
    %c0_29 = arith.constant 0 : index
    %33 = vector.load %arg9[%c0_27, %c0_28, %c0_29] : memref<3x1x128xf32, #tpu.memory_space<vmem>>, vector<1x1x128xf32>
    %34 = vector.shape_cast %33 : vector<1x1x128xf32> to vector<1x128xf32>
    %35 = arith.truncf %30 : vector<16x256xf32> to vector<16x256xbf16>
    %cst_30 = arith.constant dense<0.000000e+00> : vector<16x128xf32>
    %36 = tpu.matmul %35, %32, %cst_30 {dimension_numbers = #tpu.dot_dimension_numbers<[1], [0], [0], [1], [0, 0, 1, 1], [], []>} : vector<16x256xbf16>, vector<256x128xbf16>, vector<16x128xf32> -> vector<16x128xf32>
    %37 = vector.broadcast %34 : vector<1x128xf32> to vector<16x128xf32>
    %38 = arith.addf %36, %37 : vector<16x128xf32>
    %c0_31 = arith.constant 0 : index
    %c0_32 = arith.constant 0 : index
    %c0_33 = arith.constant 0 : index
    %39 = vector.load %arg10[%c0_31, %c0_32, %c0_33] : memref<3x128x128xbf16, #tpu.memory_space<vmem>>, vector<1x128x128xbf16>
    %40 = vector.shape_cast %39 : vector<1x128x128xbf16> to vector<128x128xbf16>
    %c0_34 = arith.constant 0 : index
    %c0_35 = arith.constant 0 : index
    %c0_36 = arith.constant 0 : index
    %41 = vector.load %arg11[%c0_34, %c0_35, %c0_36] : memref<3x1x128xf32, #tpu.memory_space<vmem>>, vector<1x1x128xf32>
    %42 = vector.shape_cast %41 : vector<1x1x128xf32> to vector<1x128xf32>
    %43 = arith.truncf %38 : vector<16x128xf32> to vector<16x128xbf16>
    %cst_37 = arith.constant dense<0.000000e+00> : vector<16x128xf32>
    %44 = tpu.matmul %43, %40, %cst_37 {dimension_numbers = #tpu.dot_dimension_numbers<[1], [0], [0], [1], [0, 0, 1, 1], [], []>} : vector<16x128xbf16>, vector<128x128xbf16>, vector<16x128xf32> -> vector<16x128xf32>
    %45 = vector.broadcast %42 : vector<1x128xf32> to vector<16x128xf32>
    %46 = arith.addf %44, %45 : vector<16x128xf32>
    %c0_38 = arith.constant 0 : index
    %c0_39 = arith.constant 0 : index
    %c0_40 = arith.constant 0 : index
    %47 = vector.load %arg12[%c0_38, %c0_39, %c0_40] : memref<3x128x128xbf16, #tpu.memory_space<vmem>>, vector<1x128x128xbf16>
    %48 = vector.shape_cast %47 : vector<1x128x128xbf16> to vector<128x128xbf16>
    %c0_41 = arith.constant 0 : index
    %c0_42 = arith.constant 0 : index
    %c0_43 = arith.constant 0 : index
    %49 = vector.load %arg13[%c0_41, %c0_42, %c0_43] : memref<3x1x128xf32, #tpu.memory_space<vmem>>, vector<1x1x128xf32>
    %50 = vector.shape_cast %49 : vector<1x1x128xf32> to vector<1x128xf32>
    %51 = arith.truncf %38 : vector<16x128xf32> to vector<16x128xbf16>
    %cst_44 = arith.constant dense<0.000000e+00> : vector<16x128xf32>
    %52 = tpu.matmul %51, %48, %cst_44 {dimension_numbers = #tpu.dot_dimension_numbers<[1], [0], [0], [1], [0, 0, 1, 1], [], []>} : vector<16x128xbf16>, vector<128x128xbf16>, vector<16x128xf32> -> vector<16x128xf32>
    %53 = vector.broadcast %50 : vector<1x128xf32> to vector<16x128xf32>
    %54 = arith.addf %52, %53 : vector<16x128xf32>
    %55 = arith.subf %0, %54 : vector<16x128xf32>
    %c1 = arith.constant 1 : index
    %c0_45 = arith.constant 0 : index
    %c0_46 = arith.constant 0 : index
    %56 = vector.load %arg2[%c1, %c0_45, %c0_46] : memref<3x128x256xbf16, #tpu.memory_space<vmem>>, vector<1x128x256xbf16>
    %57 = vector.shape_cast %56 : vector<1x128x256xbf16> to vector<128x256xbf16>
    %c1_47 = arith.constant 1 : index
    %c0_48 = arith.constant 0 : index
    %c0_49 = arith.constant 0 : index
    %58 = vector.load %arg3[%c1_47, %c0_48, %c0_49] : memref<3x1x256xf32, #tpu.memory_space<vmem>>, vector<1x1x256xf32>
    %59 = vector.shape_cast %58 : vector<1x1x256xf32> to vector<1x256xf32>
    %60 = arith.truncf %55 : vector<16x128xf32> to vector<16x128xbf16>
    %cst_50 = arith.constant dense<0.000000e+00> : vector<16x256xf32>
    %61 = tpu.matmul %60, %57, %cst_50 {dimension_numbers = #tpu.dot_dimension_numbers<[1], [0], [0], [1], [0, 0, 1, 1], [], []>} : vector<16x128xbf16>, vector<128x256xbf16>, vector<16x256xf32> -> vector<16x256xf32>
    %62 = vector.broadcast %59 : vector<1x256xf32> to vector<16x256xf32>
    %63 = arith.addf %61, %62 : vector<16x256xf32>
    %cst_51 = arith.constant 0.000000e+00 : f32
    %64 = vector.broadcast %cst_51 : f32 to vector<16x256xf32>
    %65 = arith.maximumf %63, %64 : vector<16x256xf32>
    %c1_52 = arith.constant 1 : index
    %c0_53 = arith.constant 0 : index
    %c0_54 = arith.constant 0 : index
    %66 = vector.load %arg4[%c1_52, %c0_53, %c0_54] : memref<3x256x256xbf16, #tpu.memory_space<vmem>>, vector<1x256x256xbf16>
    %67 = vector.shape_cast %66 : vector<1x256x256xbf16> to vector<256x256xbf16>
    %c1_55 = arith.constant 1 : index
    %c0_56 = arith.constant 0 : index
    %c0_57 = arith.constant 0 : index
    %68 = vector.load %arg5[%c1_55, %c0_56, %c0_57] : memref<3x1x256xf32, #tpu.memory_space<vmem>>, vector<1x1x256xf32>
    %69 = vector.shape_cast %68 : vector<1x1x256xf32> to vector<1x256xf32>
    %70 = arith.truncf %65 : vector<16x256xf32> to vector<16x256xbf16>
    %cst_58 = arith.constant dense<0.000000e+00> : vector<16x256xf32>
    %71 = tpu.matmul %70, %67, %cst_58 {dimension_numbers = #tpu.dot_dimension_numbers<[1], [0], [0], [1], [0, 0, 1, 1], [], []>} : vector<16x256xbf16>, vector<256x256xbf16>, vector<16x256xf32> -> vector<16x256xf32>
    %72 = vector.broadcast %69 : vector<1x256xf32> to vector<16x256xf32>
    %73 = arith.addf %71, %72 : vector<16x256xf32>
    %cst_59 = arith.constant 0.000000e+00 : f32
    %74 = vector.broadcast %cst_59 : f32 to vector<16x256xf32>
    %75 = arith.maximumf %73, %74 : vector<16x256xf32>
    %c1_60 = arith.constant 1 : index
    %c0_61 = arith.constant 0 : index
    %c0_62 = arith.constant 0 : index
    %76 = vector.load %arg6[%c1_60, %c0_61, %c0_62] : memref<3x256x256xbf16, #tpu.memory_space<vmem>>, vector<1x256x256xbf16>
    %77 = vector.shape_cast %76 : vector<1x256x256xbf16> to vector<256x256xbf16>
    %c1_63 = arith.constant 1 : index
    %c0_64 = arith.constant 0 : index
    %c0_65 = arith.constant 0 : index
    %78 = vector.load %arg7[%c1_63, %c0_64, %c0_65] : memref<3x1x256xf32, #tpu.memory_space<vmem>>, vector<1x1x256xf32>
    %79 = vector.shape_cast %78 : vector<1x1x256xf32> to vector<1x256xf32>
    %80 = arith.truncf %75 : vector<16x256xf32> to vector<16x256xbf16>
    %cst_66 = arith.constant dense<0.000000e+00> : vector<16x256xf32>
    %81 = tpu.matmul %80, %77, %cst_66 {dimension_numbers = #tpu.dot_dimension_numbers<[1], [0], [0], [1], [0, 0, 1, 1], [], []>} : vector<16x256xbf16>, vector<256x256xbf16>, vector<16x256xf32> -> vector<16x256xf32>
    %82 = vector.broadcast %79 : vector<1x256xf32> to vector<16x256xf32>
    %83 = arith.addf %81, %82 : vector<16x256xf32>
    %cst_67 = arith.constant 0.000000e+00 : f32
    %84 = vector.broadcast %cst_67 : f32 to vector<16x256xf32>
    %85 = arith.maximumf %83, %84 : vector<16x256xf32>
    %c1_68 = arith.constant 1 : index
    %c0_69 = arith.constant 0 : index
    %c0_70 = arith.constant 0 : index
    %86 = vector.load %arg8[%c1_68, %c0_69, %c0_70] : memref<3x256x128xbf16, #tpu.memory_space<vmem>>, vector<1x256x128xbf16>
    %87 = vector.shape_cast %86 : vector<1x256x128xbf16> to vector<256x128xbf16>
    %c1_71 = arith.constant 1 : index
    %c0_72 = arith.constant 0 : index
    %c0_73 = arith.constant 0 : index
    %88 = vector.load %arg9[%c1_71, %c0_72, %c0_73] : memref<3x1x128xf32, #tpu.memory_space<vmem>>, vector<1x1x128xf32>
    %89 = vector.shape_cast %88 : vector<1x1x128xf32> to vector<1x128xf32>
    %90 = arith.truncf %85 : vector<16x256xf32> to vector<16x256xbf16>
    %cst_74 = arith.constant dense<0.000000e+00> : vector<16x128xf32>
    %91 = tpu.matmul %90, %87, %cst_74 {dimension_numbers = #tpu.dot_dimension_numbers<[1], [0], [0], [1], [0, 0, 1, 1], [], []>} : vector<16x256xbf16>, vector<256x128xbf16>, vector<16x128xf32> -> vector<16x128xf32>
    %92 = vector.broadcast %89 : vector<1x128xf32> to vector<16x128xf32>
    %93 = arith.addf %91, %92 : vector<16x128xf32>
    %c1_75 = arith.constant 1 : index
    %c0_76 = arith.constant 0 : index
    %c0_77 = arith.constant 0 : index
    %94 = vector.load %arg10[%c1_75, %c0_76, %c0_77] : memref<3x128x128xbf16, #tpu.memory_space<vmem>>, vector<1x128x128xbf16>
    %95 = vector.shape_cast %94 : vector<1x128x128xbf16> to vector<128x128xbf16>
    %c1_78 = arith.constant 1 : index
    %c0_79 = arith.constant 0 : index
    %c0_80 = arith.constant 0 : index
    %96 = vector.load %arg11[%c1_78, %c0_79, %c0_80] : memref<3x1x128xf32, #tpu.memory_space<vmem>>, vector<1x1x128xf32>
    %97 = vector.shape_cast %96 : vector<1x1x128xf32> to vector<1x128xf32>
    %98 = arith.truncf %93 : vector<16x128xf32> to vector<16x128xbf16>
    %cst_81 = arith.constant dense<0.000000e+00> : vector<16x128xf32>
    %99 = tpu.matmul %98, %95, %cst_81 {dimension_numbers = #tpu.dot_dimension_numbers<[1], [0], [0], [1], [0, 0, 1, 1], [], []>} : vector<16x128xbf16>, vector<128x128xbf16>, vector<16x128xf32> -> vector<16x128xf32>
    %100 = vector.broadcast %97 : vector<1x128xf32> to vector<16x128xf32>
    %101 = arith.addf %99, %100 : vector<16x128xf32>
    %c1_82 = arith.constant 1 : index
    %c0_83 = arith.constant 0 : index
    %c0_84 = arith.constant 0 : index
    %102 = vector.load %arg12[%c1_82, %c0_83, %c0_84] : memref<3x128x128xbf16, #tpu.memory_space<vmem>>, vector<1x128x128xbf16>
    %103 = vector.shape_cast %102 : vector<1x128x128xbf16> to vector<128x128xbf16>
    %c1_85 = arith.constant 1 : index
    %c0_86 = arith.constant 0 : index
    %c0_87 = arith.constant 0 : index
    %104 = vector.load %arg13[%c1_85, %c0_86, %c0_87] : memref<3x1x128xf32, #tpu.memory_space<vmem>>, vector<1x1x128xf32>
    %105 = vector.shape_cast %104 : vector<1x1x128xf32> to vector<1x128xf32>
    %106 = arith.truncf %93 : vector<16x128xf32> to vector<16x128xbf16>
    %cst_88 = arith.constant dense<0.000000e+00> : vector<16x128xf32>
    %107 = tpu.matmul %106, %103, %cst_88 {dimension_numbers = #tpu.dot_dimension_numbers<[1], [0], [0], [1], [0, 0, 1, 1], [], []>} : vector<16x128xbf16>, vector<128x128xbf16>, vector<16x128xf32> -> vector<16x128xf32>
    %108 = vector.broadcast %105 : vector<1x128xf32> to vector<16x128xf32>
    %109 = arith.addf %107, %108 : vector<16x128xf32>
    %110 = arith.addf %46, %101 : vector<16x128xf32>
    %111 = arith.addf %54, %109 : vector<16x128xf32>
    %112 = arith.subf %55, %109 : vector<16x128xf32>
    %c2 = arith.constant 2 : index
    %c0_89 = arith.constant 0 : index
    %c0_90 = arith.constant 0 : index
    %113 = vector.load %arg2[%c2, %c0_89, %c0_90] : memref<3x128x256xbf16, #tpu.memory_space<vmem>>, vector<1x128x256xbf16>
    %114 = vector.shape_cast %113 : vector<1x128x256xbf16> to vector<128x256xbf16>
    %c2_91 = arith.constant 2 : index
    %c0_92 = arith.constant 0 : index
    %c0_93 = arith.constant 0 : index
    %115 = vector.load %arg3[%c2_91, %c0_92, %c0_93] : memref<3x1x256xf32, #tpu.memory_space<vmem>>, vector<1x1x256xf32>
    %116 = vector.shape_cast %115 : vector<1x1x256xf32> to vector<1x256xf32>
    %117 = arith.truncf %112 : vector<16x128xf32> to vector<16x128xbf16>
    %cst_94 = arith.constant dense<0.000000e+00> : vector<16x256xf32>
    %118 = tpu.matmul %117, %114, %cst_94 {dimension_numbers = #tpu.dot_dimension_numbers<[1], [0], [0], [1], [0, 0, 1, 1], [], []>} : vector<16x128xbf16>, vector<128x256xbf16>, vector<16x256xf32> -> vector<16x256xf32>
    %119 = vector.broadcast %116 : vector<1x256xf32> to vector<16x256xf32>
    %120 = arith.addf %118, %119 : vector<16x256xf32>
    %cst_95 = arith.constant 0.000000e+00 : f32
    %121 = vector.broadcast %cst_95 : f32 to vector<16x256xf32>
    %122 = arith.maximumf %120, %121 : vector<16x256xf32>
    %c2_96 = arith.constant 2 : index
    %c0_97 = arith.constant 0 : index
    %c0_98 = arith.constant 0 : index
    %123 = vector.load %arg4[%c2_96, %c0_97, %c0_98] : memref<3x256x256xbf16, #tpu.memory_space<vmem>>, vector<1x256x256xbf16>
    %124 = vector.shape_cast %123 : vector<1x256x256xbf16> to vector<256x256xbf16>
    %c2_99 = arith.constant 2 : index
    %c0_100 = arith.constant 0 : index
    %c0_101 = arith.constant 0 : index
    %125 = vector.load %arg5[%c2_99, %c0_100, %c0_101] : memref<3x1x256xf32, #tpu.memory_space<vmem>>, vector<1x1x256xf32>
    %126 = vector.shape_cast %125 : vector<1x1x256xf32> to vector<1x256xf32>
    %127 = arith.truncf %122 : vector<16x256xf32> to vector<16x256xbf16>
    %cst_102 = arith.constant dense<0.000000e+00> : vector<16x256xf32>
    %128 = tpu.matmul %127, %124, %cst_102 {dimension_numbers = #tpu.dot_dimension_numbers<[1], [0], [0], [1], [0, 0, 1, 1], [], []>} : vector<16x256xbf16>, vector<256x256xbf16>, vector<16x256xf32> -> vector<16x256xf32>
    %129 = vector.broadcast %126 : vector<1x256xf32> to vector<16x256xf32>
    %130 = arith.addf %128, %129 : vector<16x256xf32>
    %cst_103 = arith.constant 0.000000e+00 : f32
    %131 = vector.broadcast %cst_103 : f32 to vector<16x256xf32>
    %132 = arith.maximumf %130, %131 : vector<16x256xf32>
    %c2_104 = arith.constant 2 : index
    %c0_105 = arith.constant 0 : index
    %c0_106 = arith.constant 0 : index
    %133 = vector.load %arg6[%c2_104, %c0_105, %c0_106] : memref<3x256x256xbf16, #tpu.memory_space<vmem>>, vector<1x256x256xbf16>
    %134 = vector.shape_cast %133 : vector<1x256x256xbf16> to vector<256x256xbf16>
    %c2_107 = arith.constant 2 : index
    %c0_108 = arith.constant 0 : index
    %c0_109 = arith.constant 0 : index
    %135 = vector.load %arg7[%c2_107, %c0_108, %c0_109] : memref<3x1x256xf32, #tpu.memory_space<vmem>>, vector<1x1x256xf32>
    %136 = vector.shape_cast %135 : vector<1x1x256xf32> to vector<1x256xf32>
    %137 = arith.truncf %132 : vector<16x256xf32> to vector<16x256xbf16>
    %cst_110 = arith.constant dense<0.000000e+00> : vector<16x256xf32>
    %138 = tpu.matmul %137, %134, %cst_110 {dimension_numbers = #tpu.dot_dimension_numbers<[1], [0], [0], [1], [0, 0, 1, 1], [], []>} : vector<16x256xbf16>, vector<256x256xbf16>, vector<16x256xf32> -> vector<16x256xf32>
    %139 = vector.broadcast %136 : vector<1x256xf32> to vector<16x256xf32>
    %140 = arith.addf %138, %139 : vector<16x256xf32>
    %cst_111 = arith.constant 0.000000e+00 : f32
    %141 = vector.broadcast %cst_111 : f32 to vector<16x256xf32>
    %142 = arith.maximumf %140, %141 : vector<16x256xf32>
    %c2_112 = arith.constant 2 : index
    %c0_113 = arith.constant 0 : index
    %c0_114 = arith.constant 0 : index
    %143 = vector.load %arg8[%c2_112, %c0_113, %c0_114] : memref<3x256x128xbf16, #tpu.memory_space<vmem>>, vector<1x256x128xbf16>
    %144 = vector.shape_cast %143 : vector<1x256x128xbf16> to vector<256x128xbf16>
    %c2_115 = arith.constant 2 : index
    %c0_116 = arith.constant 0 : index
    %c0_117 = arith.constant 0 : index
    %145 = vector.load %arg9[%c2_115, %c0_116, %c0_117] : memref<3x1x128xf32, #tpu.memory_space<vmem>>, vector<1x1x128xf32>
    %146 = vector.shape_cast %145 : vector<1x1x128xf32> to vector<1x128xf32>
    %147 = arith.truncf %142 : vector<16x256xf32> to vector<16x256xbf16>
    %cst_118 = arith.constant dense<0.000000e+00> : vector<16x128xf32>
    %148 = tpu.matmul %147, %144, %cst_118 {dimension_numbers = #tpu.dot_dimension_numbers<[1], [0], [0], [1], [0, 0, 1, 1], [], []>} : vector<16x256xbf16>, vector<256x128xbf16>, vector<16x128xf32> -> vector<16x128xf32>
    %149 = vector.broadcast %146 : vector<1x128xf32> to vector<16x128xf32>
    %150 = arith.addf %148, %149 : vector<16x128xf32>
    %c2_119 = arith.constant 2 : index
    %c0_120 = arith.constant 0 : index
    %c0_121 = arith.constant 0 : index
    %151 = vector.load %arg10[%c2_119, %c0_120, %c0_121] : memref<3x128x128xbf16, #tpu.memory_space<vmem>>, vector<1x128x128xbf16>
    %152 = vector.shape_cast %151 : vector<1x128x128xbf16> to vector<128x128xbf16>
    %c2_122 = arith.constant 2 : index
    %c0_123 = arith.constant 0 : index
    %c0_124 = arith.constant 0 : index
    %153 = vector.load %arg11[%c2_122, %c0_123, %c0_124] : memref<3x1x128xf32, #tpu.memory_space<vmem>>, vector<1x1x128xf32>
    %154 = vector.shape_cast %153 : vector<1x1x128xf32> to vector<1x128xf32>
    %155 = arith.truncf %150 : vector<16x128xf32> to vector<16x128xbf16>
    %cst_125 = arith.constant dense<0.000000e+00> : vector<16x128xf32>
    %156 = tpu.matmul %155, %152, %cst_125 {dimension_numbers = #tpu.dot_dimension_numbers<[1], [0], [0], [1], [0, 0, 1, 1], [], []>} : vector<16x128xbf16>, vector<128x128xbf16>, vector<16x128xf32> -> vector<16x128xf32>
    %157 = vector.broadcast %154 : vector<1x128xf32> to vector<16x128xf32>
    %158 = arith.addf %156, %157 : vector<16x128xf32>
    %c2_126 = arith.constant 2 : index
    %c0_127 = arith.constant 0 : index
    %c0_128 = arith.constant 0 : index
    %159 = vector.load %arg12[%c2_126, %c0_127, %c0_128] : memref<3x128x128xbf16, #tpu.memory_space<vmem>>, vector<1x128x128xbf16>
    %160 = vector.shape_cast %159 : vector<1x128x128xbf16> to vector<128x128xbf16>
    %c2_129 = arith.constant 2 : index
    %c0_130 = arith.constant 0 : index
    %c0_131 = arith.constant 0 : index
    %161 = vector.load %arg13[%c2_129, %c0_130, %c0_131] : memref<3x1x128xf32, #tpu.memory_space<vmem>>, vector<1x1x128xf32>
    %162 = vector.shape_cast %161 : vector<1x1x128xf32> to vector<1x128xf32>
    %163 = arith.truncf %150 : vector<16x128xf32> to vector<16x128xbf16>
    %cst_132 = arith.constant dense<0.000000e+00> : vector<16x128xf32>
    %164 = tpu.matmul %163, %160, %cst_132 {dimension_numbers = #tpu.dot_dimension_numbers<[1], [0], [0], [1], [0, 0, 1, 1], [], []>} : vector<16x128xbf16>, vector<128x128xbf16>, vector<16x128xf32> -> vector<16x128xf32>
    %165 = vector.broadcast %162 : vector<1x128xf32> to vector<16x128xf32>
    %166 = arith.addf %164, %165 : vector<16x128xf32>
    %167 = arith.addf %110, %158 : vector<16x128xf32>
    %168 = arith.addf %111, %166 : vector<16x128xf32>
    %169 = arith.subf %112, %166 : vector<16x128xf32>
    %c0_133 = arith.constant 0 : index
    %c0_134 = arith.constant 0 : index
    %170 = vector.load %arg14[%c0_133, %c0_134] : memref<16x128xf32, #tpu.memory_space<vmem>>, vector<16x128xf32>
    tpu.vector_store %arg14[%c0_133, %c0_134], %167 {strides = array<i32>} : memref<16x128xf32, #tpu.memory_space<vmem>>, vector<16x128xf32>,
    %c0_135 = arith.constant 0 : index
    %c0_136 = arith.constant 0 : index
    %171 = vector.load %arg15[%c0_135, %c0_136] : memref<16x128xf32, #tpu.memory_space<vmem>>, vector<16x128xf32>
    tpu.vector_store %arg15[%c0_135, %c0_136], %168 {strides = array<i32>} : memref<16x128xf32, #tpu.memory_space<vmem>>, vector<16x128xf32>,
    %c0_137 = arith.constant 0 : index
    %c0_138 = arith.constant 0 : index
    %172 = vector.load %arg16[%c0_137, %c0_138] : memref<16x128xf32, #tpu.memory_space<vmem>>, vector<16x128xf32>
    tpu.vector_store %arg16[%c0_137, %c0_138], %169 {strides = array<i32>} : memref<16x128xf32, #tpu.memory_space<vmem>>, vector<16x128xf32>,
    return
  }
  func.func @transform_0(%arg0: i32) -> (i32, i32) {
    %c0_i32 = arith.constant 0 : i32
    %c0_i32_0 = arith.constant 0 : i32
    return %arg0, %c0_i32 : i32, i32
  }
  func.func @transform_1(%arg0: i32) -> (i32, i32, i32) {
    %c0_i32 = arith.constant 0 : i32
    %c0_i32_0 = arith.constant 0 : i32
    %c0_i32_1 = arith.constant 0 : i32
    %c0_i32_2 = arith.constant 0 : i32
    return %c0_i32, %c0_i32_0, %c0_i32_1 : i32, i32, i32
  }
  func.func @transform_2(%arg0: i32) -> (i32, i32, i32) {
    %c0_i32 = arith.constant 0 : i32
    %c0_i32_0 = arith.constant 0 : i32
    %c0_i32_1 = arith.constant 0 : i32
    %c0_i32_2 = arith.constant 0 : i32
    return %c0_i32, %c0_i32_0, %c0_i32_1 : i32, i32, i32
  }
  func.func @transform_3(%arg0: i32) -> (i32, i32, i32) {
    %c0_i32 = arith.constant 0 : i32
    %c0_i32_0 = arith.constant 0 : i32
    %c0_i32_1 = arith.constant 0 : i32
    %c0_i32_2 = arith.constant 0 : i32
    return %c0_i32, %c0_i32_0, %c0_i32_1 : i32, i32, i32
  }
  func.func @transform_4(%arg0: i32) -> (i32, i32, i32) {
    %c0_i32 = arith.constant 0 : i32
    %c0_i32_0 = arith.constant 0 : i32
    %c0_i32_1 = arith.constant 0 : i32
    %c0_i32_2 = arith.constant 0 : i32
    return %c0_i32, %c0_i32_0, %c0_i32_1 : i32, i32, i32
  }
  func.func @transform_5(%arg0: i32) -> (i32, i32, i32) {
    %c0_i32 = arith.constant 0 : i32
    %c0_i32_0 = arith.constant 0 : i32
    %c0_i32_1 = arith.constant 0 : i32
    %c0_i32_2 = arith.constant 0 : i32
    return %c0_i32, %c0_i32_0, %c0_i32_1 : i32, i32, i32
  }
  func.func @transform_6(%arg0: i32) -> (i32, i32, i32) {
    %c0_i32 = arith.constant 0 : i32
    %c0_i32_0 = arith.constant 0 : i32
    %c0_i32_1 = arith.constant 0 : i32
    %c0_i32_2 = arith.constant 0 : i32
    return %c0_i32, %c0_i32_0, %c0_i32_1 : i32, i32, i32
  }
  func.func @transform_7(%arg0: i32) -> (i32, i32, i32) {
    %c0_i32 = arith.constant 0 : i32
    %c0_i32_0 = arith.constant 0 : i32
    %c0_i32_1 = arith.constant 0 : i32
    %c0_i32_2 = arith.constant 0 : i32
    return %c0_i32, %c0_i32_0, %c0_i32_1 : i32, i32, i32
  }
  func.func @transform_8(%arg0: i32) -> (i32, i32, i32) {
    %c0_i32 = arith.constant 0 : i32
    %c0_i32_0 = arith.constant 0 : i32
    %c0_i32_1 = arith.constant 0 : i32
    %c0_i32_2 = arith.constant 0 : i32
    return %c0_i32, %c0_i32_0, %c0_i32_1 : i32, i32, i32
  }
  func.func @transform_9(%arg0: i32) -> (i32, i32, i32) {
    %c0_i32 = arith.constant 0 : i32
    %c0_i32_0 = arith.constant 0 : i32
    %c0_i32_1 = arith.constant 0 : i32
    %c0_i32_2 = arith.constant 0 : i32
    return %c0_i32, %c0_i32_0, %c0_i32_1 : i32, i32, i32
  }
  func.func @transform_10(%arg0: i32) -> (i32, i32, i32) {
    %c0_i32 = arith.constant 0 : i32
    %c0_i32_0 = arith.constant 0 : i32
    %c0_i32_1 = arith.constant 0 : i32
    %c0_i32_2 = arith.constant 0 : i32
    return %c0_i32, %c0_i32_0, %c0_i32_1 : i32, i32, i32
  }
  func.func @transform_11(%arg0: i32) -> (i32, i32, i32) {
    %c0_i32 = arith.constant 0 : i32
    %c0_i32_0 = arith.constant 0 : i32
    %c0_i32_1 = arith.constant 0 : i32
    %c0_i32_2 = arith.constant 0 : i32
    return %c0_i32, %c0_i32_0, %c0_i32_1 : i32, i32, i32
  }
  func.func @transform_12(%arg0: i32) -> (i32, i32, i32) {
    %c0_i32 = arith.constant 0 : i32
    %c0_i32_0 = arith.constant 0 : i32
    %c0_i32_1 = arith.constant 0 : i32
    %c0_i32_2 = arith.constant 0 : i32
    return %c0_i32, %c0_i32_0, %c0_i32_1 : i32, i32, i32
  }
  func.func @transform_13(%arg0: i32) -> (i32, i32) {
    %c0_i32 = arith.constant 0 : i32
    %c0_i32_0 = arith.constant 0 : i32
    return %arg0, %c0_i32 : i32, i32
  }
  func.func @transform_14(%arg0: i32) -> (i32, i32) {
    %c0_i32 = arith.constant 0 : i32
    %c0_i32_0 = arith.constant 0 : i32
    return %arg0, %c0_i32 : i32, i32
  }
  func.func @transform_15(%arg0: i32) -> (i32, i32) {
    %c0_i32 = arith.constant 0 : i32
    %c0_i32_0 = arith.constant 0 : i32
    return %arg0, %c0_i32 : i32, i32
  }
}

</mosaic_0001>

<bundles_post_ra>
// kernel: tpu_custom_call.1
= control target key start
LH: loop header
LB: loop body
LE: loop exit
PB: predicated region body
PF: predicated region fallthrough
CT: control target
= control target key end

     0   :  { %s6786_s0 = inlined_call_operand.hbm [shape: f32[32,128], index: 0, kind: input, shape index: {}]   ;;  %s6787_s1 = inlined_call_operand.hbm [shape: bf16[3,128,256], index: 1, kind: input, shape index: {}]   ;;  %s6788_s2 = inlined_call_operand.hbm [shape: f32[3,1,256], index: 2, kind: input, shape index: {}]   ;;  %s6789_s3 = inlined_call_operand.hbm [shape: bf16[3,256,256], index: 3, kind: input, shape index: {}]   ;;  %s6790_s4 = inlined_call_operand.hbm [shape: f32[3,1,256], index: 4, kind: input, shape index: {}]   ;;  %s6791_s5 = inlined_call_operand.hbm [shape: bf16[3,256,256], index: 5, kind: input, shape index: {}]   ;;  %s6792_s6 = inlined_call_operand.hbm [shape: f32[3,1,256], index: 6, kind: input, shape index: {}]   ;;  %s6793_s7 = inlined_call_operand.hbm [shape: bf16[3,256,128], index: 7, kind: input, shape index: {}]   ;;  %s6794_s8 = inlined_call_operand.vmem [shape: f32[3,1,128], index: 8, kind: input, shape index: {}]   ;;  %s6795_s9 = inlined_call_operand.hbm [shape: bf16[3,128,128], index: 9, kind: input, shape index: {}]   ;;  %s6796_s10 = inlined_call_operand.vmem [shape: f32[3,1,128], index: 10, kind: input, shape index: {}]   ;;  %s6797_s11 = inlined_call_operand.hbm [shape: bf16[3,128,128], index: 11, kind: input, shape index: {}]   ;;  %s6798_s12 = inlined_call_operand.vmem [shape: f32[3,1,128], index: 12, kind: input, shape index: {}]   ;;  %s6799_s13 = inlined_call_operand.hbm [shape: f32[32,128], index: 13, kind: output, shape index: {0}]   ;;  %s6800_s14 = inlined_call_operand.hbm [shape: f32[32,128], index: 14, kind: output, shape index: {1}]   ;;  %s6801_s15 = inlined_call_operand.hbm [shape: f32[32,128], index: 15, kind: output, shape index: {2}]  }
   0x1   :  { %6812 = sst [smem:[#allocation31_spill]] %s6786_s0 }
   0x2   :  { %6813 = sst [smem:[#allocation32_spill]] %s6787_s1 }
   0x3   :  { %6814 = sst [smem:[#allocation33_spill]] %s6788_s2 }
   0x4   :  { %6815 = sst [smem:[#allocation34_spill]] %s6789_s3 }
   0x5   :  { %6816 = sst [smem:[#allocation35_spill]] %s6790_s4 }
   0x6   :  { %6817 = sst [smem:[#allocation36_spill]] %s6791_s5 }
   0x7   :  { %6818 = sst [smem:[#allocation37_spill]] %s6792_s6 }
   0x8   :  { %6819 = sst [smem:[#allocation38_spill]] %s6793_s7 }
   0x9   :  { %6820 = sst [smem:[#allocation39_spill]] %s6794_s8 }
   0xa   :  { %6821 = sst [smem:[#allocation40_spill]] %s6795_s9 }
   0xb   :  { %6822 = sst [smem:[#allocation41_spill]] %s6796_s10 }
   0xc   :  { %6823 = sst [smem:[#allocation42_spill]] %s6799_s13 }
   0xd   :  { %6824 = sst [smem:[#allocation43_spill]] %s6800_s14 }
   0xe   :  { %6825 = sst [smem:[#allocation44_spill]] %s6801_s15 }
   0xf   :  { %21 = vsyncpa [#allocation3], 0 }
  0x10   :  { %23 = vsyncpa [#allocation3 + $0x1], 0 }
  0x11   :  { %24 = vsyncpa [#allocation6], 0 }
  0x12   :  { %25 = vsyncpa [#allocation9], 0 }
  0x13   :  { %26 = vsyncpa [#allocation12], 0 }
  0x14   :  { %27 = vsyncpa [#allocation15], 0 }
  0x15   :  { %28 = vsyncpa [#allocation18], 0 }
  0x16   :  { %29 = vsyncpa [#allocation4], 0 }
  0x17   :  { %31 = vsyncpa [#allocation4 + $0x1], 0 }
  0x18   :  { %32 = vsyncpa [#allocation21], 0 }
  0x19   :  { %34 = vsyncpa [#allocation21 + $0x1], 0  ;;  %s6401_s18 = smov 0   ;;  %s6403_s19 = smov 0  }
  0x1a   :  { %s6405_s20 = smov 0   ;;  %s6407_s21 = smov 0  }
  0x1b LB: > { %s6826_s1 = sld [smem:[#allocation32_spill]]  ;;  %s6425_s25 = sadd.s32 4294967295, %s6302_s21   ;;  %s6302_s21 = sphi %s6407_s21, %s6855_s21   ;;  %s6298_s20 = sphi %s6405_s20, %s6854_s20   ;;  %s6294_s19 = sphi %s6403_s19, %s6853_s19   ;;  %s6290_s18 = sphi %s6401_s18, %s6852_s18  }
  0x1c   : > { %p3961_p0 = scmp.ge.s32.totalorder %s6302_s21, 1  ;;  %p61_p1 = scmp.eq.s32.totalorder %s6425_s25, 0 }
  0x1d   : > { %p401_p2 = scmp.lt.s32.totalorder %s6302_s21, 3  ;;  %s6304_s27 = smov [#allocation5]  }
  0x1e   : > { %s414_s28 = sshll.u32 %s6304_s27, 4  ;;  %s6828_s3 = sld [smem:[#allocation34_spill]]  ;;  %s415_s28 = int_to_ptr.vmem [resolvable:$true] %s414_s28 }
  0x1f   : > { %p6430_p3 = pnand %p3961_p0, %p401_p2  ;;  %s6830_s5 = sld [smem:[#allocation36_spill]] }
  0x20   : > { %s6805_s13 = smov 128   ;;  %s6806_s14 = smov 8  }
  0x21   : > { %s412_s24 = sshll.u32 %s6826_s1, 4  ;;  %p5734_p4 = pneg %p6430_p3  ;;  %s413_s24 = int_to_ptr.hbm [resolvable:$true] %s412_s24 }
  0x22   : > { %s6305_s1 = smov [#allocation8]   ;;  %s6831_s7 = sld [smem:[#allocation38_spill]] }
  0x23   : > { %p6442_p6 = pnand %p5734_p4, %p61_p1  ;;  %s442_s15 = sshll.u32 %s6305_s1, 4  ;;  %s443_s15 = int_to_ptr.vmem [resolvable:$true] %s442_s15 }
  0x24   : > { %s440_s16 = sshll.u32 %s6828_s3, 4  ;;  %s6308_s1 = smov [#allocation11]   ;;  %s441_s16 = int_to_ptr.hbm [resolvable:$true] %s440_s16 }
  0x25   : > { %s468_s27 = sshll.u32 %s6830_s5, 4  ;;  %s470_s23 = sshll.u32 %s6308_s1, 4  ;;  %s469_s27 = int_to_ptr.hbm [resolvable:$true] %s468_s27  ;;  %s471_s23 = int_to_ptr.vmem [resolvable:$true] %s470_s23 }
  0x26   : > { %5737 = dma.hbm_to_vmem [thread:$0]  (!%p6442_p6), %s413_s24, 6144, %s415_s28, [#allocation6], %s6805_s13, %s6805_s13, %s6806_s14  }
  0x27   : > { %5743 = dma.hbm_to_vmem [thread:$0]  (!%p6442_p6), %s441_s16, 12288, %s443_s15, [#allocation9], %s6805_s13, %s6805_s13, %s6806_s14  }
  0x28   : > { %s496_s22 = sshll.u32 %s6831_s7, 4  ;;  %s6309_s24 = smov [#allocation14]   ;;  %s497_s22 = int_to_ptr.hbm [resolvable:$true] %s496_s22 }
  0x29   : > { %5749 = dma.hbm_to_vmem [thread:$0]  (!%p6442_p6), %s469_s27, 12288, %s471_s23, [#allocation12], %s6805_s13, %s6805_s13, %s6806_s14  }
  0x2a   : > { %s498_s28 = sshll.u32 %s6309_s24, 4  ;;  %s6807_s3 = smov 64   ;;  %s499_s28 = int_to_ptr.vmem [resolvable:$true] %s498_s28 }
  0x2b   : > { %s6809_s5 = smov 4   ;;  %s6832_s2 = sld [smem:[#allocation33_spill]] }
  0x2c   : > { %5755 = dma.hbm_to_vmem [thread:$0]  (!%p6442_p6), %s497_s22, 6144, %s499_s28, [#allocation15], %s6807_s3, %s6807_s3, %s6809_s5  }
  0x2d   : > { %s6312_s30 = smov [#allocation7]   ;;  %s6833_s4 = sld [smem:[#allocation35_spill]] }
  0x2e   : > { %s428_s1 = sshll.u32 %s6312_s30, 4  ;;  %s6313_s13 = smov 32   ;;  %s429_s1 = int_to_ptr.vmem [resolvable:$true] %s428_s1 }
  0x2f   : > { %s6314_s14 = smov 2   ;;  %s6315_s22 = smov [#allocation10]  }
  0x30   : > { %s456_s28 = sshll.u32 %s6315_s22, 4  ;;  %s6834_s6 = sld [smem:[#allocation37_spill]]  ;;  %s457_s28 = int_to_ptr.vmem [resolvable:$true] %s456_s28 }
  0x31   : > { %s426_s29 = sshll.u32 %s6832_s2, 4  ;;  %s6835_s9 = sld [smem:[#allocation40_spill]]  ;;  %s427_s29 = int_to_ptr.hbm [resolvable:$true] %s426_s29 }
  0x32   : > { %5740 = dma.hbm_to_vmem [thread:$0]  (!%p6442_p6), %s427_s29, 96, %s429_s1, [#allocation6], %s6313_s13, %s6313_s13, %s6314_s14  }
  0x33   : > { %s454_s24 = sshll.u32 %s6833_s4, 4  ;;  %s6316_s5 = smov [#allocation13]   ;;  %s455_s24 = int_to_ptr.hbm [resolvable:$true] %s454_s24 }
  0x34   : > { %5746 = dma.hbm_to_vmem [thread:$0]  (!%p6442_p6), %s455_s24, 96, %s457_s28, [#allocation9], %s6313_s13, %s6313_s13, %s6314_s14  }
  0x35   : > { %s484_s29 = sshll.u32 %s6316_s5, 4  ;;  %s6317_s3 = smov [#allocation16]   ;;  %s485_s29 = int_to_ptr.vmem [resolvable:$true] %s484_s29 }
  0x36   : > { %s482_s16 = sshll.u32 %s6834_s6, 4  ;;  %s515_s1 = sshll.u32 %s6317_s3, 4  ;;  %s483_s16 = int_to_ptr.hbm [resolvable:$true] %s482_s16  ;;  %s516_s1 = int_to_ptr.vmem [resolvable:$true] %s515_s1 }
  0x37   : > { %s513_s23 = sshll.u32 %s6835_s9, 4  ;;  %s530_s28 = sshll.u32 %s6797_s11, 4  ;;  %s514_s23 = int_to_ptr.hbm [resolvable:$true] %s513_s23  ;;  %s531_s28 = int_to_ptr.hbm [resolvable:$true] %s530_s28 }
  0x38   : > { %5752 = dma.hbm_to_vmem [thread:$0]  (!%p6442_p6), %s483_s16, 96, %s485_s29, [#allocation12], %s6313_s13, %s6313_s13, %s6314_s14  }
  0x39   : > { %s6836_s5 = smov 4   ;;  %s6837_s15 = smov 64  }
  0x3a   : > { %5758 = dma.hbm_to_vmem [thread:$0]  (!%p6442_p6), %s514_s23, 3072, %s516_s1, [#allocation15], %s6837_s15, %s6837_s15, %s6836_s5  }
  0x3b   : > { %s6318_s13 = smov [#allocation17]   ;;  %s6811_s16 = sadd.s32 4294967294, %s6302_s21  }
  0x3c   : > { %s532_s14 = sshll.u32 %s6318_s13, 4  ;;  %s6505_s30 = sadd.s32 1, %s6302_s21   ;;  %s533_s14 = int_to_ptr.vmem [resolvable:$true] %s532_s14 }
  0x3d   : > { %5761 = dma.hbm_to_vmem [thread:$0]  (!%p6442_p6), %s531_s28, 3072, %s533_s14, [#allocation18], %s6837_s15, %s6837_s15, %s6836_s5  }
  0x3e   : > { %s47_s27 = sadd.s32 1, %s6298_s20  ;;  %s44_s29 = ssub.s32 %s6302_s21, %s6505_s30 }
  0x3f   : > { %p54_p7 = scmp.ne.s32.totalorder %s6298_s20, %s6294_s19  ;;  %p45_p8 = scmp.eq.s32.totalorder %s44_s29, 0 }
  0x40   : > { %p55_p9 = scmp.eq.s32.totalorder %s6302_s21, 0  ;;  %p60_p10 = scmp.ne.s32.totalorder %s6294_s19, %s6290_s18 }
  0x41   : > { %p336_p11 = scmp.eq.s32.totalorder %s6425_s25, 1  ;;  %p342_p0 = scmp.eq.s32.totalorder %s6811_s16, 1 }
  0x42   : > { %s6517_s23 = scalar_select %p45_p8, %s6298_s20, %s47_s27  }
  0x43   : > { %p6521_p12 = por %p61_p1, %p60_p10  ;;  %p6525_p13 = por %p336_p11, %p54_p7 }
  0x44   : > { %p56_p2 = por %p55_p9, %p54_p7  ;;  %s549_s1 = sand.u32 1, %s6298_s20  }
  0x45   : > { %p6532_p4 = por %p342_p0, %p60_p10  ;;  %p5785_p6 = scmp.lt.s32.totalorder %s6302_s21, 2 }
  0x46   : > { %s3972_s22 = sshll.u32 %s549_s1, 4  ;;  %s5350_s28 = sshll.u32 %s6302_s21, 4 }
  0x47   : > { %s6841_s0 = sld [smem:[#allocation31_spill]]  ;;  %s553_s27 = scalar_lea.vmem [#allocation2], %s3972_s22 }
  0x48   : > { %s561_s29 = sshll.u32 %s553_s27, 4  ;;  %p6541_p8 = pnand %p5785_p6, %p56_p2  ;;  %s562_s29 = int_to_ptr.vmem [resolvable:$true] %s561_s29 }
  0x49   : > { %s550_s2 = scalar_lea.sflag [#allocation3], %s549_s1 }
  0x4a   : > { %p6130_p9 = pneg %p6541_p8 }
  0x4d   : > { %s558_s13 = scalar_lea.hbm %s6841_s0, %s5350_s28  ;;  %s6133_s22 = scalar_lea.hbm %s6841_s0, 32 }
  0x4e   : > { %s559_s14 = sshll.u32 %s558_s13, 4  ;;  %s560_s14 = int_to_ptr.hbm [resolvable:$true] %s559_s14 }
  0x4f   : > { %s6126_s4 = sshra.s32 %s560_s14, 4  ;;  %s6127_s4 = int_to_ptr.hbm [resolvable:$true] %s6126_s4 }
  0x50   : > { %s6128_s6 = scalar_lea.hbm %s6127_s4, 16  ;;  %p6134_p0 = scmp.lt.s32.totalorder %s6127_s4, %s6841_s0 }
  0x51   : > { %p6129_p7 = scmp.ne.s32.totalorder %s6127_s4, %s6128_s6  ;;  %p6135_p2 = scmp.lt.s32.totalorder %s6133_s22, %s6128_s6 }
  0x53   : > { %p6131_p10 = pnand %p6130_p9, %p6129_p7  ;;  %p6136_p6 = por %p6135_p2, %p6134_p0 }
  0x55   : > { %p6132_p11 = pneg %p6131_p10 }
  0x57   : > { %p6137_p5 = pnand %p6136_p6, %p6132_p11 }
  0x59   : > { %6140 = shalt.err (!%p6137_p5)
}
  0x5a   : > { %s6843_s1 = smov 8   ;;  %s6844_s27 = smov 128  }
  0x5b   : > { %5765 = dma.hbm_to_vmem [thread:$0]  (!%p6541_p8), %s560_s14, 256, %s562_s29, %s550_s2, %s6844_s27, %s6844_s27, %s6843_s1  }
  0x5c   : > { %573 = sbr.rel (%p6430_p3) target bundleno = 2343 (0x927), region = 72  ;;  %s6561_s28 = sand.u32 (!%p6430_p3), 1, %s6294_s19  }
  0x5d   : > { %s6564_s4 = sshll.u32 (!%p6430_p3), %s6561_s28, 4  ;;  %s576_s6 = scalar_lea.sflag (!%p6430_p3), [#allocation3], %s6561_s28 }
  0x5e   : > { %s6568_s5 = scalar_lea.vmem (!%p6430_p3), [#allocation2], %s6564_s4 }
  0x61   : > { %6257 = dma.done.wait (%p6521_p12), %s576_s6, 256  }
  0x62   : > { %6259 = vsyncadd (%p6521_p12), %s576_s6, 4294967040 }
  0x63   : > { %6261 = dma.done.wait (%p61_p1), [#allocation6], 6240  }
  0x64   : > { %6263 = vsyncadd (%p61_p1), [#allocation6], 4294961056 }
  0x65   : > { %6265 = dma.done.wait (%p61_p1), [#allocation9], 12384  }
  0x66   : > { %6267 = vsyncadd (%p61_p1), [#allocation9], 4294954912 }
  0x67   : > { %6269 = dma.done.wait (%p61_p1), [#allocation12], 12384  }
  0x68   : > { %6271 = vsyncadd (%p61_p1), [#allocation12], 4294954912 }
  0x69   : > { %6273 = dma.done.wait (%p61_p1), [#allocation15], 9216  }
  0x6a   : > { %6275 = vsyncadd (%p61_p1), [#allocation15], 4294958080 }
  0x6b   : > { %6277 = dma.done.wait (%p61_p1), [#allocation18], 3072  }
  0x6c   : > { %6279 = vsyncadd (%p61_p1), [#allocation18], 4294964224  ;;  %v4047_v0 = vld [vmem:[#allocation5 + $0x70] sm:$0xf]  ;;  %v5366_v1 = vld [vmem:[#allocation5 + $0x74] sm:$0xf0] }
  0x6d   : > { %v5365_v2 = vld [vmem:[#allocation5 + $0x74] sm:$0xf]  ;;  %v4048_v3 = vor.u32 %v5366_v1, %v4047_v0  ;;  %v4049_v4 = vld [vmem:[#allocation5 + $0x78] sm:$0xf0]  ;;  %v4039_v5 = vld [vmem:[#allocation5 + $0x60] sm:$0xf] }
  0x6e   : > { %v5364_v6 = vld [vmem:[#allocation5 + $0x64] sm:$0xf0]  ;;  %v4052_v7 = vor.u32 %v5365_v2, %v4049_v4  ;;  %v5363_v8 = vld [vmem:[#allocation5 + $0x64] sm:$0xf]  ;;  %v4041_v9 = vld [vmem:[#allocation5 + $0x68] sm:$0xf0] }
  0x6f   : > { %791 = vmatpush.bf16.msra.mxu0 %v4048_v3  ;;  %v4040_v10 = vor.u32 %v5364_v6, %v4039_v5  ;;  %v4044_v11 = vor.u32 %v5363_v8, %v4041_v9  ;;  %v4031_v12 = vld [vmem:[#allocation5 + $0x50] sm:$0xf]  ;;  %v5362_v13 = vld [vmem:[#allocation5 + $0x54] sm:$0xf0]  ;;  %v5361_v14 = vld [vmem:[#allocation5 + $0x54] sm:$0xf] }
  0x70   : > { %805 = vmatpush.bf16.msra.mxu1 %v4052_v7  ;;  %v4033_v15 = vld [vmem:[#allocation5 + $0x58] sm:$0xf0]  ;;  %v4032_v16 = vor.u32 %v5362_v13, %v4031_v12  ;;  %v4023_v18 = vld [vmem:[#allocation5 + $0x40] sm:$0xf]  ;;  %v5360_v19 = vld [vmem:[#allocation5 + $0x44] sm:$0xf0] }
  0x71   : > { %v4036_v17 = vor.u32 %v5361_v14, %v4033_v15  ;;  %v5359_v20 = vld [vmem:[#allocation5 + $0x44] sm:$0xf]  ;;  %v4025_v21 = vld [vmem:[#allocation5 + $0x48] sm:$0xf0]  ;;  %v4024_v22 = vor.u32 %v5360_v19, %v4023_v18  ;;  %v4015_v23 = vld [vmem:[#allocation5 + $0x30] sm:$0xf] }
  0x72   : > { %v4111_v24 = vld [vmem:[#allocation8 + $0x70] sm:$0xf]  ;;  %v5382_v25 = vld [vmem:[#allocation8 + $0x74] sm:$0xf0]  ;;  %v4028_v26 = vor.u32 %v5359_v20, %v4025_v21  ;;  %v4103_v34 = vld [vmem:[#allocation8 + $0x60] sm:$0xf] }
  0x73   : > { %792 = vmatpush.bf16.msra.mxu0 %v4040_v10  ;;  %v5358_v27 = vld [vmem:[#allocation5 + $0x34] sm:$0xf0]  ;;  %v4112_v28 = vor.u32 %v5382_v25, %v4111_v24  ;;  %v5398_v30 = vld [vmem:[#allocation8 + $0xf4] sm:$0xf0]  ;;  %v5357_v31 = vld [vmem:[#allocation5 + $0x34] sm:$0xf] }
  0x74   : > { %806 = vmatpush.bf16.msra.mxu1 %v4044_v11  ;;  %v4175_v29 = vld [vmem:[#allocation8 + $0xf0] sm:$0xf]  ;;  %v4017_v32 = vld [vmem:[#allocation5 + $0x38] sm:$0xf0]  ;;  %v5380_v35 = vld [vmem:[#allocation8 + $0x64] sm:$0xf0]  ;;  %v4016_v37 = vor.u32 %v5358_v27, %v4015_v23 }
  0x75   : > { %v4176_v33 = vor.u32 %v5398_v30, %v4175_v29  ;;  %1023 = vmatpush.bf16.msra.mxu2 %v4112_v28  ;;  %v4167_v36 = vld [vmem:[#allocation8 + $0xe0] sm:$0xf]  ;;  %v4007_v38 = vld [vmem:[#allocation5 + $0x20] sm:$0xf]  ;;  %v4104_v40 = vor.u32 %v5380_v35, %v4103_v34  ;;  %v5396_v41 = vld [vmem:[#allocation8 + $0xe4] sm:$0xf0]  ;;  %v4020_v42 = vor.u32 %v5357_v31, %v4017_v32 }
  0x76   : > { %v5356_v39 = vld [vmem:[#allocation5 + $0x24] sm:$0xf0]  ;;  %v5355_v43 = vld [vmem:[#allocation5 + $0x24] sm:$0xf]  ;;  %v4009_v44 = vld [vmem:[#allocation5 + $0x28] sm:$0xf0]  ;;  %v4168_v45 = vor.u32 %v5396_v41, %v4167_v36 }
  0x77   : > { %793 = vmatpush.bf16.msra.mxu0 %v4032_v16  ;;  %1037 = vmatpush.bf16.msra.mxu3 %v4176_v33  ;;  %v4095_v46 = vld [vmem:[#allocation8 + $0x50] sm:$0xf]  ;;  %v5378_v47 = vld [vmem:[#allocation8 + $0x54] sm:$0xf0]  ;;  %v4008_v51 = vor.u32 %v5356_v39, %v4007_v38  ;;  %v3999_v52 = vld [vmem:[#allocation5 + $0x10] sm:$0xf]  ;;  %v4012_v56 = vor.u32 %v5355_v43, %v4009_v44 }
  0x78   : > { %807 = vmatpush.bf16.msra.mxu1 %v4036_v17  ;;  %v4159_v48 = vld [vmem:[#allocation8 + $0xd0] sm:$0xf]  ;;  %v5394_v49 = vld [vmem:[#allocation8 + $0xd4] sm:$0xf0]  ;;  %v4096_v50 = vor.u32 %v5378_v47, %v4095_v46  ;;  %v4087_v54 = vld [vmem:[#allocation8 + $0x40] sm:$0xf] }
  0x79   : > { %1024 = vmatpush.bf16.msra.mxu2 %v4104_v40  ;;  %v4160_v53 = vor.u32 %v5394_v49, %v4159_v48  ;;  %v5376_v55 = vld [vmem:[#allocation8 + $0x44] sm:$0xf0]  ;;  %v5354_v57 = vld [vmem:[#allocation5 + $0x14] sm:$0xf0]  ;;  %v4151_v58 = vld [vmem:[#allocation8 + $0xc0] sm:$0xf] }
  0x7a   : > { %v5392_v59 = vld [vmem:[#allocation8 + $0xc4] sm:$0xf0]  ;;  %v5353_v60 = vld [vmem:[#allocation5 + $0x14] sm:$0xf]  ;;  %v4001_v61 = vld [vmem:[#allocation5 + $0x18] sm:$0xf0]  ;;  %v4088_v0 = vor.u32 %v5376_v55, %v4087_v54  ;;  %v4000_v1 = vor.u32 %v5354_v57, %v3999_v52 }
  0x7b   : > { %794 = vmatpush.bf16.msra.mxu0 %v4024_v22  ;;  %1038 = vmatpush.bf16.msra.mxu3 %v4168_v45  ;;  %v3991_v62 = vld [vmem:[#allocation5] sm:$0xf]  ;;  %v5352_v63 = vld [vmem:[#allocation5 + $0x4] sm:$0xf0]  ;;  %v5351_v2 = vld [vmem:[#allocation5 + $0x4] sm:$0xf]  ;;  %v4152_v5 = vor.u32 %v5392_v59, %v4151_v58  ;;  %v4004_v6 = vor.u32 %v5353_v60, %v4001_v61 }
  0x7c   : > { %808 = vmatpush.bf16.msra.mxu1 %v4028_v26  ;;  %v3993_v3 = vld [vmem:[#allocation5 + $0x8] sm:$0xf0]  ;;  %v5381_v4 = vld [vmem:[#allocation8 + $0x74] sm:$0xf]  ;;  %v4113_v7 = vld [vmem:[#allocation8 + $0x78] sm:$0xf0]  ;;  %v3992_v10 = vor.u32 %v5352_v63, %v3991_v62 }
  0x7d   : > { %1025 = vmatpush.bf16.msra.mxu2 %v4096_v50  ;;  %v5397_v8 = vld [vmem:[#allocation8 + $0xf4] sm:$0xf]  ;;  %v4177_v9 = vld [vmem:[#allocation8 + $0xf8] sm:$0xf0]  ;;  %v3996_v13 = vor.u32 %v5351_v2, %v3993_v3  ;;  %v4116_v14 = vor.u32 %v5381_v4, %v4113_v7  ;;  %v5379_v16 = vld [vmem:[#allocation8 + $0x64] sm:$0xf] }
  0x7e   : > { %v686_v11 = vld [vmem:[%s6568_s5] sm:$0xff]  ;;  %v687_v12 = vld [vmem:[%s6568_s5 + $0x8] sm:$0xff]  ;;  %v4180_v15 = vor.u32 %v5397_v8, %v4177_v9  ;;  %s6845_s8 = sld [smem:[#allocation39_spill]]  ;;  %s6670_s29 = scalar_lea.vmem [#allocation19], %s6564_s4 }
  0x7f   : > { %795 = vmatpush.bf16.msra.mxu0 %v4016_v37  ;;  %1039 = vmatpush.bf16.msra.mxu3 %v4160_v53  ;;  %v4105_v17 = vld [vmem:[#allocation8 + $0x68] sm:$0xf0]  ;;  %v705_v18 = vpack.c.bf16 %v687_v12, %v686_v11  ;;  %v5395_v19 = vld [vmem:[#allocation8 + $0xe4] sm:$0xf]  ;;  %v5377_v23 = vld [vmem:[#allocation8 + $0x54] sm:$0xf] }
  0x80   : > { %809 = vmatpush.bf16.msra.mxu1 %v4020_v42  ;;  %v4169_v20 = vld [vmem:[#allocation8 + $0xe8] sm:$0xf0]  ;;  %v4108_v21 = vor.u32 %v5379_v16, %v4105_v17  ;;  %v4097_v24 = vld [vmem:[#allocation8 + $0x58] sm:$0xf0]  ;;  %v5393_v25 = vld [vmem:[#allocation8 + $0xd4] sm:$0xf] }
  0x81   : > { %1026 = vmatpush.bf16.msra.mxu2 %v4088_v0  ;;  %v4172_v22 = vor.u32 %v5395_v19, %v4169_v20  ;;  %v4161_v26 = vld [vmem:[#allocation8 + $0xd8] sm:$0xf0]  ;;  %v4100_v27 = vor.u32 %v5377_v23, %v4097_v24  ;;  %v5375_v29 = vld [vmem:[#allocation8 + $0x44] sm:$0xf]  ;;  %v4089_v30 = vld [vmem:[#allocation8 + $0x48] sm:$0xf0] }
  0x82   : > { %v4164_v28 = vor.u32 %v5393_v25, %v4161_v26  ;;  %v5391_v31 = vld [vmem:[#allocation8 + $0xc4] sm:$0xf]  ;;  %v4153_v32 = vld [vmem:[#allocation8 + $0xc8] sm:$0xf0]  ;;  %v4092_v33 = vor.u32 %v5375_v29, %v4089_v30  ;;  %v4079_v35 = vld [vmem:[#allocation8 + $0x30] sm:$0xf] }
  0x83   : > { %796 = vmatpush.bf16.msra.mxu0 %v4008_v51  ;;  %1040 = vmatpush.bf16.msra.mxu3 %v4152_v5  ;;  %v4156_v34 = vor.u32 %v5391_v31, %v4153_v32  ;;  %v5374_v36 = vld [vmem:[#allocation8 + $0x34] sm:$0xf0]  ;;  %v4143_v37 = vld [vmem:[#allocation8 + $0xb0] sm:$0xf]  ;;  %v5373_v40 = vld [vmem:[#allocation8 + $0x34] sm:$0xf] }
  0x84   : > { %810 = vmatpush.bf16.msra.mxu1 %v4012_v56  ;;  %v4080_v38 = vor.u32 %v5374_v36, %v4079_v35  ;;  %v5390_v39 = vld [vmem:[#allocation8 + $0xb4] sm:$0xf0]  ;;  %v4081_v41 = vld [vmem:[#allocation8 + $0x38] sm:$0xf0]  ;;  %v5389_v44 = vld [vmem:[#allocation8 + $0xb4] sm:$0xf] }
  0x85   : > { %v4144_v42 = vor.u32 %v5390_v39, %v4143_v37  ;;  %v4084_v43 = vor.u32 %v5373_v40, %v4081_v41  ;;  %v4145_v45 = vld [vmem:[#allocation8 + $0xb8] sm:$0xf0]  ;;  %v4071_v47 = vld [vmem:[#allocation8 + $0x20] sm:$0xf]  ;;  %v5372_v48 = vld [vmem:[#allocation8 + $0x24] sm:$0xf0] }
  0x86   : > { %1027 = vmatpush.bf16.msra.mxu2 %v4080_v38  ;;  %v4148_v46 = vor.u32 %v5389_v44, %v4145_v45  ;;  %v4072_v49 = vor.u32 %v5372_v48, %v4071_v47  ;;  %v4135_v50 = vld [vmem:[#allocation8 + $0xa0] sm:$0xf]  ;;  %v5388_v51 = vld [vmem:[#allocation8 + $0xa4] sm:$0xf0]  ;;  %v5371_v52 = vld [vmem:[#allocation8 + $0x24] sm:$0xf] }
  0x87   : > { %797 = vmatpush.bf16.msra.mxu0 %v4000_v1  ;;  %1041 = vmatpush.bf16.msra.mxu3 %v4144_v42  ;;  %v4136_v53 = vor.u32 %v5388_v51, %v4135_v50  ;;  %v4073_v54 = vld [vmem:[#allocation8 + $0x28] sm:$0xf0]  ;;  %v5387_v55 = vld [vmem:[#allocation8 + $0xa4] sm:$0xf]  ;;  %v4063_v59 = vld [vmem:[#allocation8 + $0x10] sm:$0xf] }
  0x88   : > { %811 = vmatpush.bf16.msra.mxu1 %v4004_v6  ;;  %v4137_v56 = vld [vmem:[#allocation8 + $0xa8] sm:$0xf0]  ;;  %v4076_v57 = vor.u32 %v5371_v52, %v4073_v54  ;;  %v5370_v60 = vld [vmem:[#allocation8 + $0x14] sm:$0xf0]  ;;  %v4127_v61 = vld [vmem:[#allocation8 + $0x90] sm:$0xf] }
  0x89   : > { %v4140_v58 = vor.u32 %v5387_v55, %v4137_v56  ;;  %v4064_v62 = vor.u32 %v5370_v60, %v4063_v59  ;;  %v5386_v63 = vld [vmem:[#allocation8 + $0x94] sm:$0xf0]  ;;  %v5369_v0 = vld [vmem:[#allocation8 + $0x14] sm:$0xf]  ;;  %v4065_v1 = vld [vmem:[#allocation8 + $0x18] sm:$0xf0] }
  0x8a   : > { %1028 = vmatpush.bf16.msra.mxu2 %v4072_v49  ;;  %v4128_v2 = vor.u32 %v5386_v63, %v4127_v61  ;;  %v4068_v3 = vor.u32 %v5369_v0, %v4065_v1  ;;  %v5385_v4 = vld [vmem:[#allocation8 + $0x94] sm:$0xf]  ;;  %v4129_v5 = vld [vmem:[#allocation8 + $0x98] sm:$0xf0]  ;;  %v4055_v7 = vld [vmem:[#allocation8] sm:$0xf] }
  0x8b   : > { %798 = vmatpush.bf16.msra.mxu0 %v3992_v10  ;;  %1042 = vmatpush.bf16.msra.mxu3 %v4136_v53  ;;  %v4132_v6 = vor.u32 %v5385_v4, %v4129_v5  ;;  %v5368_v8 = vld [vmem:[#allocation8 + $0x4] sm:$0xf0]  ;;  %v4119_v9 = vld [vmem:[#allocation8 + $0x80] sm:$0xf]  ;;  %v5367_v12 = vld [vmem:[#allocation8 + $0x4] sm:$0xf] }
  0x8c   : > { %812 = vmatpush.bf16.msra.mxu1 %v3996_v13  ;;  %v4056_v10 = vor.u32 %v5368_v8, %v4055_v7  ;;  %v5384_v11 = vld [vmem:[#allocation8 + $0x84] sm:$0xf0]  ;;  %v4057_v13 = vld [vmem:[#allocation8 + $0x8] sm:$0xf0]  ;;  %v5383_v16 = vld [vmem:[#allocation8 + $0x84] sm:$0xf] }
  0x8d   : > { %v4121_v17 = vld [vmem:[#allocation8 + $0x88] sm:$0xf0]  ;;  %v4303_v19 = vld [vmem:[#allocation11 + $0xf0] sm:$0xf]  ;;  %v5430_v20 = vld [vmem:[#allocation11 + $0xf4] sm:$0xf0] }
  0x8e   : > { %799 = vmatmul.bf16.vlgmr.msra.gmra.mxu0 %v705_v18  ;;  %1029 = vmatpush.bf16.msra.mxu2 %v4064_v62  ;;  %v4305_v23 = vld [vmem:[#allocation11 + $0xf8] sm:$0xf0]  ;;  %v4295_v24 = vld [vmem:[#allocation11 + $0xe0] sm:$0xf]  ;;  %v5428_v25 = vld [vmem:[#allocation11 + $0xe4] sm:$0xf0] }
  0x8f   : > { %1051 = vmatpush.bf16.msrb.mxu0 %v4116_v14  ;;  %813 = vmatmul.bf16.vlgmr.msra.gmra.mxu1 %v705_v18  ;;  %v4120_v14 = vor.u32 %v5384_v11, %v4119_v9  ;;  %v4124_v18 = vor.u32 %v5383_v16, %v4121_v17  ;;  %v4239_v29 = vld [vmem:[#allocation11 + $0x70] sm:$0xf]  ;;  %v4296_v30 = vor.u32 %v5428_v25, %v4295_v24  ;;  %v5414_v31 = vld [vmem:[#allocation11 + $0x74] sm:$0xf0]  ;;  %v5413_v32 = vld [vmem:[#allocation11 + $0x74] sm:$0xf] }
  0x90   : > { %1065 = vmatpush.bf16.msrb.mxu1 %v4180_v15  ;;  %1043 = vmatpush.bf16.msra.mxu3 %v4128_v2  ;;  %v4060_v15 = vor.u32 %v5367_v12, %v4057_v13  ;;  %v4240_v35 = vor.u32 %v5414_v31, %v4239_v29  ;;  %v4287_v37 = vld [vmem:[#allocation11 + $0xd0] sm:$0xf]  ;;  %v5426_v38 = vld [vmem:[#allocation11 + $0xd4] sm:$0xf0]  ;;  %v5425_v39 = vld [vmem:[#allocation11 + $0xd4] sm:$0xf] }
  0x91   : > { %v4289_v40 = vld [vmem:[#allocation11 + $0xd8] sm:$0xf0]  ;;  %v4231_v41 = vld [vmem:[#allocation11 + $0x60] sm:$0xf]  ;;  %v5412_v42 = vld [vmem:[#allocation11 + $0x64] sm:$0xf0] }
  0x92   : > { %1030 = vmatpush.bf16.msra.mxu2 %v4056_v10  ;;  %v5411_v44 = vld [vmem:[#allocation11 + $0x64] sm:$0xf]  ;;  %v4233_v45 = vld [vmem:[#allocation11 + $0x68] sm:$0xf0]  ;;  %v4292_v48 = vor.u32 %v5425_v39, %v4289_v40  ;;  %v4279_v49 = vld [vmem:[#allocation11 + $0xc0] sm:$0xf] }
  0x93   : > { %1052 = vmatpush.bf16.msrb.mxu0 %v4108_v21  ;;  %v5429_v21 = vld [vmem:[#allocation11 + $0xf4] sm:$0xf]  ;;  %v4236_v47 = vor.u32 %v5411_v44, %v4233_v45  ;;  %v5424_v50 = vld [vmem:[#allocation11 + $0xc4] sm:$0xf0]  ;;  %v5423_v51 = vld [vmem:[#allocation11 + $0xc4] sm:$0xf] }
  0x94   : > { %1066 = vmatpush.bf16.msrb.mxu1 %v4172_v22  ;;  %1044 = vmatpush.bf16.msra.mxu3 %v4120_v14  ;;  %v4304_v22 = vor.u32 %v5430_v20, %v4303_v19  ;;  %v4308_v26 = vor.u32 %v5429_v21, %v4305_v23  ;;  %v4281_v52 = vld [vmem:[#allocation11 + $0xc8] sm:$0xf0]  ;;  %v4280_v53 = vor.u32 %v5424_v50, %v4279_v49  ;;  %v704_v55 = vld [vmem:[#allocation7] sm:$0x3]  ;;  %v4223_v8 = vld [vmem:[#allocation11 + $0x50] sm:$0xf] }
  0x95   : > { %v4284_v54 = vor.u32 %v5423_v51, %v4281_v52  ;;  %v708_v59 = vperm.slane %v704_v55, 1  ;;  %v5410_v9 = vld [vmem:[#allocation11 + $0x54] sm:$0xf0]  ;;  %v5409_v10 = vld [vmem:[#allocation11 + $0x54] sm:$0xf]  ;;  %s6846_s10 = sld [smem:[#allocation41_spill]] }
  0x96   : > { %1283 = vmatpush.bf16.msrb.mxu2 %v4240_v35  ;;  %v4224_v11 = vor.u32 %v5410_v9, %v4223_v8  ;;  %v4225_v12 = vld [vmem:[#allocation11 + $0x58] sm:$0xf0]  ;;  %v4271_v14 = vld [vmem:[#allocation11 + $0xb0] sm:$0xf]  ;;  %v5421_v16 = vld [vmem:[#allocation11 + $0xb4] sm:$0xf] }
  0x97   : > { %1053 = vmatpush.bf16.msrb.mxu0 %v4100_v27  ;;  %v5427_v27 = vld [vmem:[#allocation11 + $0xe4] sm:$0xf]  ;;  %v4228_v13 = vor.u32 %v5409_v10, %v4225_v12  ;;  %v4215_v20 = vld [vmem:[#allocation11 + $0x40] sm:$0xf]  ;;  %v5408_v21 = vld [vmem:[#allocation11 + $0x44] sm:$0xf0] }
  0x98   : > { %1067 = vmatpush.bf16.msrb.mxu1 %v4164_v28  ;;  %v4297_v28 = vld [vmem:[#allocation11 + $0xe8] sm:$0xf0]  ;;  %1297 = vmatpush.bf16.msrb.mxu3 %v4304_v22  ;;  %v5407_v22 = vld [vmem:[#allocation11 + $0x44] sm:$0xf]  ;;  %v4216_v23 = vor.u32 %v5408_v21, %v4215_v20  ;;  %v5418_v39 = vld [vmem:[#allocation11 + $0x94] sm:$0xf0] }
  0x99   : > { %v4217_v24 = vld [vmem:[#allocation11 + $0x48] sm:$0xf0]  ;;  %v5417_v40 = vld [vmem:[#allocation11 + $0x94] sm:$0xf]  ;;  %v4199_v44 = vld [vmem:[#allocation11 + $0x20] sm:$0xf] }
  0x9a   : > { %v4220_v25 = vor.u32 %v5407_v22, %v4217_v24  ;;  %v5404_v45 = vld [vmem:[#allocation11 + $0x24] sm:$0xf0]  ;;  %v4247_v50 = vld [vmem:[#allocation11 + $0x80] sm:$0xf]  ;;  %v5415_v52 = vld [vmem:[#allocation11 + $0x84] sm:$0xf] }
  0x9b   : > { %1054 = vmatpush.bf16.msrb.mxu0 %v4092_v33  ;;  %v4241_v33 = vld [vmem:[#allocation11 + $0x78] sm:$0xf0]  ;;  %v5416_v51 = vld [vmem:[#allocation11 + $0x84] sm:$0xf0]  ;;  %s3701_s22 = sshll.u32 %s6670_s29, 4  ;;  %s5687_s15 = sshll.u32 %s6425_s25, 4  ;;  %s6678_s22 = int_to_ptr.vmem [resolvable:$true] %s3701_s22 }
  0x9c   : > { %1068 = vmatpush.bf16.msrb.mxu1 %v4156_v34  ;;  %v4300_v34 = vor.u32 %v5427_v27, %v4297_v28  ;;  %v4244_v36 = vor.u32 %v5413_v32, %v4241_v33  ;;  %1298 = vmatpush.bf16.msrb.mxu3 %v4296_v30  ;;  %v5420_v27 = vld [vmem:[#allocation11 + $0xa4] sm:$0xf0]  ;;  %v5419_v28 = vld [vmem:[#allocation11 + $0xa4] sm:$0xf]  ;;  %v4265_v30 = vld [vmem:[#allocation11 + $0xa8] sm:$0xf0] }
  0x9d   : > { %v4268_v31 = vor.u32 %v5419_v28, %v4265_v30  ;;  %v4207_v32 = vld [vmem:[#allocation11 + $0x30] sm:$0xf]  ;;  %v5406_v33 = vld [vmem:[#allocation11 + $0x34] sm:$0xf0]  ;;  %s674_s13 = scalar_lea.vmem [#allocation20], %s6564_s4  ;;  %s681_s1 = scalar_lea.vmem [#allocation22], %s6564_s4 }
  0x9e   : > { %v4208_v35 = vor.u32 %v5406_v33, %v4207_v32  ;;  %v5444_v32 = vld [vmem:[#allocation14 + $0x68] sm:$0xff]  ;;  %v5437_v33 = vld [vmem:[#allocation14 + $0x30] sm:$0xff]  ;;  %s3718_s27 = sshll.u32 %s674_s13, 4  ;;  %s6847_s2 = sld [smem:[#allocation43_spill]]  ;;  %s6696_s27 = int_to_ptr.vmem [resolvable:$true] %s3718_s27 }
  0x9f   : > { %1055 = vmatpush.bf16.msrb.mxu0 %v4084_v43  ;;  %v4232_v43 = vor.u32 %v5412_v42, %v4231_v41  ;;  %v4257_v42 = vld [vmem:[#allocation11 + $0x98] sm:$0xf0]  ;;  %s3683_s16 = sand.u32 1, %s6425_s25   ;;  %s6848_s0 = sld [smem:[#allocation42_spill]] }
  0xa0   : > { %1069 = vmatpush.bf16.msrb.mxu1 %v4148_v46  ;;  %v4288_v46 = vor.u32 %v5426_v38, %v4287_v37  ;;  %v4255_v38 = vld [vmem:[#allocation11 + $0x90] sm:$0xf]  ;;  %s6711_s9 = scalar_lea.sflag [#allocation21], %s3683_s16 }
  0xa1   : > { %1284 = vmatpush.bf16.msrb.mxu2 %v4232_v43  ;;  %v4256_v41 = vor.u32 %v5418_v39, %v4255_v38  ;;  %v4260_v43 = vor.u32 %v5417_v40, %v4257_v42  ;;  %v5441_v38 = vld [vmem:[#allocation14 + $0x50] sm:$0xff]  ;;  %v5434_v39 = vld [vmem:[#allocation14 + $0x18] sm:$0xff]  ;;  %v5440_v40 = vld [vmem:[#allocation14 + $0x48] sm:$0xff] }
  0xa2   : > { %1299 = vmatpush.bf16.msrb.mxu3 %v4288_v46  ;;  %v5403_v46 = vld [vmem:[#allocation11 + $0x24] sm:$0xf] }
  0xa3   : > { %1056 = vmatpush.bf16.msrb.mxu0 %v4076_v57  ;;  %v5439_v42 = vld [vmem:[#allocation14 + $0x40] sm:$0xff] }
  0xa4   : > { %1070 = vmatpush.bf16.msrb.mxu1 %v4140_v58  ;;  %v707_v58 = vperm.slane %v704_v55, 0  ;;  %s3717_s26 = scalar_lea.hbm %s6847_s2, %s5687_s15 }
  0xa5   : > { %1285 = vmatpush.bf16.msrb.mxu2 %v4224_v11  ;;  %s3700_s7 = scalar_lea.hbm %s6848_s0, %s5687_s15 }
  0xa6   : > { %1300 = vmatpush.bf16.msrb.mxu3 %v4280_v53  ;;  %v4248_v53 = vor.u32 %v5416_v51, %v4247_v50  ;;  %v5460_v50 = vld [vmem:[#allocation17 + $0x28] sm:$0xff]  ;;  %v1115_v51 = vld [vmem:[#allocation13] sm:$0x3]  ;;  %s6701_s25 = sshll.u32 %s3700_s7, 4  ;;  %s3704_s25 = int_to_ptr.hbm [resolvable:$true] %s6701_s25 }
  0xa7   : > { %1057 = vmatpush.bf16.msrb.mxu0 %v4068_v3 }
  0xa8   : > { %1071 = vmatpush.bf16.msrb.mxu1 %v4132_v6 }
  0xa9   : > { %1286 = vmatpush.bf16.msrb.mxu2 %v4216_v23 }
  0xab   : > { %1058 = vmatpush.bf16.msrb.mxu0 %v4060_v15  ;;  %v5422_v15 = vld [vmem:[#allocation11 + $0xb4] sm:$0xf0] }
  0xac   : > { %1072 = vmatpush.bf16.msrb.mxu1 %v4124_v18  ;;  %v4272_v17 = vor.u32 %v5422_v15, %v4271_v14  ;;  %v4273_v18 = vld [vmem:[#allocation11 + $0xb8] sm:$0xf0] }
  0xad   : > { %v4276_v19 = vor.u32 %v5421_v16, %v4273_v18  ;;  %1287 = vmatpush.bf16.msrb.mxu2 %v4208_v35  ;;  %v5436_v35 = vld [vmem:[#allocation14 + $0x28] sm:$0xff] }
  0xae   : > { %1301 = vmatpush.bf16.msrb.mxu3 %v4272_v17 }
  0xaf   : > { %1311 = vmatpush.bf16.msra.mxu0 %v4244_v36  ;;  %v4209_v36 = vld [vmem:[#allocation11 + $0x38] sm:$0xf0] }
  0xb0   : > { %1325 = vmatpush.bf16.msra.mxu1 %v4308_v26  ;;  %v4263_v26 = vld [vmem:[#allocation11 + $0xa0] sm:$0xf] }
  0xb1   : > { %v4264_v29 = vor.u32 %v5420_v27, %v4263_v26 }
  0xb3   : > { %1312 = vmatpush.bf16.msra.mxu0 %v4236_v47  ;;  %1302 = vmatpush.bf16.msrb.mxu3 %v4264_v29  ;;  %v4200_v47 = vor.u32 %v5404_v45, %v4199_v44  ;;  %v5431_v44 = vld [vmem:[#allocation14] sm:$0xff]  ;;  %v5454_v45 = vld [vmem:[#allocation16 + $0x38] sm:$0xff] }
  0xb4   : > { %1326 = vmatpush.bf16.msra.mxu1 %v4300_v34  ;;  %v5405_v34 = vld [vmem:[#allocation11 + $0x34] sm:$0xf] }
  0xb5   : > { %v4212_v37 = vor.u32 %v5405_v34, %v4209_v36  ;;  %1288 = vmatpush.bf16.msrb.mxu2 %v4200_v47  ;;  %v5443_v34 = vld [vmem:[#allocation14 + $0x60] sm:$0xff]  ;;  %v5442_v36 = vld [vmem:[#allocation14 + $0x58] sm:$0xff]  ;;  %v5453_v47 = vld [vmem:[#allocation16 + $0x30] sm:$0xff] }
  0xb7   : > { %1313 = vmatpush.bf16.msra.mxu0 %v4228_v13  ;;  %1303 = vmatpush.bf16.msrb.mxu3 %v4256_v41  ;;  %v5433_v41 = vld [vmem:[#allocation14 + $0x10] sm:$0xff] }
  0xb8   : > { %1327 = vmatpush.bf16.msra.mxu1 %v4292_v48  ;;  %v4201_v48 = vld [vmem:[#allocation11 + $0x28] sm:$0xf0] }
  0xb9   : > { %v4204_v49 = vor.u32 %v5403_v46, %v4201_v48  ;;  %v5462_v46 = vld [vmem:[#allocation17 + $0x38] sm:$0xff]  ;;  %v5461_v48 = vld [vmem:[#allocation17 + $0x30] sm:$0xff] }
  0xbb   : > { %1314 = vmatpush.bf16.msra.mxu0 %v4220_v25  ;;  %1304 = vmatpush.bf16.msrb.mxu3 %v4248_v53 }
  0xbc   : > { %1328 = vmatpush.bf16.msra.mxu1 %v4284_v54  ;;  %v4249_v54 = vld [vmem:[#allocation11 + $0x88] sm:$0xf0] }
  0xbd   : > { %v4252_v55 = vor.u32 %v5415_v52, %v4249_v54  ;;  %v1120_v54 = vperm.slane %v1115_v51, 1 }
  0xbf   : > { %1315 = vmatpush.bf16.msra.mxu0 %v4212_v37  ;;  %v5435_v37 = vld [vmem:[#allocation14 + $0x20] sm:$0xff] }
  0xc0   : > { %1329 = vmatpush.bf16.msra.mxu1 %v4276_v19 }
  0xc3   : > { %1316 = vmatpush.bf16.msra.mxu0 %v4204_v49  ;;  %v5452_v49 = vld [vmem:[#allocation16 + $0x28] sm:$0xff] }
  0xc4   : > { %1330 = vmatpush.bf16.msra.mxu1 %v4268_v31 }
  0xc8   : > { %1331 = vmatpush.bf16.msra.mxu1 %v4260_v43  ;;  %v5432_v43 = vld [vmem:[#allocation14 + $0x8] sm:$0xff] }
  0xcc   : > { %1332 = vmatpush.bf16.msra.mxu1 %v4252_v55 }
 0x10b   : > { %v800_v56 = vpop.f32.mrf.mxu0 }
 0x10c   : > { %v814_v57 = vpop.f32.mrf.mxu1  ;;  %v801_v60 = vadd.f32 %v800_v56, %v707_v58  ;;  %v4191_v56 = vld [vmem:[#allocation11 + $0x10] sm:$0xf] }
 0x10d   : > { %v815_v61 = vadd.f32 %v814_v57, %v708_v59  ;;  %v5402_v57 = vld [vmem:[#allocation11 + $0x14] sm:$0xf0] }
 0x10e   : > { %v819_v2 = vmax.f32 %v801_v60, 0.0  ;;  %v4193_v60 = vld [vmem:[#allocation11 + $0x18] sm:$0xf0] }
 0x10f   : > { %v820_v4 = vmax.f32 %v815_v61, 0.0 }
 0x113   : > { %v802_v62 = vpop.f32.mrf.mxu0 }
 0x114   : > { %v803_v63 = vadd.f32 %v802_v62, %v707_v58  ;;  %v816_v0 = vpop.f32.mrf.mxu1  ;;  %v5401_v58 = vld [vmem:[#allocation11 + $0x14] sm:$0xf]  ;;  %v4183_v62 = vld [vmem:[#allocation11] sm:$0xf] }
 0x115   : > { %v817_v1 = vadd.f32 %v816_v0, %v708_v59  ;;  %v4192_v59 = vor.u32 %v5402_v57, %v4191_v56  ;;  %v4196_v61 = vor.u32 %v5401_v58, %v4193_v60  ;;  %v5399_v0 = vld [vmem:[#allocation11 + $0x4] sm:$0xf]  ;;  %v1119_v58 = vperm.slane %v1115_v51, 0 }
 0x116   : > { %v821_v3 = vmax.f32 %v803_v63, 0.0  ;;  %v5400_v63 = vld [vmem:[#allocation11 + $0x4] sm:$0xf0] }
 0x117   : > { %v822_v5 = vmax.f32 %v817_v1, 0.0  ;;  %1289 = vmatpush.bf16.msrb.mxu2 %v4192_v59  ;;  %1317 = vmatpush.bf16.msra.mxu0 %v4196_v61  ;;  %v4184_v1 = vor.u32 %v5400_v63, %v4183_v62 }
 0x118   : > { %v856_v6 = vpack.c.bf16 %v821_v3, %v819_v2  ;;  %v4185_v2 = vld [vmem:[#allocation11 + $0x8] sm:$0xf0] }
 0x119   : > { %v857_v7 = vpack.c.bf16 %v822_v5, %v820_v4  ;;  %v4188_v3 = vor.u32 %v5399_v0, %v4185_v2  ;;  %v5446_v4 = vld [vmem:[#allocation14 + $0x78] sm:$0xff] }
 0x11a   : > { %1031 = vmatmul.bf16.vlgmr.msra.gmra.mxu2 %v856_v6  ;;  %1059 = vmatmul.bf16.vlgmr.msrb.gmra.mxu0 %v856_v6  ;;  %v5438_v5 = vld [vmem:[#allocation14 + $0x38] sm:$0xff]  ;;  %v5445_v6 = vld [vmem:[#allocation14 + $0x70] sm:$0xff] }
 0x11b   : > { %1045 = vmatmul.bf16.vlgmr.msra.gmra.mxu3 %v857_v7  ;;  %1073 = vmatmul.bf16.vlgmr.msrb.gmra.mxu1 %v857_v7  ;;  %v855_v7 = vld [vmem:[#allocation10] sm:$0x3] }
 0x11c   : > { %1290 = vmatpush.bf16.msrb.mxu2 %v4184_v1  ;;  %1318 = vmatpush.bf16.msra.mxu0 %v4188_v3  ;;  %v860_v9 = vperm.slane %v855_v7, 1  ;;  %v859_v13 = vperm.slane %v855_v7, 0 }
 0x11d   : > { %1491 = vmatpush.bf16.msra.mxu3 %v5446_v4  ;;  %1656 = vmatpush.bf16.msrb.mxu1 %v5462_v46 }
 0x120   : > { %1477 = vmatpush.bf16.msra.mxu2 %v5438_v5  ;;  %1574 = vmatpush.bf16.msrb.mxu0 %v5454_v45 }
 0x121   : > { %1492 = vmatpush.bf16.msra.mxu3 %v5445_v6  ;;  %1657 = vmatpush.bf16.msrb.mxu1 %v5461_v48  ;;  %v5845_v48 = vld [vmem:[%s6845_s8] ss:$0 sm:$0xff] }
 0x124   : > { %1478 = vmatpush.bf16.msra.mxu2 %v5437_v33  ;;  %1575 = vmatpush.bf16.msrb.mxu0 %v5453_v47 }
 0x125   : > { %1493 = vmatpush.bf16.msra.mxu3 %v5444_v32  ;;  %1658 = vmatpush.bf16.msrb.mxu1 %v5460_v50 }
 0x128   : > { %1479 = vmatpush.bf16.msra.mxu2 %v5436_v35  ;;  %1576 = vmatpush.bf16.msrb.mxu0 %v5452_v49  ;;  %v5474_v35 = vld [vmem:[#allocation5 + $0xd4] sm:$0xf0] }
 0x129   : > { %1494 = vmatpush.bf16.msra.mxu3 %v5443_v34  ;;  %v4479_v34 = vld [vmem:[#allocation5 + $0xd0] sm:$0xf] }
 0x12c   : > { %1480 = vmatpush.bf16.msra.mxu2 %v5435_v37  ;;  %v4481_v37 = vld [vmem:[#allocation5 + $0xd8] sm:$0xf0] }
 0x12d   : > { %1495 = vmatpush.bf16.msra.mxu3 %v5442_v36  ;;  %v5473_v36 = vld [vmem:[#allocation5 + $0xd4] sm:$0xf] }
 0x130   : > { %1481 = vmatpush.bf16.msra.mxu2 %v5434_v39  ;;  %v4484_v39 = vor.u32 %v5473_v36, %v4481_v37  ;;  %v5507_v36 = vld [vmem:[#allocation8 + $0x1e4] sm:$0xf] }
 0x131   : > { %1496 = vmatpush.bf16.msra.mxu3 %v5441_v38  ;;  %v4480_v38 = vor.u32 %v5474_v35, %v4479_v34  ;;  %v5491_v34 = vld [vmem:[#allocation8 + $0x164] sm:$0xf]  ;;  %v4553_v35 = vld [vmem:[#allocation8 + $0x168] sm:$0xf0] }
 0x132   : > { %v4556_v37 = vor.u32 %v5491_v34, %v4553_v35  ;;  %v4511_v34 = vld [vmem:[#allocation8 + $0x110] sm:$0xf]  ;;  %v5482_v35 = vld [vmem:[#allocation8 + $0x114] sm:$0xf0] }
 0x134   : > { %1482 = vmatpush.bf16.msra.mxu2 %v5433_v41  ;;  %v5472_v41 = vld [vmem:[#allocation5 + $0xc4] sm:$0xf0] }
 0x135   : > { %1497 = vmatpush.bf16.msra.mxu3 %v5440_v40  ;;  %v4471_v40 = vld [vmem:[#allocation5 + $0xc0] sm:$0xf] }
 0x138   : > { %1483 = vmatpush.bf16.msra.mxu2 %v5432_v43  ;;  %v4473_v43 = vld [vmem:[#allocation5 + $0xc8] sm:$0xf0] }
 0x139   : > { %1498 = vmatpush.bf16.msra.mxu3 %v5439_v42  ;;  %v5471_v42 = vld [vmem:[#allocation5 + $0xc4] sm:$0xf] }
 0x13a   : > { %v4476_v45 = vor.u32 %v5471_v42, %v4473_v43  ;;  %v4607_v42 = vld [vmem:[#allocation8 + $0x1d0] sm:$0xf]  ;;  %v5506_v43 = vld [vmem:[#allocation8 + $0x1d4] sm:$0xf0] }
 0x13c   : > { %1484 = vmatpush.bf16.msra.mxu2 %v5431_v44  ;;  %v4472_v44 = vor.u32 %v5472_v41, %v4471_v40  ;;  %v5490_v40 = vld [vmem:[#allocation8 + $0x154] sm:$0xf0] }
 0x197   : > { %v1060_v8 = vpop.f32.mrf.mxu0 }
 0x198   : > { %v1074_v10 = vpop.f32.mrf.mxu1  ;;  %v1061_v11 = vadd.f32 %v1060_v8, %v860_v9 }
 0x19a   : > { %v1075_v16 = vadd.f32 %v1074_v10, %v1061_v11 }
 0x19c   : > { %v1080_v21 = vmax.f32 %v1075_v16, 0.0  ;;  %v5449_v16 = vld [vmem:[#allocation16 + $0x10] sm:$0xff] }
 0x19d   : > { %v1032_v12 = vpop.f32.mrf.mxu2 }
 0x19e   : > { %v1046_v14 = vpop.f32.mrf.mxu3  ;;  %v1033_v19 = vadd.f32 %v1032_v12, %v859_v13  ;;  %v5451_v12 = vld [vmem:[#allocation16 + $0x20] sm:$0xff] }
 0x19f   : > { %v1062_v15 = vpop.f32.mrf.mxu0  ;;  %1577 = vmatpush.bf16.msrb.mxu0 %v5451_v12  ;;  %v5463_v12 = vld [vmem:[#allocation5 + $0x84] sm:$0xf] }
 0x1a0   : > { %v1063_v17 = vadd.f32 %v1062_v15, %v860_v9  ;;  %v1076_v18 = vpop.f32.mrf.mxu1  ;;  %v1047_v24 = vadd.f32 %v1046_v14, %v1033_v19  ;;  %v5450_v14 = vld [vmem:[#allocation16 + $0x18] sm:$0xff]  ;;  %v5456_v19 = vld [vmem:[#allocation17 + $0x8] sm:$0xff] }
 0x1a1   : > { %v5458_v15 = vld [vmem:[#allocation17 + $0x18] sm:$0xff] }
 0x1a2   : > { %v1077_v20 = vadd.f32 %v1076_v18, %v1063_v17  ;;  %v1079_v29 = vmax.f32 %v1047_v24, 0.0  ;;  %v5457_v17 = vld [vmem:[#allocation17 + $0x10] sm:$0xff]  ;;  %v5448_v18 = vld [vmem:[#allocation16 + $0x8] sm:$0xff]  ;;  %v5477_v24 = vld [vmem:[#allocation5 + $0xf4] sm:$0xf] }
 0x1a3   : > { %1578 = vmatpush.bf16.msrb.mxu0 %v5450_v14  ;;  %v4441_v14 = vld [vmem:[#allocation5 + $0x88] sm:$0xf0] }
 0x1a4   : > { %v1082_v22 = vmax.f32 %v1077_v20, 0.0  ;;  %v5447_v20 = vld [vmem:[#allocation16] sm:$0xff] }
 0x1a5   : > { %v1034_v23 = vpop.f32.mrf.mxu2 }
 0x1a6   : > { %v1117_v25 = vpack.c.bf16 %v1082_v22, %v1080_v21  ;;  %v1035_v26 = vadd.f32 %v1034_v23, %v859_v13  ;;  %v1048_v27 = vpop.f32.mrf.mxu3  ;;  %v5459_v13 = vld [vmem:[#allocation17 + $0x20] sm:$0xff] }
 0x1a7   : > { %1659 = vmatpush.bf16.msrb.mxu1 %v5459_v13  ;;  %1579 = vmatpush.bf16.msrb.mxu0 %v5449_v16  ;;  %v5455_v21 = vld [vmem:[#allocation17] sm:$0xff] }
 0x1a8   : > { %v1049_v28 = vadd.f32 %v1048_v27, %v1035_v26  ;;  %1305 = vmatmul.bf16.vlgmr.msrb.gmra.mxu3 %v1117_v25  ;;  %1333 = vmatmul.bf16.vlgmr.msra.gmra.mxu1 %v1117_v25  ;;  %v4495_v22 = vld [vmem:[#allocation5 + $0xf0] sm:$0xf]  ;;  %v5478_v23 = vld [vmem:[#allocation5 + $0xf4] sm:$0xf0]  ;;  %v4497_v26 = vld [vmem:[#allocation5 + $0xf8] sm:$0xf0] }
 0x1a9   : > { %v4496_v25 = vor.u32 %v5478_v23, %v4495_v22  ;;  %v4487_v27 = vld [vmem:[#allocation5 + $0xe0] sm:$0xf]  ;;  %v4559_v16 = vld [vmem:[#allocation8 + $0x170] sm:$0xf] }
 0x1aa   : > { %v1081_v30 = vmax.f32 %v1049_v28, 0.0  ;;  %v5476_v28 = vld [vmem:[#allocation5 + $0xe4] sm:$0xf0]  ;;  %v4561_v22 = vld [vmem:[#allocation8 + $0x178] sm:$0xf0] }
 0x1ab   : > { %1660 = vmatpush.bf16.msrb.mxu1 %v5458_v15  ;;  %1580 = vmatpush.bf16.msrb.mxu0 %v5448_v18  ;;  %v4488_v32 = vor.u32 %v5476_v28, %v4487_v27  ;;  %v4444_v15 = vor.u32 %v5463_v12, %v4441_v14  ;;  %v4623_v18 = vld [vmem:[#allocation8 + $0x1f0] sm:$0xf]  ;;  %v4551_v27 = vld [vmem:[#allocation8 + $0x160] sm:$0xf]  ;;  %v5502_v14 = vld [vmem:[#allocation8 + $0x1b4] sm:$0xf0] }
 0x1ac   : > { %v1116_v31 = vpack.c.bf16 %v1081_v30, %v1079_v29  ;;  %v4500_v29 = vor.u32 %v5477_v24, %v4497_v26  ;;  %v5475_v30 = vld [vmem:[#allocation5 + $0xe4] sm:$0xf]  ;;  %v4591_v12 = vld [vmem:[#allocation8 + $0x1b0] sm:$0xf] }
 0x1ad   : > { %v4625_v26 = vld [vmem:[#allocation8 + $0x1f8] sm:$0xf0] }
 0x1ae   : > { %1291 = vmatmul.bf16.vlgmr.msrb.gmra.mxu2 %v1116_v31  ;;  %1319 = vmatmul.bf16.vlgmr.msra.gmra.mxu0 %v1116_v31  ;;  %v4489_v31 = vld [vmem:[#allocation5 + $0xe8] sm:$0xf0] }
 0x1af   : > { %1661 = vmatpush.bf16.msrb.mxu1 %v5457_v17  ;;  %1581 = vmatpush.bf16.msrb.mxu0 %v5447_v20  ;;  %v4492_v33 = vor.u32 %v5475_v30, %v4489_v31  ;;  %v5494_v17 = vld [vmem:[#allocation8 + $0x174] sm:$0xf0]  ;;  %v4615_v30 = vld [vmem:[#allocation8 + $0x1e0] sm:$0xf]  ;;  %v5508_v31 = vld [vmem:[#allocation8 + $0x1e4] sm:$0xf0] }
 0x1b0   : > { %1777 = vmatpush.bf16.msrb.mxu2 %v4496_v25  ;;  %1791 = vmatpush.bf16.msrb.mxu3 %v4500_v29  ;;  %v5510_v20 = vld [vmem:[#allocation8 + $0x1f4] sm:$0xf0]  ;;  %v5509_v25 = vld [vmem:[#allocation8 + $0x1f4] sm:$0xf]  ;;  %v5492_v29 = vld [vmem:[#allocation8 + $0x164] sm:$0xf0] }
 0x1b1   : > { %v4624_v23 = vor.u32 %v5510_v20, %v4623_v18  ;;  %v4628_v28 = vor.u32 %v5509_v25, %v4625_v26  ;;  %v4593_v20 = vld [vmem:[#allocation8 + $0x1b8] sm:$0xf0]  ;;  %v5500_v26 = vld [vmem:[#allocation8 + $0x1a4] sm:$0xf0] }
 0x1b3   : > { %1662 = vmatpush.bf16.msrb.mxu1 %v5456_v19  ;;  %v4560_v19 = vor.u32 %v5494_v17, %v4559_v16  ;;  %v4529_v16 = vld [vmem:[#allocation8 + $0x138] sm:$0xf0]  ;;  %v4592_v17 = vor.u32 %v5502_v14, %v4591_v12  ;;  %v4753_v12 = vld [vmem:[#allocation11 + $0x1f8] sm:$0xf0] }
 0x1b4   : > { %1778 = vmatpush.bf16.msrb.mxu2 %v4488_v32  ;;  %1792 = vmatpush.bf16.msrb.mxu3 %v4492_v33  ;;  %v4552_v32 = vor.u32 %v5492_v29, %v4551_v27  ;;  %v4616_v33 = vor.u32 %v5508_v31, %v4615_v30  ;;  %v5483_v27 = vld [vmem:[#allocation8 + $0x124] sm:$0xf] }
 0x1b5   : > { %2011 = vmatpush.bf16.msra.mxu0 %v4560_v19  ;;  %v5501_v19 = vld [vmem:[#allocation8 + $0x1b4] sm:$0xf]  ;;  %v5499_v31 = vld [vmem:[#allocation8 + $0x1a4] sm:$0xf] }
 0x1b7   : > { %1663 = vmatpush.bf16.msrb.mxu1 %v5455_v21  ;;  %v5493_v21 = vld [vmem:[#allocation8 + $0x174] sm:$0xf] }
 0x1b8   : > { %1779 = vmatpush.bf16.msrb.mxu2 %v4480_v38  ;;  %1793 = vmatpush.bf16.msrb.mxu3 %v4484_v39  ;;  %v4564_v24 = vor.u32 %v5493_v21, %v4561_v22  ;;  %v4617_v38 = vld [vmem:[#allocation8 + $0x1e8] sm:$0xf0]  ;;  %v4543_v39 = vld [vmem:[#allocation8 + $0x150] sm:$0xf]  ;;  %v4596_v21 = vor.u32 %v5501_v19, %v4593_v20  ;;  %v4519_v22 = vld [vmem:[#allocation8 + $0x120] sm:$0xf] }
 0x1b9   : > { %v4620_v41 = vor.u32 %v5507_v36, %v4617_v38  ;;  %2012 = vmatpush.bf16.msra.mxu0 %v4552_v32  ;;  %v4585_v32 = vld [vmem:[#allocation8 + $0x1a8] sm:$0xf0]  ;;  %v4575_v36 = vld [vmem:[#allocation8 + $0x190] sm:$0xf]  ;;  %v5498_v38 = vld [vmem:[#allocation8 + $0x194] sm:$0xf0] }
 0x1ba   : > { %v4673_v19 = vld [vmem:[#allocation11 + $0x158] sm:$0xf0]  ;;  %v4743_v20 = vld [vmem:[#allocation11 + $0x1e0] sm:$0xf] }
 0x1bb   : > { %2025 = vmatpush.bf16.msra.mxu1 %v4624_v23  ;;  %v5484_v23 = vld [vmem:[#allocation8 + $0x124] sm:$0xf0] }
 0x1bc   : > { %1780 = vmatpush.bf16.msrb.mxu2 %v4472_v44  ;;  %1794 = vmatpush.bf16.msrb.mxu3 %v4476_v45  ;;  %v5489_v44 = vld [vmem:[#allocation8 + $0x154] sm:$0xf]  ;;  %v4544_v45 = vor.u32 %v5490_v40, %v4543_v39  ;;  %v4520_v25 = vor.u32 %v5484_v23, %v4519_v22  ;;  %v4513_v40 = vld [vmem:[#allocation8 + $0x118] sm:$0xf0]  ;;  %v5539_v23 = vld [vmem:[#allocation11 + $0x1e4] sm:$0xf] }
 0x1bd   : > { %v5481_v39 = vld [vmem:[#allocation8 + $0x114] sm:$0xf] }
 0x1be   : > { %2013 = vmatpush.bf16.msra.mxu0 %v4544_v45 }
 0x1bf   : > { %2026 = vmatpush.bf16.msra.mxu1 %v4616_v33  ;;  %v4588_v33 = vor.u32 %v5499_v31, %v4585_v32  ;;  %v4665_v31 = vld [vmem:[#allocation11 + $0x148] sm:$0xf0] }
 0x225   : > { %v1334_v52 = vpop.f32.mrf.mxu1 }
 0x22b   : > { %v1320_v53 = vpop.f32.mrf.mxu0  ;;  %v1306_v56 = vpop.f32.mrf.mxu3 }
 0x22c   : > { %v1321_v55 = vadd.f32 %v1320_v53, %v1120_v54 }
 0x22d   : > { %v1336_v62 = vpop.f32.mrf.mxu1 }
 0x22e   : > { %v1335_v60 = vadd.f32 %v1334_v52, %v1321_v55 }
 0x230   : > { %v1340_v1 = vmax.f32 %v1335_v60, 0.0  ;;  %v4465_v60 = vld [vmem:[#allocation5 + $0xb8] sm:$0xf0] }
 0x231   : > { %v1292_v57 = vpop.f32.mrf.mxu2 }
 0x232   : > { %v1293_v63 = vadd.f32 %v1292_v57, %v1119_v58  ;;  %v5470_v57 = vld [vmem:[#allocation5 + $0xb4] sm:$0xf0] }
 0x233   : > { %v1322_v59 = vpop.f32.mrf.mxu0  ;;  %v1308_v7 = vpop.f32.mrf.mxu3 }
 0x234   : > { %v1323_v61 = vadd.f32 %v1322_v59, %v1120_v54  ;;  %v1307_v4 = vadd.f32 %v1306_v56, %v1293_v63  ;;  %v4463_v56 = vld [vmem:[#allocation5 + $0xb0] sm:$0xf]  ;;  %v5468_v63 = vld [vmem:[#allocation5 + $0xa4] sm:$0xf0] }
 0x235   : > { %v4464_v59 = vor.u32 %v5470_v57, %v4463_v56  ;;  %v5487_v56 = vld [vmem:[#allocation8 + $0x144] sm:$0xf]  ;;  %v4537_v57 = vld [vmem:[#allocation8 + $0x148] sm:$0xf0] }
 0x236   : > { %v1337_v0 = vadd.f32 %v1336_v62, %v1323_v61  ;;  %v1339_v9 = vmax.f32 %v1307_v4, 0.0  ;;  %v4455_v62 = vld [vmem:[#allocation5 + $0xa0] sm:$0xf]  ;;  %v4447_v4 = vld [vmem:[#allocation5 + $0x90] sm:$0xf] }
 0x237   : > { %1781 = vmatpush.bf16.msrb.mxu2 %v4464_v59  ;;  %v4601_v59 = vld [vmem:[#allocation8 + $0x1c8] sm:$0xf0] }
 0x238   : > { %v1342_v2 = vmax.f32 %v1337_v0, 0.0  ;;  %v5467_v0 = vld [vmem:[#allocation5 + $0xa4] sm:$0xf] }
 0x239   : > { %v1294_v3 = vpop.f32.mrf.mxu2 }
 0x23a   : > { %v1377_v5 = vpack.c.bf16 %v1342_v2, %v1340_v1  ;;  %v1295_v6 = vadd.f32 %v1294_v3, %v1119_v58  ;;  %v5469_v58 = vld [vmem:[#allocation5 + $0xb4] sm:$0xf]  ;;  %v4456_v1 = vor.u32 %v5468_v63, %v4455_v62  ;;  %v4457_v2 = vld [vmem:[#allocation5 + $0xa8] sm:$0xf0]  ;;  %v4540_v62 = vor.u32 %v5487_v56, %v4537_v57 }
 0x23b   : > { %v4468_v61 = vor.u32 %v5469_v58, %v4465_v60  ;;  %v4460_v3 = vor.u32 %v5467_v0, %v4457_v2  ;;  %v5503_v58 = vld [vmem:[#allocation8 + $0x1c4] sm:$0xf]  ;;  %v4569_v56 = vld [vmem:[#allocation8 + $0x188] sm:$0xf0] }
 0x23c   : > { %v1309_v8 = vadd.f32 %v1308_v7, %v1295_v6  ;;  %1499 = vmatmul.bf16.vlgmr.msra.gmra.mxu3 %v1377_v5  ;;  %1782 = vmatpush.bf16.msrb.mxu2 %v4456_v1  ;;  %v5466_v5 = vld [vmem:[#allocation5 + $0x94] sm:$0xf0]  ;;  %v5465_v6 = vld [vmem:[#allocation5 + $0x94] sm:$0xf]  ;;  %v4604_v63 = vor.u32 %v5503_v58, %v4601_v59  ;;  %v5847_v1 = vld [vmem:[%s6798_s12] ss:$0 sm:$0xff] }
 0x23d   : > { %1795 = vmatpush.bf16.msrb.mxu3 %v4468_v61  ;;  %v4448_v7 = vor.u32 %v5466_v5, %v4447_v4  ;;  %v5854_v5 = vld [vmem:[%s6568_s5] sm:$0xff]  ;;  %v4687_v58 = vld [vmem:[#allocation11 + $0x170] sm:$0xf] }
 0x23e   : > { %v1341_v10 = vmax.f32 %v1309_v8, 0.0  ;;  %v4449_v8 = vld [vmem:[#allocation5 + $0x98] sm:$0xf0]  ;;  %v5526_v59 = vld [vmem:[#allocation11 + $0x174] sm:$0xf0] }
 0x240   : > { %v1376_v11 = vpack.c.bf16 %v1341_v10, %v1339_v9  ;;  %v4452_v9 = vor.u32 %v5465_v6, %v4449_v8  ;;  %1783 = vmatpush.bf16.msrb.mxu2 %v4448_v7  ;;  %v4439_v10 = vld [vmem:[#allocation5 + $0x80] sm:$0xf]  ;;  %v5855_v7 = vld [vmem:[%s6568_s5 + $0x8] sm:$0xff]  ;;  %s6698_s5 = sshll.u32 %s3717_s26, 4  ;;  %s3721_s5 = int_to_ptr.hbm [resolvable:$true] %s6698_s5 }
 0x241   : > { %1796 = vmatpush.bf16.msrb.mxu3 %v4460_v3 }
 0x242   : > { %1485 = vmatmul.bf16.vlgmr.msra.gmra.mxu2 %v1376_v11  ;;  %v5464_v11 = vld [vmem:[#allocation5 + $0x84] sm:$0xf0] }
 0x243   : > { %v4440_v13 = vor.u32 %v5464_v11, %v4439_v10  ;;  %v4527_v10 = vld [vmem:[#allocation8 + $0x130] sm:$0xf]  ;;  %v5486_v11 = vld [vmem:[#allocation8 + $0x134] sm:$0xf0] }
 0x245   : > { %1797 = vmatpush.bf16.msrb.mxu3 %v4452_v9  ;;  %1784 = vmatpush.bf16.msrb.mxu2 %v4440_v13  ;;  %v4528_v13 = vor.u32 %v5486_v11, %v4527_v10  ;;  %v5542_v10 = vld [vmem:[#allocation11 + $0x1f4] sm:$0xf0]  ;;  %v5541_v11 = vld [vmem:[#allocation11 + $0x1f4] sm:$0xf] }
 0x249   : > { %1798 = vmatpush.bf16.msrb.mxu3 %v4444_v15  ;;  %2039 = vmatpush.bf16.msra.mxu2 %v4564_v24  ;;  %v5485_v15 = vld [vmem:[#allocation8 + $0x134] sm:$0xf]  ;;  %v4583_v24 = vld [vmem:[#allocation8 + $0x1a0] sm:$0xf] }
 0x24a   : > { %v4532_v18 = vor.u32 %v5485_v15, %v4529_v16  ;;  %v4584_v29 = vor.u32 %v5500_v26, %v4583_v24  ;;  %v4756_v15 = vor.u32 %v5541_v11, %v4753_v12  ;;  %v4671_v16 = vld [vmem:[#allocation11 + $0x150] sm:$0xf]  ;;  %v4745_v24 = vld [vmem:[#allocation11 + $0x1e8] sm:$0xf0]  ;;  %v5515_v11 = vld [vmem:[#allocation11 + $0x124] sm:$0xf] }
 0x24b   : > { %v4748_v26 = vor.u32 %v5539_v23, %v4745_v24  ;;  %v5513_v23 = vld [vmem:[#allocation11 + $0x114] sm:$0xf] }
 0x24d   : > { %2053 = vmatpush.bf16.msra.mxu3 %v4628_v28  ;;  %2040 = vmatpush.bf16.msra.mxu2 %v4556_v37  ;;  %v4521_v28 = vld [vmem:[#allocation8 + $0x128] sm:$0xf0]  ;;  %v4512_v37 = vor.u32 %v5482_v35, %v4511_v34  ;;  %v1690_v34 = vld [vmem:[#allocation7 + $0x2] sm:$0x3] }
 0x24e   : > { %v4524_v30 = vor.u32 %v5483_v27, %v4521_v28  ;;  %v4663_v28 = vld [vmem:[#allocation11 + $0x140] sm:$0xf] }
 0x251   : > { %2054 = vmatpush.bf16.msra.mxu3 %v4620_v41  ;;  %v4576_v41 = vor.u32 %v5498_v38, %v4575_v36  ;;  %v1694_v38 = vperm.slane %v1690_v34, 1 }
 0x2bf   : > { %v1500_v46 = vpop.f32.mrf.mxu3 }
 0x2c5   : > { %v1486_v47 = vpop.f32.mrf.mxu2 }
 0x2c6   : > { %v1487_v49 = vadd.f32 %v5845_v48, %v1486_v47  ;;  %v5505_v47 = vld [vmem:[#allocation8 + $0x1d4] sm:$0xf] }
 0x2c7   : > { %v1502_v52 = vpop.f32.mrf.mxu3 }
 0x2c8   : > { %v1501_v53 = vadd.f32 %v1500_v46, %v1487_v49  ;;  %v4545_v46 = vld [vmem:[#allocation8 + $0x158] sm:$0xf0]  ;;  %v4608_v49 = vor.u32 %v5506_v43, %v4607_v42  ;;  %v4516_v42 = vor.u32 %v5481_v39, %v4513_v40  ;;  %v5497_v43 = vld [vmem:[#allocation8 + $0x194] sm:$0xf] }
 0x2ca   : > { %2027 = vmatpush.bf16.msra.mxu1 %v4608_v49 }
 0x2cd   : > { %v1488_v50 = vpop.f32.mrf.mxu2 }
 0x2ce   : > { %v1489_v51 = vadd.f32 %v5845_v48, %v1488_v50  ;;  %v4609_v48 = vld [vmem:[#allocation8 + $0x1d8] sm:$0xf0]  ;;  %v4548_v50 = vor.u32 %v5489_v44, %v4545_v46  ;;  %v4503_v46 = vld [vmem:[#allocation8 + $0x100] sm:$0xf] }
 0x2cf   : > { %v4577_v44 = vld [vmem:[#allocation8 + $0x198] sm:$0xf0] }
 0x2d0   : > { %v1503_v54 = vadd.f32 %v1502_v52, %v1489_v51  ;;  %v4535_v51 = vld [vmem:[#allocation8 + $0x140] sm:$0xf]  ;;  %v5488_v52 = vld [vmem:[#allocation8 + $0x144] sm:$0xf0]  ;;  %2041 = vmatpush.bf16.msra.mxu2 %v4548_v50  ;;  %v4580_v45 = vor.u32 %v5497_v43, %v4577_v44 }
 0x2d1   : > { %v4536_v60 = vor.u32 %v5488_v52, %v4535_v51  ;;  %v5496_v50 = vld [vmem:[#allocation8 + $0x184] sm:$0xf0]  ;;  %v5479_v51 = vld [vmem:[#allocation8 + $0x104] sm:$0xf]  ;;  %v4505_v52 = vld [vmem:[#allocation8 + $0x108] sm:$0xf0] }
 0x2d2   : > { %v1522_v55 = vpack.c.bf16 %v1503_v54, %v1501_v53  ;;  %v4599_v53 = vld [vmem:[#allocation8 + $0x1c0] sm:$0xf]  ;;  %v4612_v54 = vor.u32 %v5505_v47, %v4609_v48  ;;  %v5480_v47 = vld [vmem:[#allocation8 + $0x104] sm:$0xf0] }
 0x2d3   : > { %2014 = vmatpush.bf16.msra.mxu0 %v4536_v60  ;;  %v4567_v48 = vld [vmem:[#allocation8 + $0x180] sm:$0xf]  ;;  %v4504_v49 = vor.u32 %v5480_v47, %v4503_v46  ;;  %v5525_v60 = vld [vmem:[#allocation11 + $0x174] sm:$0xf] }
 0x2d4   : > { %1582 = vmatmul.bf16.vlgmr.msrb.gmra.mxu0 %v1522_v55  ;;  %1664 = vmatmul.bf16.vlgmr.msrb.gmra.mxu1 %v1522_v55  ;;  %v5504_v55 = vld [vmem:[#allocation8 + $0x1c4] sm:$0xf0] }
 0x2d5   : > { %v4600_v61 = vor.u32 %v5504_v55, %v4599_v53  ;;  %2055 = vmatpush.bf16.msra.mxu3 %v4612_v54  ;;  %2042 = vmatpush.bf16.msra.mxu2 %v4540_v62  ;;  %v4568_v53 = vor.u32 %v5496_v50, %v4567_v48  ;;  %v4508_v54 = vor.u32 %v5479_v51, %v4505_v52  ;;  %v5495_v55 = vld [vmem:[#allocation8 + $0x184] sm:$0xf]  ;;  %v4735_v51 = vld [vmem:[#allocation11 + $0x1d0] sm:$0xf]  ;;  %v5538_v52 = vld [vmem:[#allocation11 + $0x1d4] sm:$0xf0] }
 0x2d6   : > { %v4572_v57 = vor.u32 %v5495_v55, %v4569_v56  ;;  %v4689_v62 = vld [vmem:[#allocation11 + $0x178] sm:$0xf0] }
 0x2d7   : > { %2028 = vmatpush.bf16.msra.mxu1 %v4600_v61  ;;  %2015 = vmatpush.bf16.msra.mxu0 %v4528_v13  ;;  %v4688_v61 = vor.u32 %v5526_v59, %v4687_v58  ;;  %v4737_v55 = vld [vmem:[#allocation11 + $0x1d8] sm:$0xf0]  ;;  %v5518_v58 = vld [vmem:[#allocation11 + $0x134] sm:$0xf0]  ;;  %v5517_v59 = vld [vmem:[#allocation11 + $0x134] sm:$0xf] }
 0x2d9   : > { %2056 = vmatpush.bf16.msra.mxu3 %v4604_v63  ;;  %2043 = vmatpush.bf16.msra.mxu2 %v4532_v18  ;;  %v4679_v63 = vld [vmem:[#allocation11 + $0x160] sm:$0xf]  ;;  %v5521_v18 = vld [vmem:[#allocation11 + $0x154] sm:$0xf] }
 0x2da   : > { %v4676_v27 = vor.u32 %v5521_v18, %v4673_v19  ;;  %v4721_v19 = vld [vmem:[#allocation11 + $0x1b8] sm:$0xf0] }
 0x2db   : > { %2029 = vmatpush.bf16.msra.mxu1 %v4592_v17  ;;  %2016 = vmatpush.bf16.msra.mxu0 %v4520_v25  ;;  %v5522_v17 = vld [vmem:[#allocation11 + $0x154] sm:$0xf0] }
 0x2dc   : > { %v4672_v25 = vor.u32 %v5522_v17, %v4671_v16  ;;  %v5534_v16 = vld [vmem:[#allocation11 + $0x1b4] sm:$0xf0]  ;;  %v5533_v17 = vld [vmem:[#allocation11 + $0x1b4] sm:$0xf] }
 0x2dd   : > { %2057 = vmatpush.bf16.msra.mxu3 %v4596_v21  ;;  %2044 = vmatpush.bf16.msra.mxu2 %v4524_v30  ;;  %v5540_v21 = vld [vmem:[#allocation11 + $0x1e4] sm:$0xf0]  ;;  %v5519_v30 = vld [vmem:[#allocation11 + $0x144] sm:$0xf] }
 0x2de   : > { %v4744_v22 = vor.u32 %v5540_v21, %v4743_v20  ;;  %v4724_v20 = vor.u32 %v5533_v17, %v4721_v19  ;;  %v4639_v21 = vld [vmem:[#allocation11 + $0x110] sm:$0xf] }
 0x2df   : > { %2030 = vmatpush.bf16.msra.mxu1 %v4584_v29  ;;  %2017 = vmatpush.bf16.msra.mxu0 %v4512_v37  ;;  %v5520_v29 = vld [vmem:[#allocation11 + $0x144] sm:$0xf0]  ;;  %v1693_v37 = vperm.slane %v1690_v34, 0 }
 0x2e0   : > { %v4664_v32 = vor.u32 %v5520_v29, %v4663_v28  ;;  %v5532_v28 = vld [vmem:[#allocation11 + $0x1a4] sm:$0xf0]  ;;  %v5531_v29 = vld [vmem:[#allocation11 + $0x1a4] sm:$0xf] }
 0x2e1   : > { %2058 = vmatpush.bf16.msra.mxu3 %v4588_v33  ;;  %2045 = vmatpush.bf16.msra.mxu2 %v4516_v42  ;;  %v4668_v33 = vor.u32 %v5519_v30, %v4665_v31  ;;  %v4713_v31 = vld [vmem:[#allocation11 + $0x1a8] sm:$0xf0]  ;;  %v5512_v34 = vld [vmem:[#allocation11 + $0x104] sm:$0xf0] }
 0x2e3   : > { %2031 = vmatpush.bf16.msra.mxu1 %v4576_v41  ;;  %2018 = vmatpush.bf16.msra.mxu0 %v4504_v49 }
 0x2e5   : > { %2059 = vmatpush.bf16.msra.mxu3 %v4580_v45  ;;  %2046 = vmatpush.bf16.msra.mxu2 %v4508_v54  ;;  %v4736_v54 = vor.u32 %v5538_v52, %v4735_v51 }
 0x2e7   : > { %2032 = vmatpush.bf16.msra.mxu1 %v4568_v53  ;;  %2273 = vmatpush.bf16.msrb.mxu0 %v4688_v61  ;;  %v5537_v53 = vld [vmem:[#allocation11 + $0x1d4] sm:$0xf]  ;;  %v4657_v61 = vld [vmem:[#allocation11 + $0x138] sm:$0xf0] }
 0x2e8   : > { %v4740_v56 = vor.u32 %v5537_v53, %v4737_v55  ;;  %v5550_v53 = vld [vmem:[#allocation14 + $0xb8] sm:$0xff]  ;;  %v5549_v55 = vld [vmem:[#allocation14 + $0xb0] sm:$0xff] }
 0x2e9   : > { %2060 = vmatpush.bf16.msra.mxu3 %v4572_v57  ;;  %v4655_v57 = vld [vmem:[#allocation11 + $0x130] sm:$0xf] }
 0x351   : > { %v1665_v0 = vpop.f32.mrf.mxu1 }
 0x352   : > { %v6602_v2 = vadd.f32 %v5847_v1, %v1665_v0  ;;  %v5524_v0 = vld [vmem:[#allocation11 + $0x164] sm:$0xf0] }
 0x354   : > { %v6608_v6 = vsub.f32 %v5854_v5, %v6602_v2  ;;  %v4681_v5 = vld [vmem:[#allocation11 + $0x168] sm:$0xf0] }
 0x359   : > { %v1667_v3 = vpop.f32.mrf.mxu1 }
 0x35a   : > { %v6604_v4 = vadd.f32 %v5847_v1, %v1667_v3  ;;  %v4692_v1 = vor.u32 %v5525_v60, %v4689_v62  ;;  %v5523_v3 = vld [vmem:[#allocation11 + $0x164] sm:$0xf]  ;;  %v4656_v60 = vor.u32 %v5518_v58, %v4655_v57  ;;  %v4660_v62 = vor.u32 %v5517_v59, %v4657_v61  ;;  %v5548_v57 = vld [vmem:[#allocation14 + $0xa8] sm:$0xff] }
 0x35b   : > { %v4684_v13 = vor.u32 %v5523_v3, %v4681_v5  ;;  %v4729_v5 = vld [vmem:[#allocation11 + $0x1c8] sm:$0xf0] }
 0x35c   : > { %v6612_v8 = vsub.f32 %v5855_v7, %v6604_v4  ;;  %v4751_v7 = vld [vmem:[#allocation11 + $0x1f0] sm:$0xf] }
 0x35d   : > { %v4752_v14 = vor.u32 %v5542_v10, %v4751_v7  ;;  %v5516_v10 = vld [vmem:[#allocation11 + $0x124] sm:$0xf0] }
 0x35e   : > { %v1691_v9 = vpack.c.bf16 %v6612_v8, %v6608_v6 }
 0x35f   : > { %2287 = vmatpush.bf16.msrb.mxu1 %v4752_v14 }
 0x360   : > { %1785 = vmatmul.bf16.vlgmr.msrb.gmra.mxu2 %v1691_v9  ;;  %1799 = vmatmul.bf16.vlgmr.msrb.gmra.mxu3 %v1691_v9  ;;  %v4680_v9 = vor.u32 %v5524_v0, %v4679_v63  ;;  %v4727_v63 = vld [vmem:[#allocation11 + $0x1c0] sm:$0xf]  ;;  %v5536_v0 = vld [vmem:[#allocation11 + $0x1c4] sm:$0xf0] }
 0x361   : > { %2301 = vmatpush.bf16.msrb.mxu2 %v4692_v1  ;;  %2315 = vmatpush.bf16.msrb.mxu3 %v4756_v15  ;;  %v5535_v1 = vld [vmem:[#allocation11 + $0x1c4] sm:$0xf]  ;;  %v4728_v3 = vor.u32 %v5536_v0, %v4727_v63  ;;  %v4719_v15 = vld [vmem:[#allocation11 + $0x1b0] sm:$0xf] }
 0x362   : > { %2274 = vmatpush.bf16.msrb.mxu0 %v4680_v9  ;;  %v4732_v7 = vor.u32 %v5535_v1, %v4729_v5  ;;  %v4647_v9 = vld [vmem:[#allocation11 + $0x120] sm:$0xf]  ;;  %v4720_v18 = vor.u32 %v5534_v16, %v4719_v15 }
 0x363   : > { %2288 = vmatpush.bf16.msrb.mxu1 %v4744_v22  ;;  %v4648_v12 = vor.u32 %v5516_v10, %v4647_v9  ;;  %v5514_v22 = vld [vmem:[#allocation11 + $0x114] sm:$0xf0] }
 0x364   : > { %v4640_v24 = vor.u32 %v5514_v22, %v4639_v21  ;;  %v5557_v22 = vld [vmem:[#allocation14 + $0xf0] sm:$0xff] }
 0x365   : > { %2302 = vmatpush.bf16.msrb.mxu2 %v4684_v13  ;;  %2316 = vmatpush.bf16.msrb.mxu3 %v4748_v26  ;;  %v4649_v13 = vld [vmem:[#allocation11 + $0x128] sm:$0xf0] }
 0x366   : > { %2275 = vmatpush.bf16.msrb.mxu0 %v4672_v25  ;;  %v4652_v14 = vor.u32 %v5515_v11, %v4649_v13  ;;  %v4641_v25 = vld [vmem:[#allocation11 + $0x118] sm:$0xf0] }
 0x367   : > { %2289 = vmatpush.bf16.msrb.mxu1 %v4736_v54  ;;  %v4644_v26 = vor.u32 %v5513_v23, %v4641_v25  ;;  %v5558_v54 = vld [vmem:[#allocation14 + $0xf8] sm:$0xff]  ;;  %v5547_v23 = vld [vmem:[#allocation14 + $0xa0] sm:$0xff] }
 0x368   : > { %v5546_v25 = vld [vmem:[#allocation14 + $0x98] sm:$0xff] }
 0x369   : > { %2303 = vmatpush.bf16.msrb.mxu2 %v4676_v27  ;;  %2317 = vmatpush.bf16.msrb.mxu3 %v4740_v56  ;;  %v4711_v27 = vld [vmem:[#allocation11 + $0x1a0] sm:$0xf]  ;;  %v1843_v56 = vld [vmem:[#allocation10 + $0x2] sm:$0x3] }
 0x36a   : > { %2276 = vmatpush.bf16.msrb.mxu0 %v4664_v32  ;;  %v4712_v30 = vor.u32 %v5532_v28, %v4711_v27  ;;  %v4716_v32 = vor.u32 %v5531_v29, %v4713_v31  ;;  %v1848_v0 = vperm.slane %v1843_v56, 1  ;;  %v5545_v27 = vld [vmem:[#allocation14 + $0x90] sm:$0xff]  ;;  %v5554_v28 = vld [vmem:[#allocation14 + $0xd8] sm:$0xff]  ;;  %v5544_v29 = vld [vmem:[#allocation14 + $0x88] sm:$0xff] }
 0x36b   : > { %2290 = vmatpush.bf16.msrb.mxu1 %v4728_v3  ;;  %v5543_v31 = vld [vmem:[#allocation14 + $0x80] sm:$0xff] }
 0x36d   : > { %2304 = vmatpush.bf16.msrb.mxu2 %v4668_v33  ;;  %2318 = vmatpush.bf16.msrb.mxu3 %v4732_v7  ;;  %v4631_v33 = vld [vmem:[#allocation11 + $0x100] sm:$0xf] }
 0x36e   : > { %2277 = vmatpush.bf16.msrb.mxu0 %v4656_v60  ;;  %v1847_v60 = vperm.slane %v1843_v56, 0 }
 0x36f   : > { %2291 = vmatpush.bf16.msrb.mxu1 %v4720_v18 }
 0x371   : > { %2305 = vmatpush.bf16.msrb.mxu2 %v4660_v62  ;;  %2319 = vmatpush.bf16.msrb.mxu3 %v4724_v20 }
 0x372   : > { %2278 = vmatpush.bf16.msrb.mxu0 %v4648_v12 }
 0x373   : > { %2292 = vmatpush.bf16.msrb.mxu1 %v4712_v30  ;;  %v5553_v30 = vld [vmem:[#allocation14 + $0xd0] sm:$0xff] }
 0x375   : > { %2306 = vmatpush.bf16.msrb.mxu2 %v4652_v14  ;;  %2320 = vmatpush.bf16.msrb.mxu3 %v4716_v32  ;;  %v5552_v32 = vld [vmem:[#allocation14 + $0xc8] sm:$0xff] }
 0x376   : > { %2279 = vmatpush.bf16.msrb.mxu0 %v4640_v24  ;;  %v5556_v24 = vld [vmem:[#allocation14 + $0xe8] sm:$0xff] }
 0x379   : > { %2307 = vmatpush.bf16.msrb.mxu2 %v4644_v26  ;;  %v5555_v26 = vld [vmem:[#allocation14 + $0xe0] sm:$0xff] }
 0x3e3   : > { %v1786_v35 = vpop.f32.mrf.mxu2  ;;  %v1800_v36 = vpop.f32.mrf.mxu3 }
 0x3e4   : > { %v1787_v39 = vadd.f32 %v1786_v35, %v1693_v37  ;;  %v1801_v40 = vadd.f32 %v1800_v36, %v1694_v38  ;;  %v5511_v35 = vld [vmem:[#allocation11 + $0x104] sm:$0xf]  ;;  %v4632_v36 = vor.u32 %v5512_v34, %v4631_v33 }
 0x3e5   : > { %v5551_v33 = vld [vmem:[#allocation14 + $0xc0] sm:$0xff]  ;;  %v5566_v34 = vld [vmem:[#allocation16 + $0x78] sm:$0xff] }
 0x3e6   : > { %v1805_v45 = vmax.f32 %v1787_v39, 0.0  ;;  %v1806_v46 = vmax.f32 %v1801_v40, 0.0  ;;  %v4703_v40 = vld [vmem:[#allocation11 + $0x190] sm:$0xf]  ;;  %2280 = vmatpush.bf16.msrb.mxu0 %v4632_v36  ;;  %v5565_v36 = vld [vmem:[#allocation16 + $0x70] sm:$0xff] }
 0x3eb   : > { %v1788_v41 = vpop.f32.mrf.mxu2  ;;  %v1802_v42 = vpop.f32.mrf.mxu3 }
 0x3ec   : > { %v1789_v43 = vadd.f32 %v1788_v41, %v1693_v37  ;;  %v1803_v44 = vadd.f32 %v1802_v42, %v1694_v38  ;;  %v4633_v37 = vld [vmem:[#allocation11 + $0x108] sm:$0xf0]  ;;  %v6616_v38 = vpop.f32.mrf.mxu0  ;;  %v5530_v41 = vld [vmem:[#allocation11 + $0x194] sm:$0xf0]  ;;  %v5529_v42 = vld [vmem:[#allocation11 + $0x194] sm:$0xf] }
 0x3ed   : > { %v4636_v39 = vor.u32 %v5511_v35, %v4633_v37  ;;  %v5574_v35 = vld [vmem:[#allocation17 + $0x78] sm:$0xff]  ;;  %v5573_v37 = vld [vmem:[#allocation17 + $0x70] sm:$0xff] }
 0x3ee   : > { %v1807_v47 = vmax.f32 %v1789_v43, 0.0  ;;  %v1808_v48 = vmax.f32 %v1803_v44, 0.0  ;;  %v4704_v43 = vor.u32 %v5530_v41, %v4703_v40  ;;  %v4705_v44 = vld [vmem:[#allocation11 + $0x198] sm:$0xf0]  ;;  %v5564_v40 = vld [vmem:[#allocation16 + $0x68] sm:$0xff] }
 0x3ef   : > { %2308 = vmatpush.bf16.msrb.mxu2 %v4636_v39  ;;  %v5572_v41 = vld [vmem:[#allocation17 + $0x68] sm:$0xff] }
 0x3f0   : > { %v1844_v49 = vpack.c.bf16 %v1807_v47, %v1805_v45  ;;  %v1845_v50 = vpack.c.bf16 %v1808_v48, %v1806_v46  ;;  %v4708_v45 = vor.u32 %v5529_v42, %v4705_v44  ;;  %2293 = vmatpush.bf16.msrb.mxu1 %v4704_v43  ;;  %v4695_v46 = vld [vmem:[#allocation11 + $0x180] sm:$0xf]  ;;  %v5528_v47 = vld [vmem:[#allocation11 + $0x184] sm:$0xf0]  ;;  %v5527_v48 = vld [vmem:[#allocation11 + $0x184] sm:$0xf] }
 0x3f1   : > { %v2105_v42 = vld [vmem:[#allocation13 + $0x2] sm:$0x3] }
 0x3f2   : > { %2019 = vmatmul.bf16.vlgmr.msra.gmra.mxu0 %v1844_v49  ;;  %2033 = vmatmul.bf16.vlgmr.msra.gmra.mxu1 %v1845_v50 }
 0x3f3   : > { %2047 = vmatmul.bf16.vlgmr.msra.gmra.mxu2 %v1844_v49  ;;  %2061 = vmatmul.bf16.vlgmr.msra.gmra.mxu3 %v1845_v50  ;;  %v4696_v49 = vor.u32 %v5528_v47, %v4695_v46  ;;  %v4697_v50 = vld [vmem:[#allocation11 + $0x188] sm:$0xf0] }
 0x3f4   : > { %2321 = vmatpush.bf16.msrb.mxu3 %v4708_v45  ;;  %v4700_v51 = vor.u32 %v5527_v48, %v4697_v50  ;;  %v6618_v52 = vpop.f32.mrf.mxu0  ;;  %2469 = vmatpush.bf16.msra.mxu0 %v5550_v53  ;;  %v2109_v45 = vperm.slane %v2105_v42, 0  ;;  %v2110_v50 = vperm.slane %v2105_v42, 1 }
 0x3f5   : > { %2294 = vmatpush.bf16.msrb.mxu1 %v4696_v49  ;;  %2568 = vmatpush.bf16.msra.mxu2 %v5566_v34 }
 0x3f8   : > { %2322 = vmatpush.bf16.msrb.mxu3 %v4700_v51  ;;  %2470 = vmatpush.bf16.msra.mxu0 %v5549_v55 }
 0x3f9   : > { %2483 = vmatpush.bf16.msra.mxu1 %v5558_v54  ;;  %2569 = vmatpush.bf16.msra.mxu2 %v5565_v36  ;;  %v5584_v36 = vld [vmem:[#allocation5 + $0x144] sm:$0xf0] }
 0x3fc   : > { %2471 = vmatpush.bf16.msra.mxu0 %v5548_v57  ;;  %2652 = vmatpush.bf16.msra.mxu3 %v5574_v35  ;;  %v4922_v35 = vld [vmem:[#allocation5 + $0x140] sm:$0xf] }
 0x3fd   : > { %2484 = vmatpush.bf16.msra.mxu1 %v5557_v22  ;;  %2570 = vmatpush.bf16.msra.mxu2 %v5564_v40  ;;  %v4938_v22 = vld [vmem:[#allocation5 + $0x160] sm:$0xf]  ;;  %v4923_v40 = vor.u32 %v5584_v36, %v4922_v35  ;;  %v5603_v35 = vld [vmem:[#allocation8 + $0x264] sm:$0xf]  ;;  %v5004_v36 = vld [vmem:[#allocation8 + $0x268] sm:$0xf0] }
 0x400   : > { %2472 = vmatpush.bf16.msra.mxu0 %v5547_v23  ;;  %2653 = vmatpush.bf16.msra.mxu3 %v5573_v37  ;;  %v5588_v23 = vld [vmem:[#allocation5 + $0x164] sm:$0xf0]  ;;  %v5583_v37 = vld [vmem:[#allocation5 + $0x144] sm:$0xf] }
 0x401   : > { %2485 = vmatpush.bf16.msra.mxu1 %v5556_v24 }
 0x404   : > { %2473 = vmatpush.bf16.msra.mxu0 %v5546_v25  ;;  %2654 = vmatpush.bf16.msra.mxu3 %v5572_v41  ;;  %v5587_v25 = vld [vmem:[#allocation5 + $0x164] sm:$0xf] }
 0x405   : > { %2486 = vmatpush.bf16.msra.mxu1 %v5555_v26  ;;  %v4940_v26 = vld [vmem:[#allocation5 + $0x168] sm:$0xf0] }
 0x408   : > { %2474 = vmatpush.bf16.msra.mxu0 %v5545_v27  ;;  %v4939_v27 = vor.u32 %v5588_v23, %v4938_v22  ;;  %v5605_v22 = vld [vmem:[#allocation8 + $0x274] sm:$0xf]  ;;  %v5012_v23 = vld [vmem:[#allocation8 + $0x278] sm:$0xf0] }
 0x409   : > { %2487 = vmatpush.bf16.msra.mxu1 %v5554_v28  ;;  %v4943_v28 = vor.u32 %v5587_v25, %v4940_v26  ;;  %v5015_v25 = vor.u32 %v5605_v22, %v5012_v23  ;;  %v5621_v26 = vld [vmem:[#allocation8 + $0x2f4] sm:$0xf]  ;;  %v5042_v22 = vld [vmem:[#allocation8 + $0x2b0] sm:$0xf] }
 0x40c   : > { %2475 = vmatpush.bf16.msra.mxu0 %v5544_v29  ;;  %v4930_v29 = vld [vmem:[#allocation5 + $0x150] sm:$0xf] }
 0x40d   : > { %2488 = vmatpush.bf16.msra.mxu1 %v5553_v30  ;;  %v5586_v30 = vld [vmem:[#allocation5 + $0x154] sm:$0xf0] }
 0x410   : > { %2476 = vmatpush.bf16.msra.mxu0 %v5543_v31  ;;  %v5585_v31 = vld [vmem:[#allocation5 + $0x154] sm:$0xf] }
 0x411   : > { %2489 = vmatpush.bf16.msra.mxu1 %v5552_v32  ;;  %v4932_v32 = vld [vmem:[#allocation5 + $0x158] sm:$0xf0] }
 0x412   : > { %v4935_v34 = vor.u32 %v5585_v31, %v4932_v32  ;;  %v5066_v31 = vld [vmem:[#allocation8 + $0x2e0] sm:$0xf]  ;;  %v5620_v32 = vld [vmem:[#allocation8 + $0x2e4] sm:$0xf0] }
 0x415   : > { %2490 = vmatpush.bf16.msra.mxu1 %v5551_v33  ;;  %v4931_v33 = vor.u32 %v5586_v30, %v4930_v29  ;;  %v5604_v30 = vld [vmem:[#allocation8 + $0x264] sm:$0xf0] }
 0x46f   : > { %v2020_v58 = vpop.f32.mrf.mxu0  ;;  %v2034_v59 = vpop.f32.mrf.mxu1 }
 0x470   : > { %v2021_v61 = vadd.f32 %v2020_v58, %v1847_v60 }
 0x472   : > { %v2035_v3 = vadd.f32 %v2034_v59, %v2021_v61 }
 0x474   : > { %v2067_v11 = vmax.f32 %v2035_v3, 0.0 }
 0x476   : > { %v2048_v62 = vpop.f32.mrf.mxu2  ;;  %v2062_v63 = vpop.f32.mrf.mxu3 }
 0x477   : > { %v2022_v1 = vpop.f32.mrf.mxu0  ;;  %v2036_v7 = vpop.f32.mrf.mxu1  ;;  %v2049_v10 = vadd.f32 %v2048_v62, %v1848_v0 }
 0x478   : > { %v2023_v5 = vadd.f32 %v2022_v1, %v1847_v60 }
 0x479   : > { %v2063_v15 = vadd.f32 %v2062_v63, %v2049_v10  ;;  %v5570_v10 = vld [vmem:[#allocation17 + $0x58] sm:$0xff] }
 0x47a   : > { %v2037_v9 = vadd.f32 %v2036_v7, %v2023_v5  ;;  %v5563_v5 = vld [vmem:[#allocation16 + $0x60] sm:$0xff] }
 0x47b   : > { %v2068_v19 = vmax.f32 %v2063_v15, 0.0  ;;  %v5571_v7 = vld [vmem:[#allocation17 + $0x60] sm:$0xff]  ;;  %2571 = vmatpush.bf16.msra.mxu2 %v5563_v5 }
 0x47c   : > { %v2069_v12 = vmax.f32 %v2037_v9, 0.0  ;;  %2655 = vmatpush.bf16.msra.mxu3 %v5571_v7  ;;  %v5562_v9 = vld [vmem:[#allocation16 + $0x58] sm:$0xff]  ;;  %v5559_v15 = vld [vmem:[#allocation16 + $0x40] sm:$0xff] }
 0x47d   : > { %v5577_v5 = vld [vmem:[#allocation5 + $0x114] sm:$0xf] }
 0x47e   : > { %v2106_v13 = vpack.c.bf16 %v2069_v12, %v2067_v11  ;;  %v2050_v14 = vpop.f32.mrf.mxu2  ;;  %v2064_v17 = vpop.f32.mrf.mxu3  ;;  %v5561_v11 = vld [vmem:[#allocation16 + $0x50] sm:$0xff] }
 0x47f   : > { %v2051_v16 = vadd.f32 %v2050_v14, %v1848_v0  ;;  %2572 = vmatpush.bf16.msra.mxu2 %v5562_v9  ;;  %v5569_v12 = vld [vmem:[#allocation17 + $0x50] sm:$0xff]  ;;  %v5568_v14 = vld [vmem:[#allocation17 + $0x48] sm:$0xff] }
 0x480   : > { %2281 = vmatmul.bf16.vlgmr.msrb.gmra.mxu0 %v2106_v13  ;;  %2309 = vmatmul.bf16.vlgmr.msrb.gmra.mxu2 %v2106_v13  ;;  %v5560_v13 = vld [vmem:[#allocation16 + $0x48] sm:$0xff] }
 0x481   : > { %v2065_v18 = vadd.f32 %v2064_v17, %v2051_v16  ;;  %2656 = vmatpush.bf16.msra.mxu3 %v5570_v10  ;;  %v5567_v16 = vld [vmem:[#allocation17 + $0x40] sm:$0xff]  ;;  %v4900_v9 = vld [vmem:[#allocation5 + $0x118] sm:$0xf0] }
 0x482   : > { %v4946_v17 = vld [vmem:[#allocation5 + $0x170] sm:$0xf]  ;;  %v4903_v10 = vor.u32 %v5577_v5, %v4900_v9  ;;  %v6626_v5 = vld [vmem:[%s6846_s10] ss:$0 sm:$0xff] }
 0x483   : > { %v2070_v20 = vmax.f32 %v2065_v18, 0.0  ;;  %2573 = vmatpush.bf16.msra.mxu2 %v5561_v11  ;;  %v5590_v18 = vld [vmem:[#allocation5 + $0x174] sm:$0xf0]  ;;  %v4890_v11 = vld [vmem:[#allocation5 + $0x100] sm:$0xf] }
 0x485   : > { %v2107_v21 = vpack.c.bf16 %v2070_v20, %v2068_v19  ;;  %2657 = vmatpush.bf16.msra.mxu3 %v5569_v12  ;;  %v5589_v19 = vld [vmem:[#allocation5 + $0x174] sm:$0xf]  ;;  %v4947_v20 = vor.u32 %v5590_v18, %v4946_v17  ;;  %v5576_v12 = vld [vmem:[#allocation5 + $0x104] sm:$0xf0]  ;;  %v5606_v18 = vld [vmem:[#allocation8 + $0x274] sm:$0xf0] }
 0x486   : > { %v5010_v17 = vld [vmem:[#allocation8 + $0x270] sm:$0xf] }
 0x487   : > { %2295 = vmatmul.bf16.vlgmr.msrb.gmra.mxu1 %v2107_v21  ;;  %2323 = vmatmul.bf16.vlgmr.msrb.gmra.mxu3 %v2107_v21  ;;  %v4948_v21 = vld [vmem:[#allocation5 + $0x178] sm:$0xf0] }
 0x488   : > { %2574 = vmatpush.bf16.msra.mxu2 %v5560_v13  ;;  %v4951_v24 = vor.u32 %v5589_v19, %v4948_v21  ;;  %2777 = vmatpush.bf16.msrb.mxu0 %v4947_v20  ;;  %v5575_v13 = vld [vmem:[#allocation5 + $0x104] sm:$0xf]  ;;  %v5074_v19 = vld [vmem:[#allocation8 + $0x2f0] sm:$0xf]  ;;  %v5011_v20 = vor.u32 %v5606_v18, %v5010_v17  ;;  %v5622_v21 = vld [vmem:[#allocation8 + $0x2f4] sm:$0xf0] }
 0x489   : > { %2658 = vmatpush.bf16.msra.mxu3 %v5568_v14  ;;  %v4891_v14 = vor.u32 %v5576_v12, %v4890_v11  ;;  %v1584_v11 = vadd.f32 %v6626_v5, %v6616_v38 }
 0x48a   : > { %2791 = vmatpush.bf16.msrb.mxu1 %v4951_v24  ;;  %v5075_v24 = vor.u32 %v5622_v21, %v5074_v19  ;;  %v5598_v21 = vld [vmem:[#allocation8 + $0x234] sm:$0xf0] }
 0x48c   : > { %2575 = vmatpush.bf16.msra.mxu2 %v5559_v15  ;;  %2778 = vmatpush.bf16.msrb.mxu0 %v4939_v27  ;;  %v4892_v15 = vld [vmem:[#allocation5 + $0x108] sm:$0xf0]  ;;  %v5076_v27 = vld [vmem:[#allocation8 + $0x2f8] sm:$0xf0] }
 0x48d   : > { %2659 = vmatpush.bf16.msra.mxu3 %v5567_v16  ;;  %v4895_v16 = vor.u32 %v5575_v13, %v4892_v15  ;;  %v5079_v29 = vor.u32 %v5621_v26, %v5076_v27  ;;  %v4980_v26 = vld [vmem:[#allocation8 + $0x238] sm:$0xf0] }
 0x48e   : > { %2792 = vmatpush.bf16.msrb.mxu1 %v4943_v28  ;;  %v5002_v28 = vld [vmem:[#allocation8 + $0x260] sm:$0xf] }
 0x490   : > { %2779 = vmatpush.bf16.msrb.mxu0 %v4931_v33  ;;  %3011 = vmatpush.bf16.msrb.mxu2 %v5011_v20  ;;  %v5003_v33 = vor.u32 %v5604_v30, %v5002_v28  ;;  %v4978_v20 = vld [vmem:[#allocation8 + $0x230] sm:$0xf] }
 0x491   : > { %3025 = vmatpush.bf16.msrb.mxu3 %v5075_v24  ;;  %v4979_v23 = vor.u32 %v5598_v21, %v4978_v20  ;;  %v5614_v24 = vld [vmem:[#allocation8 + $0x2b4] sm:$0xf0]  ;;  %v5652_v20 = vld [vmem:[#allocation11 + $0x2e4] sm:$0xf0] }
 0x492   : > { %2793 = vmatpush.bf16.msrb.mxu1 %v4935_v34  ;;  %v5067_v34 = vor.u32 %v5620_v32, %v5066_v31  ;;  %v5043_v27 = vor.u32 %v5614_v24, %v5042_v22  ;;  %v5596_v31 = vld [vmem:[#allocation8 + $0x224] sm:$0xf0]  ;;  %v5034_v32 = vld [vmem:[#allocation8 + $0x2a0] sm:$0xf]  ;;  %v5138_v24 = vld [vmem:[#allocation11 + $0x270] sm:$0xf] }
 0x493   : > { %v5651_v22 = vld [vmem:[#allocation11 + $0x2e4] sm:$0xf] }
 0x494   : > { %2780 = vmatpush.bf16.msrb.mxu0 %v4923_v40  ;;  %v5068_v40 = vld [vmem:[#allocation8 + $0x2e8] sm:$0xf0]  ;;  %3012 = vmatpush.bf16.msrb.mxu2 %v5003_v33 }
 0x495   : > { %3026 = vmatpush.bf16.msrb.mxu3 %v5067_v34  ;;  %v5612_v34 = vld [vmem:[#allocation8 + $0x2a4] sm:$0xf0] }
 0x4fd   : > { %v2282_v39 = vpop.f32.mrf.mxu0 }
 0x4fe   : > { %v2283_v47 = vadd.f32 %v2282_v39, %v2109_v45  ;;  %v4924_v39 = vld [vmem:[#allocation5 + $0x148] sm:$0xf0] }
 0x4ff   : > { %v4927_v41 = vor.u32 %v5583_v37, %v4924_v39  ;;  %v5619_v37 = vld [vmem:[#allocation8 + $0x2e4] sm:$0xf]  ;;  %v5007_v39 = vor.u32 %v5603_v35, %v5004_v36  ;;  %v4972_v36 = vld [vmem:[#allocation8 + $0x228] sm:$0xf0] }
 0x500   : > { %v5595_v35 = vld [vmem:[#allocation8 + $0x224] sm:$0xf] }
 0x501   : > { %2794 = vmatpush.bf16.msrb.mxu1 %v4927_v41  ;;  %v4994_v41 = vld [vmem:[#allocation8 + $0x250] sm:$0xf] }
 0x503   : > { %v2310_v44 = vpop.f32.mrf.mxu2 }
 0x504   : > { %v2296_v43 = vpop.f32.mrf.mxu1  ;;  %v2311_v57 = vadd.f32 %v2310_v44, %v2110_v50  ;;  %v5848_v44 = vld [vmem:[%s6845_s8 + $0x1] ss:$0 sm:$0xff] }
 0x505   : > { %v2284_v46 = vpop.f32.mrf.mxu0  ;;  %v2297_v49 = vadd.f32 %v2296_v43, %v2283_v47 }
 0x506   : > { %v2285_v51 = vadd.f32 %v2284_v46, %v2109_v45 }
 0x507   : > { %v2329_v56 = vmax.f32 %v2297_v49, 0.0 }
 0x50a   : > { %v2324_v48 = vpop.f32.mrf.mxu3 }
 0x50b   : > { %v2312_v55 = vpop.f32.mrf.mxu2  ;;  %v2325_v59 = vadd.f32 %v2324_v48, %v2311_v57  ;;  %v4916_v57 = vld [vmem:[#allocation5 + $0x138] sm:$0xf0] }
 0x50c   : > { %v2298_v53 = vpop.f32.mrf.mxu1  ;;  %v2313_v61 = vadd.f32 %v2312_v55, %v2110_v50  ;;  %v5581_v55 = vld [vmem:[#allocation5 + $0x134] sm:$0xf] }
 0x50d   : > { %v2299_v54 = vadd.f32 %v2298_v53, %v2285_v51  ;;  %v2330_v0 = vmax.f32 %v2325_v59, 0.0  ;;  %v4914_v53 = vld [vmem:[#allocation5 + $0x130] sm:$0xf]  ;;  %v4906_v59 = vld [vmem:[#allocation5 + $0x120] sm:$0xf] }
 0x50f   : > { %v2331_v58 = vmax.f32 %v2299_v54, 0.0  ;;  %v5582_v54 = vld [vmem:[#allocation5 + $0x134] sm:$0xf0] }
 0x511   : > { %v2368_v60 = vpack.c.bf16 %v2331_v58, %v2329_v56  ;;  %v4915_v56 = vor.u32 %v5582_v54, %v4914_v53  ;;  %v4919_v58 = vor.u32 %v5581_v55, %v4916_v57  ;;  %v4986_v54 = vld [vmem:[#allocation8 + $0x240] sm:$0xf]  ;;  %v5600_v55 = vld [vmem:[#allocation8 + $0x244] sm:$0xf0] }
 0x512   : > { %v2326_v62 = vpop.f32.mrf.mxu3 }
 0x513   : > { %v2327_v63 = vadd.f32 %v2326_v62, %v2313_v61  ;;  %2477 = vmatmul.bf16.vlgmr.msra.gmra.mxu0 %v2368_v60  ;;  %2795 = vmatpush.bf16.msrb.mxu1 %v4919_v58  ;;  %v5580_v60 = vld [vmem:[#allocation5 + $0x124] sm:$0xf0]  ;;  %v5579_v61 = vld [vmem:[#allocation5 + $0x124] sm:$0xf]  ;;  %v5616_v58 = vld [vmem:[#allocation8 + $0x2c4] sm:$0xf0] }
 0x514   : > { %2781 = vmatpush.bf16.msrb.mxu0 %v4915_v56  ;;  %v4907_v62 = vor.u32 %v5580_v60, %v4906_v59  ;;  %v5050_v56 = vld [vmem:[#allocation8 + $0x2c0] sm:$0xf]  ;;  %v5599_v59 = vld [vmem:[#allocation8 + $0x244] sm:$0xf]  ;;  %v4988_v60 = vld [vmem:[#allocation8 + $0x248] sm:$0xf0] }
 0x515   : > { %v2332_v1 = vmax.f32 %v2327_v63, 0.0  ;;  %v4908_v63 = vld [vmem:[#allocation5 + $0x128] sm:$0xf0] }
 0x517   : > { %v2369_v3 = vpack.c.bf16 %v2332_v1, %v2330_v0  ;;  %v4911_v0 = vor.u32 %v5579_v61, %v4908_v63  ;;  %v4898_v1 = vld [vmem:[#allocation5 + $0x110] sm:$0xf]  ;;  %v5615_v61 = vld [vmem:[#allocation8 + $0x2c4] sm:$0xf]  ;;  %v4987_v63 = vor.u32 %v5600_v55, %v4986_v54  ;;  %v5028_v54 = vld [vmem:[#allocation8 + $0x298] sm:$0xf0] }
 0x518   : > { %2782 = vmatpush.bf16.msrb.mxu0 %v4907_v62  ;;  %v5052_v62 = vld [vmem:[#allocation8 + $0x2c8] sm:$0xf0] }
 0x519   : > { %2491 = vmatmul.bf16.vlgmr.msra.gmra.mxu1 %v2369_v3  ;;  %v5578_v3 = vld [vmem:[#allocation5 + $0x114] sm:$0xf0] }
 0x51a   : > { %2796 = vmatpush.bf16.msrb.mxu1 %v4911_v0  ;;  %v4899_v7 = vor.u32 %v5578_v3, %v4898_v1  ;;  %v5051_v0 = vor.u32 %v5616_v58, %v5050_v56  ;;  %v4991_v1 = vor.u32 %v5599_v59, %v4988_v60  ;;  %v5055_v3 = vor.u32 %v5615_v61, %v5052_v62  ;;  %v4954_v56 = vld [vmem:[#allocation8 + $0x200] sm:$0xf]  ;;  %v5608_v60 = vld [vmem:[#allocation8 + $0x284] sm:$0xf0]  ;;  %v5591_v61 = vld [vmem:[#allocation8 + $0x204] sm:$0xf] }
 0x51b   : > { %v5018_v58 = vld [vmem:[#allocation8 + $0x280] sm:$0xf]  ;;  %v4956_v62 = vld [vmem:[#allocation8 + $0x208] sm:$0xf0] }
 0x51c   : > { %2783 = vmatpush.bf16.msrb.mxu0 %v4899_v7  ;;  %v6631_v7 = vld [vmem:[%s6846_s10 + $0x1] ss:$0 sm:$0xff] }
 0x51e   : > { %2797 = vmatpush.bf16.msrb.mxu1 %v4903_v10 }
 0x520   : > { %2784 = vmatpush.bf16.msrb.mxu0 %v4891_v14  ;;  %v5850_v14 = vld [vmem:[%s6798_s12 + $0x1] ss:$0 sm:$0xff] }
 0x522   : > { %2798 = vmatpush.bf16.msrb.mxu1 %v4895_v16 }
 0x524   : > { %3039 = vmatpush.bf16.msra.mxu0 %v5015_v25  ;;  %v5597_v25 = vld [vmem:[#allocation8 + $0x234] sm:$0xf] }
 0x525   : > { %v4983_v28 = vor.u32 %v5597_v25, %v4980_v26  ;;  %v5638_v26 = vld [vmem:[#allocation11 + $0x274] sm:$0xf0] }
 0x526   : > { %3053 = vmatpush.bf16.msra.mxu1 %v5079_v29  ;;  %v5044_v29 = vld [vmem:[#allocation8 + $0x2b8] sm:$0xf0] }
 0x528   : > { %3040 = vmatpush.bf16.msra.mxu0 %v5007_v39  ;;  %v4975_v39 = vor.u32 %v5595_v35, %v4972_v36  ;;  %v5636_v35 = vld [vmem:[#allocation11 + $0x264] sm:$0xf0] }
 0x590   : > { %v2478_v42 = vpop.f32.mrf.mxu0 }
 0x591   : > { %v2479_v46 = vadd.f32 %v5848_v44, %v2478_v42  ;;  %v5602_v42 = vld [vmem:[#allocation8 + $0x254] sm:$0xf0] }
 0x596   : > { %v2492_v43 = vpop.f32.mrf.mxu1 }
 0x597   : > { %v2493_v49 = vadd.f32 %v2492_v43, %v2479_v46  ;;  %v5071_v43 = vor.u32 %v5619_v37, %v5068_v40  ;;  %v5601_v46 = vld [vmem:[#allocation8 + $0x254] sm:$0xf]  ;;  %v5035_v37 = vor.u32 %v5612_v34, %v5034_v32  ;;  %v5611_v40 = vld [vmem:[#allocation8 + $0x2a4] sm:$0xf]  ;;  %v5649_v32 = vld [vmem:[#allocation11 + $0x2d4] sm:$0xf] }
 0x598   : > { %v2480_v45 = vpop.f32.mrf.mxu0  ;;  %v5130_v34 = vld [vmem:[#allocation11 + $0x260] sm:$0xf] }
 0x599   : > { %v2481_v47 = vadd.f32 %v5848_v44, %v2480_v45  ;;  %v5058_v44 = vld [vmem:[#allocation8 + $0x2d0] sm:$0xf]  ;;  %v5618_v45 = vld [vmem:[#allocation8 + $0x2d4] sm:$0xf0]  ;;  %3054 = vmatpush.bf16.msra.mxu1 %v5071_v43  ;;  %v5131_v36 = vor.u32 %v5636_v35, %v5130_v34 }
 0x59a   : > { %v4962_v43 = vld [vmem:[#allocation8 + $0x210] sm:$0xf]  ;;  %v5106_v35 = vld [vmem:[#allocation11 + $0x230] sm:$0xf] }
 0x59e   : > { %v2494_v48 = vpop.f32.mrf.mxu1 }
 0x59f   : > { %v2495_v50 = vadd.f32 %v2494_v48, %v2481_v47  ;;  %v4995_v47 = vor.u32 %v5602_v42, %v4994_v41  ;;  %v4996_v48 = vld [vmem:[#allocation8 + $0x258] sm:$0xf0]  ;;  %v5036_v41 = vld [vmem:[#allocation8 + $0x2a8] sm:$0xf0] }
 0x5a0   : > { %v4999_v53 = vor.u32 %v5601_v46, %v4996_v48  ;;  %v5039_v42 = vor.u32 %v5611_v40, %v5036_v41  ;;  %v5593_v48 = vld [vmem:[#allocation8 + $0x214] sm:$0xf] }
 0x5a1   : > { %v2516_v51 = vpack.c.bf16 %v2495_v50, %v2493_v49  ;;  %v5617_v49 = vld [vmem:[#allocation8 + $0x2d4] sm:$0xf]  ;;  %v5060_v50 = vld [vmem:[#allocation8 + $0x2d8] sm:$0xf0]  ;;  %3013 = vmatpush.bf16.msrb.mxu2 %v4995_v47  ;;  %v5610_v47 = vld [vmem:[#allocation8 + $0x294] sm:$0xf0] }
 0x5a2   : > { %v5063_v57 = vor.u32 %v5617_v49, %v5060_v50  ;;  %3041 = vmatpush.bf16.msra.mxu0 %v4999_v53  ;;  %v4964_v49 = vld [vmem:[#allocation8 + $0x218] sm:$0xf0]  ;;  %v5609_v53 = vld [vmem:[#allocation8 + $0x294] sm:$0xf] }
 0x5a3   : > { %2576 = vmatmul.bf16.vlgmr.msra.gmra.mxu2 %v2516_v51  ;;  %2660 = vmatmul.bf16.vlgmr.msra.gmra.mxu3 %v2516_v51  ;;  %v5059_v51 = vor.u32 %v5618_v45, %v5058_v44  ;;  %v5594_v44 = vld [vmem:[#allocation8 + $0x214] sm:$0xf0]  ;;  %v5026_v45 = vld [vmem:[#allocation8 + $0x290] sm:$0xf]  ;;  %v5031_v55 = vor.u32 %v5609_v53, %v5028_v54 }
 0x5a4   : > { %3055 = vmatpush.bf16.msra.mxu1 %v5063_v57  ;;  %v4963_v46 = vor.u32 %v5594_v44, %v4962_v43  ;;  %v5027_v50 = vor.u32 %v5610_v47, %v5026_v45  ;;  %v5592_v57 = vld [vmem:[#allocation8 + $0x204] sm:$0xf0]  ;;  %v5648_v44 = vld [vmem:[#allocation11 + $0x2c4] sm:$0xf0] }
 0x5a5   : > { %3027 = vmatpush.bf16.msrb.mxu3 %v5059_v51  ;;  %3014 = vmatpush.bf16.msrb.mxu2 %v4987_v63  ;;  %v4967_v51 = vor.u32 %v5593_v48, %v4964_v49  ;;  %v4955_v59 = vor.u32 %v5592_v57, %v4954_v56  ;;  %v5019_v63 = vor.u32 %v5608_v60, %v5018_v58  ;;  %v5178_v43 = vld [vmem:[#allocation11 + $0x2c0] sm:$0xf]  ;;  %v5647_v45 = vld [vmem:[#allocation11 + $0x2c4] sm:$0xf]  ;;  %v2690_v49 = vld [vmem:[#allocation7 + $0x4] sm:$0x3] }
 0x5a6   : > { %3042 = vmatpush.bf16.msra.mxu0 %v4991_v1  ;;  %v5607_v1 = vld [vmem:[#allocation8 + $0x284] sm:$0xf]  ;;  %v5179_v47 = vor.u32 %v5648_v44, %v5178_v43  ;;  %v2693_v53 = vperm.slane %v2690_v49, 0  ;;  %v2694_v54 = vperm.slane %v2690_v49, 1  ;;  %v5642_v43 = vld [vmem:[#allocation11 + $0x294] sm:$0xf0] }
 0x5a7   : > { %v5641_v44 = vld [vmem:[#allocation11 + $0x294] sm:$0xf]  ;;  %v5628_v49 = vld [vmem:[#allocation11 + $0x224] sm:$0xf0] }
 0x5a8   : > { %3056 = vmatpush.bf16.msra.mxu1 %v5055_v3  ;;  %v5020_v3 = vld [vmem:[#allocation8 + $0x288] sm:$0xf0] }
 0x5a9   : > { %3028 = vmatpush.bf16.msrb.mxu3 %v5051_v0  ;;  %3015 = vmatpush.bf16.msrb.mxu2 %v4979_v23  ;;  %v4959_v0 = vor.u32 %v5591_v61, %v4956_v62  ;;  %v5196_v23 = vld [vmem:[#allocation11 + $0x2e8] sm:$0xf0] }
 0x5aa   : > { %3043 = vmatpush.bf16.msra.mxu0 %v4983_v28  ;;  %v5140_v28 = vld [vmem:[#allocation11 + $0x278] sm:$0xf0] }
 0x5ad   : > { %3029 = vmatpush.bf16.msrb.mxu3 %v5043_v27  ;;  %v5637_v27 = vld [vmem:[#allocation11 + $0x274] sm:$0xf] }
 0x5ae   : > { %3044 = vmatpush.bf16.msra.mxu0 %v4975_v39  ;;  %v5132_v39 = vld [vmem:[#allocation11 + $0x268] sm:$0xf0] }
 0x5b1   : > { %3030 = vmatpush.bf16.msrb.mxu3 %v5035_v37  ;;  %v5635_v37 = vld [vmem:[#allocation11 + $0x264] sm:$0xf] }
 0x5b2   : > { %3045 = vmatpush.bf16.msra.mxu0 %v4967_v51  ;;  %v5135_v41 = vor.u32 %v5635_v37, %v5132_v39  ;;  %v5629_v39 = vld [vmem:[#allocation11 + $0x234] sm:$0xf] }
 0x5b5   : > { %3031 = vmatpush.bf16.msrb.mxu3 %v5027_v50 }
 0x5b6   : > { %3046 = vmatpush.bf16.msra.mxu0 %v4959_v0 }
 0x5b9   : > { %3032 = vmatpush.bf16.msrb.mxu3 %v5019_v63 }
 0x626   : > { %v2577_v9 = vpop.f32.mrf.mxu2  ;;  %v2661_v10 = vpop.f32.mrf.mxu3 }
 0x627   : > { %v2578_v12 = vadd.f32 %v6631_v7, %v2577_v9  ;;  %v6641_v15 = vadd.f32 %v5850_v14, %v2661_v10  ;;  %v5023_v9 = vor.u32 %v5607_v1, %v5020_v3  ;;  %v5202_v10 = vld [vmem:[#allocation11 + $0x2f0] sm:$0xf] }
 0x629   : > { %v6636_v13 = vadd.f32 %v2578_v12, %v1584_v11  ;;  %v6647_v18 = vsub.f32 %v6608_v6, %v6641_v15  ;;  %v5613_v6 = vld [vmem:[#allocation8 + $0x2b4] sm:$0xf]  ;;  %v5654_v11 = vld [vmem:[#allocation11 + $0x2f4] sm:$0xf0]  ;;  %v5653_v12 = vld [vmem:[#allocation11 + $0x2f4] sm:$0xf] }
 0x62a   : > { %v5047_v30 = vor.u32 %v5613_v6, %v5044_v29  ;;  %v5199_v6 = vor.u32 %v5651_v22, %v5196_v23  ;;  %v5139_v29 = vor.u32 %v5638_v26, %v5138_v24  ;;  %v5172_v23 = vld [vmem:[#allocation11 + $0x2b8] sm:$0xf0]  ;;  %v5632_v26 = vld [vmem:[#allocation11 + $0x244] sm:$0xf0] }
 0x62c   : > { %3057 = vmatpush.bf16.msra.mxu1 %v5047_v30  ;;  %v5143_v30 = vor.u32 %v5637_v27, %v5140_v28  ;;  %v5631_v27 = vld [vmem:[#allocation11 + $0x244] sm:$0xf] }
 0x62e   : > { %v2663_v16 = vpop.f32.mrf.mxu3 }
 0x62f   : > { %v6643_v17 = vadd.f32 %v5850_v14, %v2663_v16  ;;  %v5203_v14 = vor.u32 %v5654_v11, %v5202_v10  ;;  %v5204_v16 = vld [vmem:[#allocation11 + $0x2f8] sm:$0xf0]  ;;  %v5634_v10 = vld [vmem:[#allocation11 + $0x254] sm:$0xf0]  ;;  %v5633_v11 = vld [vmem:[#allocation11 + $0x254] sm:$0xf] }
 0x630   : > { %3058 = vmatpush.bf16.msra.mxu1 %v5039_v42  ;;  %v5207_v21 = vor.u32 %v5653_v12, %v5204_v16 }
 0x631   : > { %v6651_v38 = vsub.f32 %v6612_v8, %v6643_v17  ;;  %v4970_v8 = vld [vmem:[#allocation8 + $0x220] sm:$0xf]  ;;  %3287 = vmatpush.bf16.msra.mxu3 %v5203_v14 }
 0x632   : > { %v4971_v33 = vor.u32 %v5596_v31, %v4970_v8  ;;  %v5186_v8 = vld [vmem:[#allocation11 + $0x2d0] sm:$0xf]  ;;  %v5650_v31 = vld [vmem:[#allocation11 + $0x2d4] sm:$0xf0]  ;;  %v5124_v14 = vld [vmem:[#allocation11 + $0x258] sm:$0xf0] }
 0x633   : > { %v2691_v19 = vpack.c.bf16 %v6651_v38, %v6647_v18  ;;  %v5187_v40 = vor.u32 %v5650_v31, %v5186_v8  ;;  %v5127_v16 = vor.u32 %v5633_v11, %v5124_v14  ;;  %v5644_v8 = vld [vmem:[#allocation11 + $0x2a4] sm:$0xf0]  ;;  %v5643_v31 = vld [vmem:[#allocation11 + $0x2a4] sm:$0xf]  ;;  %v5084_v14 = vld [vmem:[#allocation11 + $0x208] sm:$0xf0] }
 0x634   : > { %3016 = vmatpush.bf16.msrb.mxu2 %v4971_v33  ;;  %3059 = vmatpush.bf16.msra.mxu1 %v5031_v55  ;;  %v5188_v33 = vld [vmem:[#allocation11 + $0x2d8] sm:$0xf0]  ;;  %v5623_v11 = vld [vmem:[#allocation11 + $0x204] sm:$0xf] }
 0x635   : > { %2785 = vmatmul.bf16.vlgmr.msrb.gmra.mxu0 %v2691_v19  ;;  %2799 = vmatmul.bf16.vlgmr.msrb.gmra.mxu1 %v2691_v19  ;;  %v5194_v19 = vld [vmem:[#allocation11 + $0x2e0] sm:$0xf]  ;;  %v5191_v42 = vor.u32 %v5649_v32, %v5188_v33  ;;  %v5164_v33 = vld [vmem:[#allocation11 + $0x2a8] sm:$0xf0] }
 0x636   : > { %v5195_v25 = vor.u32 %v5652_v20, %v5194_v19  ;;  %3301 = vmatpush.bf16.msrb.mxu0 %v5143_v30  ;;  %v5170_v19 = vld [vmem:[#allocation11 + $0x2b0] sm:$0xf]  ;;  %v5646_v20 = vld [vmem:[#allocation11 + $0x2b4] sm:$0xf0]  ;;  %v5162_v30 = vld [vmem:[#allocation11 + $0x2a0] sm:$0xf]  ;;  %v5167_v34 = vor.u32 %v5643_v31, %v5164_v33 }
 0x637   : > { %v5171_v22 = vor.u32 %v5646_v20, %v5170_v19  ;;  %v5163_v32 = vor.u32 %v5644_v8, %v5162_v30  ;;  %v5670_v19 = vld [vmem:[#allocation14 + $0x178] sm:$0xff] }
 0x638   : > { %3017 = vmatpush.bf16.msrb.mxu2 %v4963_v46  ;;  %3060 = vmatpush.bf16.msra.mxu1 %v5023_v9  ;;  %v5180_v46 = vld [vmem:[#allocation11 + $0x2c8] sm:$0xf0]  ;;  %v5122_v9 = vld [vmem:[#allocation11 + $0x250] sm:$0xf]  ;;  %v5662_v20 = vld [vmem:[#allocation14 + $0x138] sm:$0xff] }
 0x639   : > { %3288 = vmatpush.bf16.msra.mxu3 %v5195_v25  ;;  %v5183_v48 = vor.u32 %v5647_v45, %v5180_v46  ;;  %v5123_v12 = vor.u32 %v5634_v10, %v5122_v9  ;;  %v5114_v25 = vld [vmem:[#allocation11 + $0x240] sm:$0xf]  ;;  %v5156_v46 = vld [vmem:[#allocation11 + $0x298] sm:$0xf0]  ;;  %v5624_v10 = vld [vmem:[#allocation11 + $0x204] sm:$0xf0] }
 0x63a   : > { %3302 = vmatpush.bf16.msrb.mxu0 %v5135_v41  ;;  %v5115_v28 = vor.u32 %v5632_v26, %v5114_v25  ;;  %v5082_v9 = vld [vmem:[#allocation11 + $0x200] sm:$0xf] }
 0x63c   : > { %3018 = vmatpush.bf16.msrb.mxu2 %v4955_v59  ;;  %3315 = vmatpush.bf16.msrb.mxu1 %v5207_v21  ;;  %v5645_v21 = vld [vmem:[#allocation11 + $0x2b4] sm:$0xf] }
 0x63d   : > { %3289 = vmatpush.bf16.msra.mxu3 %v5187_v40  ;;  %v5175_v24 = vor.u32 %v5645_v21, %v5172_v23  ;;  %v5108_v40 = vld [vmem:[#allocation11 + $0x238] sm:$0xf0] }
 0x63e   : > { %3303 = vmatpush.bf16.msrb.mxu0 %v5127_v16  ;;  %v5111_v41 = vor.u32 %v5629_v39, %v5108_v40  ;;  %v5087_v16 = vor.u32 %v5623_v11, %v5084_v14  ;;  %v5669_v21 = vld [vmem:[#allocation14 + $0x170] sm:$0xff]  ;;  %v2843_v23 = vld [vmem:[#allocation10 + $0x4] sm:$0x3] }
 0x63f   : > { %v2848_v26 = vperm.slane %v2843_v23, 1 }
 0x640   : > { %3273 = vmatpush.bf16.msra.mxu2 %v5139_v29  ;;  %3316 = vmatpush.bf16.msrb.mxu1 %v5199_v6  ;;  %v5116_v6 = vld [vmem:[#allocation11 + $0x248] sm:$0xf0] }
 0x641   : > { %3290 = vmatpush.bf16.msra.mxu3 %v5179_v47  ;;  %v5119_v29 = vor.u32 %v5631_v27, %v5116_v6  ;;  %v5159_v47 = vor.u32 %v5641_v44, %v5156_v46 }
 0x643   : > { %3304 = vmatpush.bf16.msrb.mxu0 %v5119_v29  ;;  %v2847_v29 = vperm.slane %v2843_v23, 0 }
 0x644   : > { %3274 = vmatpush.bf16.msra.mxu2 %v5131_v36  ;;  %3317 = vmatpush.bf16.msrb.mxu1 %v5191_v42  ;;  %v5630_v36 = vld [vmem:[#allocation11 + $0x234] sm:$0xf0]  ;;  %v5154_v42 = vld [vmem:[#allocation11 + $0x290] sm:$0xf] }
 0x645   : > { %3291 = vmatpush.bf16.msra.mxu3 %v5171_v22  ;;  %v5107_v37 = vor.u32 %v5630_v36, %v5106_v35  ;;  %v5155_v45 = vor.u32 %v5642_v43, %v5154_v42  ;;  %v6655_v22 = vpop.f32.mrf.mxu2 }
 0x647   : > { %3305 = vmatpush.bf16.msrb.mxu0 %v5111_v41 }
 0x648   : > { %3318 = vmatpush.bf16.msrb.mxu1 %v5183_v48  ;;  %3275 = vmatpush.bf16.msra.mxu2 %v5123_v12  ;;  %v5098_v48 = vld [vmem:[#allocation11 + $0x220] sm:$0xf]  ;;  %v5083_v12 = vor.u32 %v5624_v10, %v5082_v9  ;;  %v3105_v9 = vld [vmem:[#allocation13 + $0x4] sm:$0x3] }
 0x649   : > { %3292 = vmatpush.bf16.msra.mxu3 %v5163_v32 }
 0x64c   : > { %3319 = vmatpush.bf16.msrb.mxu1 %v5175_v24  ;;  %3276 = vmatpush.bf16.msra.mxu2 %v5115_v28 }
 0x64d   : > { %3293 = vmatpush.bf16.msra.mxu3 %v5155_v45 }
 0x650   : > { %3320 = vmatpush.bf16.msrb.mxu1 %v5167_v34  ;;  %3277 = vmatpush.bf16.msra.mxu2 %v5107_v37 }
 0x654   : > { %3321 = vmatpush.bf16.msrb.mxu1 %v5159_v47  ;;  %v5668_v47 = vld [vmem:[#allocation14 + $0x168] sm:$0xff] }
 0x6b2   : > { %v2786_v50 = vpop.f32.mrf.mxu0  ;;  %v2800_v51 = vpop.f32.mrf.mxu1 }
 0x6b3   : > { %v2787_v55 = vadd.f32 %v2786_v50, %v2693_v53  ;;  %v2801_v56 = vadd.f32 %v2800_v51, %v2694_v54  ;;  %v5627_v50 = vld [vmem:[#allocation11 + $0x224] sm:$0xf]  ;;  %v5099_v51 = vor.u32 %v5628_v49, %v5098_v48  ;;  %v5661_v48 = vld [vmem:[#allocation14 + $0x130] sm:$0xff] }
 0x6b4   : > { %v5667_v49 = vld [vmem:[#allocation14 + $0x160] sm:$0xff] }
 0x6b5   : > { %v2805_v61 = vmax.f32 %v2787_v55, 0.0  ;;  %v2806_v62 = vmax.f32 %v2801_v56, 0.0  ;;  %v5146_v55 = vld [vmem:[#allocation11 + $0x280] sm:$0xf]  ;;  %v5640_v56 = vld [vmem:[#allocation11 + $0x284] sm:$0xf0]  ;;  %3278 = vmatpush.bf16.msra.mxu2 %v5099_v51 }
 0x6b6   : > { %v5666_v51 = vld [vmem:[#allocation14 + $0x158] sm:$0xff] }
 0x6ba   : > { %v2788_v57 = vpop.f32.mrf.mxu0  ;;  %v2802_v58 = vpop.f32.mrf.mxu1 }
 0x6bb   : > { %v2789_v59 = vadd.f32 %v2788_v57, %v2693_v53  ;;  %v2803_v60 = vadd.f32 %v2802_v58, %v2694_v54  ;;  %v5100_v53 = vld [vmem:[#allocation11 + $0x228] sm:$0xf0]  ;;  %v5639_v57 = vld [vmem:[#allocation11 + $0x284] sm:$0xf]  ;;  %v5147_v58 = vor.u32 %v5640_v56, %v5146_v55 }
 0x6bc   : > { %v5103_v54 = vor.u32 %v5627_v50, %v5100_v53  ;;  %v5660_v50 = vld [vmem:[#allocation14 + $0x128] sm:$0xff]  ;;  %v5659_v53 = vld [vmem:[#allocation14 + $0x120] sm:$0xff]  ;;  %v5658_v55 = vld [vmem:[#allocation14 + $0x118] sm:$0xff] }
 0x6bd   : > { %v2807_v63 = vmax.f32 %v2789_v59, 0.0  ;;  %v2808_v0 = vmax.f32 %v2803_v60, 0.0  ;;  %v5148_v59 = vld [vmem:[#allocation11 + $0x288] sm:$0xf0]  ;;  %3294 = vmatpush.bf16.msra.mxu3 %v5147_v58 }
 0x6be   : > { %3306 = vmatpush.bf16.msrb.mxu0 %v5103_v54  ;;  %v5151_v60 = vor.u32 %v5639_v57, %v5148_v59  ;;  %v5665_v54 = vld [vmem:[#allocation14 + $0x150] sm:$0xff]  ;;  %v5664_v56 = vld [vmem:[#allocation14 + $0x148] sm:$0xff]  ;;  %v5663_v58 = vld [vmem:[#allocation14 + $0x140] sm:$0xff] }
 0x6bf   : > { %v2844_v1 = vpack.c.bf16 %v2807_v63, %v2805_v61  ;;  %v2845_v3 = vpack.c.bf16 %v2808_v0, %v2806_v62  ;;  %v5090_v61 = vld [vmem:[#allocation11 + $0x210] sm:$0xf]  ;;  %v5626_v62 = vld [vmem:[#allocation11 + $0x214] sm:$0xf0]  ;;  %v5625_v63 = vld [vmem:[#allocation11 + $0x214] sm:$0xf] }
 0x6c0   : > { %v5091_v0 = vor.u32 %v5626_v62, %v5090_v61  ;;  %3322 = vmatpush.bf16.msrb.mxu1 %v5151_v60  ;;  %v5657_v57 = vld [vmem:[#allocation14 + $0x110] sm:$0xff]  ;;  %v5656_v59 = vld [vmem:[#allocation14 + $0x108] sm:$0xff]  ;;  %v5655_v60 = vld [vmem:[#allocation14 + $0x100] sm:$0xff] }
 0x6c1   : > { %3019 = vmatmul.bf16.vlgmr.msrb.gmra.mxu2 %v2844_v1  ;;  %3033 = vmatmul.bf16.vlgmr.msrb.gmra.mxu3 %v2845_v3  ;;  %v5678_v61 = vld [vmem:[#allocation16 + $0xb8] sm:$0xff] }
 0x6c2   : > { %3047 = vmatmul.bf16.vlgmr.msra.gmra.mxu0 %v2844_v1  ;;  %3061 = vmatmul.bf16.vlgmr.msra.gmra.mxu1 %v2845_v3  ;;  %v5092_v1 = vld [vmem:[#allocation11 + $0x218] sm:$0xf0] }
 0x6c3   : > { %v5095_v3 = vor.u32 %v5625_v63, %v5092_v1  ;;  %3279 = vmatpush.bf16.msra.mxu2 %v5091_v0  ;;  %3483 = vmatpush.bf16.msrb.mxu3 %v5670_v19  ;;  %v5686_v62 = vld [vmem:[#allocation17 + $0xb8] sm:$0xff]  ;;  %v5677_v63 = vld [vmem:[#allocation16 + $0xb0] sm:$0xff]  ;;  %v5676_v1 = vld [vmem:[#allocation16 + $0xa8] sm:$0xff] }
 0x6c4   : > { %3652 = vmatpush.bf16.msra.mxu1 %v5686_v62  ;;  %v5685_v0 = vld [vmem:[#allocation17 + $0xb0] sm:$0xff] }
 0x6c5   : > { %3307 = vmatpush.bf16.msrb.mxu0 %v5095_v3  ;;  %v5684_v3 = vld [vmem:[#allocation17 + $0xa8] sm:$0xff] }
 0x6c7   : > { %3280 = vmatpush.bf16.msra.mxu2 %v5083_v12  ;;  %3484 = vmatpush.bf16.msrb.mxu3 %v5669_v21  ;;  %v3110_v12 = vperm.slane %v3105_v9, 1 }
 0x6c8   : > { %3653 = vmatpush.bf16.msra.mxu1 %v5685_v0 }
 0x6c9   : > { %3308 = vmatpush.bf16.msrb.mxu0 %v5087_v16 }
 0x6cb   : > { %3469 = vmatpush.bf16.msrb.mxu2 %v5662_v20  ;;  %3485 = vmatpush.bf16.msrb.mxu3 %v5668_v47  ;;  %v3109_v20 = vperm.slane %v3105_v9, 0  ;;  %v5679_v47 = vld [vmem:[#allocation17 + $0x80] sm:$0xff] }
 0x6cc   : > { %3654 = vmatpush.bf16.msra.mxu1 %v5684_v3 }
 0x6cd   : > { %3568 = vmatpush.bf16.msra.mxu0 %v5678_v61 }
 0x6cf   : > { %3470 = vmatpush.bf16.msrb.mxu2 %v5661_v48  ;;  %3486 = vmatpush.bf16.msrb.mxu3 %v5667_v49 }
 0x6d1   : > { %3569 = vmatpush.bf16.msra.mxu0 %v5677_v63  ;;  %v2668_v63 = vadd.f32 %v6641_v15, %v6602_v2  ;;  %v1586_v2 = vadd.f32 %v6626_v5, %v6618_v52 }
 0x6d3   : > { %3471 = vmatpush.bf16.msrb.mxu2 %v5660_v50  ;;  %3487 = vmatpush.bf16.msrb.mxu3 %v5666_v51  ;;  %v5851_v50 = vld [vmem:[%s6845_s8 + $0x2] ss:$0 sm:$0xff]  ;;  %s3735_s8 = sshll.u32 %s681_s1, 4  ;;  %s6708_s8 = int_to_ptr.vmem [resolvable:$true] %s3735_s8 }
 0x6d5   : > { %3570 = vmatpush.bf16.msra.mxu0 %v5676_v1 }
 0x6d7   : > { %3472 = vmatpush.bf16.msrb.mxu2 %v5659_v53  ;;  %3488 = vmatpush.bf16.msrb.mxu3 %v5665_v54 }
 0x6db   : > { %3473 = vmatpush.bf16.msrb.mxu2 %v5658_v55  ;;  %3489 = vmatpush.bf16.msrb.mxu3 %v5664_v56 }
 0x6df   : > { %3474 = vmatpush.bf16.msrb.mxu2 %v5657_v57  ;;  %3490 = vmatpush.bf16.msrb.mxu3 %v5663_v58 }
 0x6e3   : > { %3475 = vmatpush.bf16.msrb.mxu2 %v5656_v59  ;;  %v5852_v59 = vld [vmem:[%s6846_s10 + $0x2] ss:$0 sm:$0xff]  ;;  %s6849_s10 = sld [smem:[#allocation44_spill]] }
 0x6e7   : > { %3476 = vmatpush.bf16.msrb.mxu2 %v5655_v60  ;;  %v5853_v60 = vld [vmem:[%s6798_s12 + $0x2] ss:$0 sm:$0xff] }
 0x6e9   : > { %s3734_s6 = scalar_lea.hbm %s6849_s10, %s5687_s15  ;;  %s6170_s15 = sshra.s32 %s3721_s5, 4  ;;  %s6171_s15 = int_to_ptr.hbm [resolvable:$true] %s6170_s15 }
 0x6ea   : > { %s6703_s17 = sshll.u32 %s3734_s6, 4  ;;  %s6172_s26 = scalar_lea.hbm %s6171_s15, 16  ;;  %s3738_s17 = int_to_ptr.hbm [resolvable:$true] %s6703_s17 }
 0x6eb   : > { %p6173_p1 = scmp.ne.s32.totalorder %s6171_s15, %s6172_s26  ;;  %p6177_p12 = scmp.lt.s32.totalorder %s6171_s15, %s6847_s2 }
 0x6ed   : > { %p6174_p3 = pnand %p6173_p1, %p6525_p13 }
 0x6ef   : > { %p6175_p5 = pneg %p6174_p3 }
 0x73f   : > { %v3048_v24 = vpop.f32.mrf.mxu0  ;;  %v3062_v25 = vpop.f32.mrf.mxu1 }
 0x740   : > { %v3049_v27 = vadd.f32 %v3048_v24, %v2848_v26 }
 0x742   : > { %v3063_v8 = vadd.f32 %v3062_v25, %v3049_v27 }
 0x744   : > { %v3020_v28 = vpop.f32.mrf.mxu2  ;;  %v3034_v6 = vpop.f32.mrf.mxu3  ;;  %v3068_v35 = vmax.f32 %v3063_v8, 0.0 }
 0x745   : > { %v3021_v32 = vadd.f32 %v3020_v28, %v2847_v29 }
 0x747   : > { %v3050_v30 = vpop.f32.mrf.mxu0  ;;  %v3064_v33 = vpop.f32.mrf.mxu1  ;;  %v3035_v39 = vadd.f32 %v3034_v6, %v3021_v32 }
 0x748   : > { %v3051_v31 = vadd.f32 %v3050_v30, %v2848_v26 }
 0x749   : > { %v3067_v44 = vmax.f32 %v3035_v39, 0.0  ;;  %v5683_v39 = vld [vmem:[#allocation17 + $0xa0] sm:$0xff] }
 0x74a   : > { %v3065_v34 = vadd.f32 %v3064_v33, %v3051_v31  ;;  %3655 = vmatpush.bf16.msra.mxu1 %v5683_v39 }
 0x74c   : > { %v3070_v36 = vmax.f32 %v3065_v34, 0.0  ;;  %v3022_v37 = vpop.f32.mrf.mxu2  ;;  %v3036_v42 = vpop.f32.mrf.mxu3 }
 0x74d   : > { %v3023_v40 = vadd.f32 %v3022_v37, %v2847_v29  ;;  %v5675_v37 = vld [vmem:[#allocation16 + $0xa0] sm:$0xff] }
 0x74e   : > { %v3107_v41 = vpack.c.bf16 %v3070_v36, %v3068_v35  ;;  %3571 = vmatpush.bf16.msra.mxu0 %v5675_v37 }
 0x74f   : > { %v3037_v43 = vadd.f32 %v3036_v42, %v3023_v40  ;;  %v5674_v40 = vld [vmem:[#allocation16 + $0x98] sm:$0xff]  ;;  %v5673_v42 = vld [vmem:[#allocation16 + $0x90] sm:$0xff] }
 0x750   : > { %3295 = vmatmul.bf16.vlgmr.msra.gmra.mxu3 %v3107_v41  ;;  %3323 = vmatmul.bf16.vlgmr.msrb.gmra.mxu1 %v3107_v41  ;;  %v5682_v41 = vld [vmem:[#allocation17 + $0x98] sm:$0xff] }
 0x751   : > { %v3069_v45 = vmax.f32 %v3037_v43, 0.0  ;;  %3656 = vmatpush.bf16.msra.mxu1 %v5682_v41  ;;  %v5681_v43 = vld [vmem:[#allocation17 + $0x90] sm:$0xff] }
 0x752   : > { %3572 = vmatpush.bf16.msra.mxu0 %v5674_v40 }
 0x753   : > { %v3106_v46 = vpack.c.bf16 %v3069_v45, %v3067_v44  ;;  %v5672_v44 = vld [vmem:[#allocation16 + $0x88] sm:$0xff] }
 0x754   : > { %v5680_v45 = vld [vmem:[#allocation17 + $0x88] sm:$0xff] }
 0x755   : > { %3281 = vmatmul.bf16.vlgmr.msra.gmra.mxu2 %v3106_v46  ;;  %3309 = vmatmul.bf16.vlgmr.msrb.gmra.mxu0 %v3106_v46  ;;  %v5671_v46 = vld [vmem:[#allocation16 + $0x80] sm:$0xff] }
 0x756   : > { %3573 = vmatpush.bf16.msra.mxu0 %v5673_v42  ;;  %3657 = vmatpush.bf16.msra.mxu1 %v5681_v43 }
 0x75a   : > { %3574 = vmatpush.bf16.msra.mxu0 %v5672_v44  ;;  %3658 = vmatpush.bf16.msra.mxu1 %v5680_v45 }
 0x75e   : > { %3575 = vmatpush.bf16.msra.mxu0 %v5671_v46  ;;  %3659 = vmatpush.bf16.msra.mxu1 %v5679_v47 }
 0x7cd   : > { %v3324_v10 = vpop.f32.mrf.mxu1 }
 0x7d2   : > { %v3310_v11 = vpop.f32.mrf.mxu0 }
 0x7d3   : > { %v3311_v14 = vadd.f32 %v3310_v11, %v3110_v12  ;;  %v3296_v16 = vpop.f32.mrf.mxu3  ;;  %v2580_v11 = vadd.f32 %v6631_v7, %v6655_v22 }
 0x7d5   : > { %v3325_v23 = vadd.f32 %v3324_v10, %v3311_v14  ;;  %v3326_v25 = vpop.f32.mrf.mxu1  ;;  %v2667_v7 = vadd.f32 %v2580_v11, %v1586_v2 }
 0x7d7   : > { %v3330_v28 = vmax.f32 %v3325_v23, 0.0 }
 0x7d8   : > { %v3282_v19 = vpop.f32.mrf.mxu2 }
 0x7d9   : > { %v3283_v26 = vadd.f32 %v3282_v19, %v3109_v20 }
 0x7da   : > { %v3312_v21 = vpop.f32.mrf.mxu0 }
 0x7db   : > { %v3313_v24 = vadd.f32 %v3312_v21, %v3110_v12  ;;  %v3297_v30 = vadd.f32 %v3296_v16, %v3283_v26  ;;  %v3298_v32 = vpop.f32.mrf.mxu3 }
 0x7dd   : > { %v3327_v27 = vadd.f32 %v3326_v25, %v3313_v24  ;;  %v3329_v34 = vmax.f32 %v3297_v30, 0.0 }
 0x7df   : > { %v3332_v6 = vmax.f32 %v3327_v27, 0.0 }
 0x7e0   : > { %v3284_v29 = vpop.f32.mrf.mxu2 }
 0x7e1   : > { %v3369_v8 = vpack.c.bf16 %v3332_v6, %v3330_v28  ;;  %v3285_v31 = vadd.f32 %v3284_v29, %v3109_v20 }
 0x7e3   : > { %v3299_v33 = vadd.f32 %v3298_v32, %v3285_v31  ;;  %3491 = vmatmul.bf16.vlgmr.msrb.gmra.mxu3 %v3369_v8 }
 0x7e5   : > { %v3331_v35 = vmax.f32 %v3299_v33, 0.0 }
 0x7e7   : > { %v3368_v36 = vpack.c.bf16 %v3331_v35, %v3329_v34 }
 0x7e9   : > { %3477 = vmatmul.bf16.vlgmr.msrb.gmra.mxu2 %v3368_v36 }
 0x866   : > { %v3492_v48 = vpop.f32.mrf.mxu3 }
 0x86c   : > { %v3478_v49 = vpop.f32.mrf.mxu2 }
 0x86d   : > { %v3479_v51 = vadd.f32 %v5851_v50, %v3478_v49 }
 0x86e   : > { %v3494_v55 = vpop.f32.mrf.mxu3 }
 0x86f   : > { %v3493_v56 = vadd.f32 %v3492_v48, %v3479_v51 }
 0x874   : > { %v3480_v53 = vpop.f32.mrf.mxu2 }
 0x875   : > { %v3481_v54 = vadd.f32 %v5851_v50, %v3480_v53 }
 0x877   : > { %v3495_v57 = vadd.f32 %v3494_v55, %v3481_v54 }
 0x879   : > { %v3516_v58 = vpack.c.bf16 %v3495_v57, %v3493_v56 }
 0x87b   : > { %3576 = vmatmul.bf16.vlgmr.msra.gmra.mxu0 %v3516_v58  ;;  %3660 = vmatmul.bf16.vlgmr.msra.gmra.mxu1 %v3516_v58 }
 0x8f8   : > { %v3577_v61 = vpop.f32.mrf.mxu0  ;;  %v3661_v62 = vpop.f32.mrf.mxu1 }
 0x8f9   : > { %v3578_v0 = vadd.f32 %v5852_v59, %v3577_v61  ;;  %v3662_v1 = vadd.f32 %v5853_v60, %v3661_v62 }
 0x8fb   : > { %v3666_v3 = vadd.f32 %v3578_v0, %v6636_v13  ;;  %v3668_v9 = vadd.f32 %v3662_v1, %v2668_v63  ;;  %v3670_v10 = vsub.f32 %v6647_v18, %v3662_v1  ;;  %v2669_v18 = vadd.f32 %v6643_v17, %v6604_v4 }
 0x8fd   : > { %3672 = vst [vmem:[%s6670_s29] sm:$0xff] %v3666_v3 }
 0x8fe   : > { %3674 = vst [vmem:[%s674_s13] sm:$0xff] %v3668_v9 }
 0x8ff   : > { %3676 = vst [vmem:[%s681_s1] sm:$0xff] %v3670_v10 }
 0x900   : > { %v3579_v13 = vpop.f32.mrf.mxu0  ;;  %v3663_v15 = vpop.f32.mrf.mxu1 }
 0x901   : > { %v3580_v52 = vadd.f32 %v5852_v59, %v3579_v13  ;;  %v3664_v5 = vadd.f32 %v5853_v60, %v3663_v15 }
 0x903   : > { %v3667_v22 = vadd.f32 %v3580_v52, %v2667_v7  ;;  %v3669_v12 = vadd.f32 %v3664_v5, %v2669_v18  ;;  %v3671_v14 = vsub.f32 %v6651_v38, %v3664_v5 }
 0x905   : > { %3673 = vst [vmem:[%s6670_s29 + $0x8] sm:$0xff] %v3667_v22  ;;  %s6176_s29 = scalar_lea.hbm %s6847_s2, 32 }
 0x906   : > { %3675 = vst [vmem:[%s674_s13 + $0x8] sm:$0xff] %v3669_v12  ;;  %p6178_p8 = scmp.lt.s32.totalorder %s6176_s29, %s6172_s26 }
 0x907   : > { %3677 = vst [vmem:[%s681_s1 + $0x8] sm:$0xff] %v3671_v14 }
 0x908   : > { %p6179_p7 = por %p6178_p8, %p6177_p12 }
 0x90a   : > { %p6180_p9 = pnand %p6179_p7, %p6175_p5 }
 0x90c   : > { %6183 = shalt.err (!%p6180_p9)
}
 0x90d   : > { %s6319_s1 = smov 128   ;;  %s6320_s16 = smov 8  }
 0x90e   : > { %5729 = dma.vmem_to_hbm [thread:$0]  (%p6525_p13), %s6696_s27, 256, %s3721_s5, %s6711_s9, %s6319_s1, %s6319_s1, %s6320_s16  }
 0x90f   : > { %s3679_s6 = scalar_lea.sflag [#allocation4], %s6561_s28  ;;  %s6198_s15 = sshra.s32 %s3704_s25, 4  ;;  %s6199_s15 = int_to_ptr.hbm [resolvable:$true] %s6198_s15 }
 0x910   : > { %s6200_s26 = scalar_lea.hbm %s6199_s15, 16  ;;  %s6204_s29 = scalar_lea.hbm %s6848_s0, 32 }
 0x911   : > { %p6201_p10 = scmp.ne.s32.totalorder %s6199_s15, %s6200_s26  ;;  %p6205_p2 = scmp.lt.s32.totalorder %s6199_s15, %s6848_s0 }
 0x912   : > { %p6206_p6 = scmp.lt.s32.totalorder %s6204_s29, %s6200_s26 }
 0x913   : > { %p6202_p11 = pnand %p6201_p10, %p6525_p13 }
 0x914   : > { %p6207_p1 = por %p6206_p6, %p6205_p2 }
 0x915   : > { %p6203_p0 = pneg %p6202_p11 }
 0x917   : > { %p6208_p3 = pnand %p6207_p1, %p6203_p0 }
 0x919   : > { %6211 = shalt.err (!%p6208_p3)
}
 0x91a   : > { %5728 = dma.vmem_to_hbm [thread:$0]  (%p6525_p13), %s6678_s22, 256, %s3704_s25, %s3679_s6, %s6319_s1, %s6319_s1, %s6320_s16  }
 0x91b   : > { %s6226_s28 = sshra.s32 %s3738_s17, 4  ;;  %s6232_s26 = scalar_lea.hbm %s6849_s10, 32  ;;  %s6227_s28 = int_to_ptr.hbm [resolvable:$true] %s6226_s28 }
 0x91c   : > { %s6228_s27 = scalar_lea.hbm %s6227_s28, 16  ;;  %p6233_p7 = scmp.lt.s32.totalorder %s6227_s28, %s6849_s10 }
 0x91d   : > { %p6229_p5 = scmp.ne.s32.totalorder %s6227_s28, %s6228_s27  ;;  %p6234_p9 = scmp.lt.s32.totalorder %s6232_s26, %s6228_s27 }
 0x91f   : > { %p6230_p12 = pnand %p6229_p5, %p6525_p13  ;;  %p6235_p10 = por %p6234_p9, %p6233_p7 }
 0x921   : > { %p6231_p8 = pneg %p6230_p12 }
 0x923   : > { %p6236_p11 = pnand %p6235_p10, %p6231_p8 }
 0x925   : > { %6239 = shalt.err (!%p6236_p11)
}
 0x926   : > { %5730 = dma.vmem_to_hbm [thread:$0]  (%p6525_p13), %s6708_s8, 256, %s3738_s17, %s6711_s9, %s6319_s1, %s6319_s1, %s6320_s16  }
 0x927 PF: > { %s3752_s22 = sand.u32 1, %s6290_s18   ;;  %p6850_p0 = scmp.ge.s32.totalorder %s6302_s21, 2 }
 0x928   : > { %s3753_s25 = scalar_lea.sflag [#allocation4], %s3752_s22 }
 0x929   : > { %p5767_p2 = pnand %p6850_p0, %p6532_p4 }
 0x92b   : > { %p5768_p6 = pneg %p5767_p2 }
 0x92d   : > { %6281 = dma.done.wait (%p5768_p6), %s3753_s25, 256  }
 0x92e   : > { %6283 = vsyncadd (%p5768_p6), %s3753_s25, 4294967040  ;;  %s6851_s3 = sadd.s32 4294967294, %s6302_s21  }
 0x92f   : > { %s3762_s6 = sand.u32 1, %s6851_s3  }
 0x930   : > { %s3763_s29 = scalar_lea.sflag [#allocation21], %s3762_s6 }
 0x931   : > { %6285 = dma.done.wait (%p5768_p6), %s3763_s29, 512  }
 0x932   : > { %6287 = vsyncadd (%p5768_p6), %s3763_s29, 4294966784  ;;  %p37_p13 = scmp.ge.s32.totalorder %s6505_s30, 4   ;;  %s6852_s18 = smov %s6294_s19 }
 0x933   : > { %s6853_s19 = smov %s6298_s20  ;;  %s6854_s20 = smov %s6517_s23 }
 0x934   : > { %s6855_s21 = smov %s6505_s30  ;;  %39 = sbr.rel (!%p37_p13) target bundleno = 27 (0x1b), region = 209 }
 0x939   :  { %3779 = vsyncpa [#allocation3], 1 }
 0x93a   :  { %3781 = vsyncpa [#allocation3 + $0x1], 1 }
 0x93b   :  { %3782 = vsyncpa [#allocation6], 1 }
 0x93c   :  { %3783 = vsyncpa [#allocation9], 1 }
 0x93d   :  { %3784 = vsyncpa [#allocation12], 1 }
 0x93e   :  { %3785 = vsyncpa [#allocation15], 1 }
 0x93f   :  { %3786 = vsyncpa [#allocation18], 1 }
 0x940   :  { %3787 = vsyncpa [#allocation4], 1 }
 0x941   :  { %3789 = vsyncpa [#allocation4 + $0x1], 1 }
 0x942   :  { %3790 = vsyncpa [#allocation21], 1 }
 0x943   :  { %3792 = vsyncpa [#allocation21 + $0x1], 1 }

</bundles_post_ra>
